<compile_context>
chip_gen: v7x
topology: tpu7x:2x2x1
jax: 0.10.0
libtpu: 0.0.40
codegen_flags: <defaults>
</compile_context>

<pallas_src>
import math

import jax
import jax.numpy as jnp
from jax.experimental import pallas as pl
from jax.experimental.pallas import tpu as pltpu

# ---------------------------------------------------------------------------
# Model hyper-parameters (small, deterministic)
# ---------------------------------------------------------------------------
B = 2          # batch
T_DEC = 8      # decoder seq len
T_ENC = 8      # encoder seq len
D = 32         # embedding size
H = 4          # num heads
DH = D // H    # head dim
FF_HIDDEN = 4 * D
NUM_LAYERS = 2
LN_EPS = 1e-5

_WEIGHT_ORDER = ["wq", "wk", "wv", "wo", "bq", "bk", "bv", "bo",
                 "ln_g", "ln_b", "w1", "b1", "w2", "b2"]


def _tree_sum(parts):
    """Balanced-tree sum of a list of arrays (no serial accumulate chain)."""
    parts = list(parts)
    while len(parts) > 1:
        nxt = [parts[i] + parts[i + 1] for i in range(0, len(parts) - 1, 2)]
        if len(parts) % 2:
            nxt.append(parts[-1])
        parts = nxt
    return parts[0]


# ---------------------------------------------------------------------------
# Fused decoder-stack kernel (single invocation, whole batch flattened)
# ---------------------------------------------------------------------------
def _decoder_kernel(x_ref, enc_ref, trg_add_ref, src_add_ref,
                    wq_ref, wk_ref, wv_ref, wo_ref,
                    bq_ref, bk_ref, bv_ref, bo_ref,
                    ln_g_ref, ln_b_ref,
                    w1_ref, b1_ref, w2_ref, b2_ref,
                    o_ref):
    x = x_ref[...]           # [B*T_DEC, D]
    enc = enc_ref[...]       # [B*T_ENC, D]
    trg_add = trg_add_ref[...]   # [B*T_DEC, B*T_DEC] additive (0 / -1e9), block-diag
    src_add = src_add_ref[...]   # [B*T_DEC, B*T_ENC] additive (0 / -1e9), block-diag

    def attention(layer, q_src, kv_src, mask_add):
        # Fused projections: one [rows,32]@[32,32] dot each.  The 1/sqrt(DH)
        # scale is already folded into wq / bq on the host.
        q = jnp.dot(q_src, wq_ref[layer],
                    preferred_element_type=jnp.float32) + bq_ref[layer]
        k = jnp.dot(kv_src, wk_ref[layer],
                    preferred_element_type=jnp.float32) + bk_ref[layer]
        v = jnp.dot(kv_src, wv_ref[layer],
                    preferred_element_type=jnp.float32) + bv_ref[layer]
        wo_l = wo_ref[layer]                       # [D, D]

        parts = []
        for h in range(H):                         # static head loop
            sl = slice(h * DH, (h + 1) * DH)       # static 8-lane slice
            # scores = q_h @ k_h^T  (transposed-RHS dot, no XLU transpose)
            s = jax.lax.dot_general(
                q[:, sl], k[:, sl],
                (((1,), (1,)), ((), ())),
                preferred_element_type=jnp.float32)
            s = s + mask_add                       # single additive-mask add
            m = jnp.max(s, axis=-1, keepdims=True)
            p = jnp.exp(s - m)
            denom = jnp.sum(p, axis=-1, keepdims=True)
            p = p * pl.reciprocal(denom, approx=True)   # EUP, not VPU divide
            ctx_h = jnp.dot(p, v[:, sl],
                            preferred_element_type=jnp.float32)   # [rows, DH]
            # independent output-projection partial (row block h of wo)
            parts.append(jnp.dot(ctx_h, wo_l[sl, :],
                                 preferred_element_type=jnp.float32))
        # tree-sum the H partials, bias added once at the end
        return _tree_sum(parts) + bo_ref[layer]

    def add_ln(layer, y, residual):
        z = y + residual
        mean = jnp.mean(z, axis=-1, keepdims=True)
        var = jnp.mean(jnp.square(z - mean), axis=-1, keepdims=True)
        norm = (z - mean) * jax.lax.rsqrt(var + LN_EPS)
        return norm * ln_g_ref[layer] + ln_b_ref[layer]

    def ffn(layer, y):
        h1 = jnp.dot(y, w1_ref[layer],
                     preferred_element_type=jnp.float32) + b1_ref[layer]
        h1 = jnp.maximum(h1, 0.0)
        return jnp.dot(h1, w2_ref[layer],
                       preferred_element_type=jnp.float32) + b2_ref[layer]

    # Whole decoder stack; activations never leave VMEM/vregs.
    for layer in range(NUM_LAYERS):
        x = add_ln(layer, attention(layer, x, x, trg_add), x)      # self-attn
        x = add_ln(layer, attention(layer, x, enc, src_add), x)    # cross-attn
        x = add_ln(layer, ffn(layer, x), x)                        # feed-forward

    o_ref[...] = x.astype(o_ref.dtype)


# ---------------------------------------------------------------------------
# Pallas wrapper (no grid: one invocation, everything resident in VMEM)
# ---------------------------------------------------------------------------
def _decoder_pallas(x_flat, enc_flat, trg_add, src_add, packed):
    weight_args = [packed[name] for name in _WEIGHT_ORDER]
    n_in = 4 + len(weight_args)
    vmem_spec = pl.BlockSpec(memory_space=pltpu.MemorySpace.VMEM)

    return pl.pallas_call(
        _decoder_kernel,
        out_shape=jax.ShapeDtypeStruct(x_flat.shape, x_flat.dtype),
        in_specs=[vmem_spec] * n_in,
        out_specs=vmem_spec,
    )(x_flat, enc_flat, trg_add, src_add, *weight_args)


@jax.jit
def decoder_forward(x, encoder_output, src_mask, trg_mask, packed):
    b, tq, d = x.shape
    tk = encoder_output.shape[1]
    x_flat = x.reshape(b * tq, d)
    enc_flat = encoder_output.reshape(b * tk, d)

    # Block-diagonal additive masks over the flattened (batch*seq) rows:
    # same-batch block -> (mask - 1) * 1e9, cross-batch block -> -1e9.
    eye = jnp.eye(b, dtype=x.dtype)
    trg_keep = jnp.einsum('bc,bqk->bqck', eye, trg_mask).reshape(b * tq, b * tq)
    src_keep = jnp.einsum('bc,bqk->bqck', eye, src_mask).reshape(b * tq, b * tk)
    trg_add = (trg_keep - 1.0) * 1e9
    src_add = (src_keep - 1.0) * 1e9

    out_flat = _decoder_pallas(x_flat, enc_flat, trg_add, src_add, packed)
    return out_flat.reshape(b, tq, d)


# ---------------------------------------------------------------------------
# Deterministic parameter init + host-side packing (layer-stacked, fused)
# ---------------------------------------------------------------------------
def init_params(key):
    def dense(k, shape):
        return (0.02 * jax.random.normal(k, shape)).astype(jnp.float32)

    layers = []
    for _ in range(NUM_LAYERS):
        key, *ks = jax.random.split(key, 8)
        attn = {
            "wq": dense(ks[0], (D, D)), "wk": dense(ks[1], (D, D)),
            "wv": dense(ks[2], (D, D)), "wo": dense(ks[3], (D, D)),
            "bq": jnp.zeros((D,), jnp.float32), "bk": jnp.zeros((D,), jnp.float32),
            "bv": jnp.zeros((D,), jnp.float32), "bo": jnp.zeros((D,), jnp.float32),
        }
        ff = {
            "w1": dense(ks[4], (D, FF_HIDDEN)),
            "b1": jnp.zeros((FF_HIDDEN,), jnp.float32),
            "w2": dense(ks[5], (FF_HIDDEN, D)),
            "b2": jnp.zeros((D,), jnp.float32),
        }
        layers.append({
            "attn": attn, "ff": ff,
            "ln_gamma": jnp.ones((D,), jnp.float32),
            "ln_beta": jnp.zeros((D,), jnp.float32),
        })
    return layers


def pack_params(layers):
    """Stack per-layer params; keep projections fused; fold 1/sqrt(DH) into wq/bq."""
    scale = 1.0 / math.sqrt(DH)

    def stack(fn):
        return jnp.stack([fn(lp) for lp in layers], axis=0)

    return {
        "wq": stack(lambda p: p["attn"]["wq"] * scale),          # [L, D, D] (pre-scaled)
        "wk": stack(lambda p: p["attn"]["wk"]),                  # [L, D, D]
        "wv": stack(lambda p: p["attn"]["wv"]),                  # [L, D, D]
        "wo": stack(lambda p: p["attn"]["wo"]),                  # [L, D, D]
        "bq": stack(lambda p: (p["attn"]["bq"] * scale).reshape(1, D)),
        "bk": stack(lambda p: p["attn"]["bk"].reshape(1, D)),
        "bv": stack(lambda p: p["attn"]["bv"].reshape(1, D)),
        "bo": stack(lambda p: p["attn"]["bo"].reshape(1, D)),
        "ln_g": stack(lambda p: p["ln_gamma"].reshape(1, D)),
        "ln_b": stack(lambda p: p["ln_beta"].reshape(1, D)),
        "w1": stack(lambda p: p["ff"]["w1"]),                    # [L, D, FF]
        "b1": stack(lambda p: p["ff"]["b1"].reshape(1, FF_HIDDEN)),
        "w2": stack(lambda p: p["ff"]["w2"]),                    # [L, FF, D]
        "b2": stack(lambda p: p["ff"]["b2"].reshape(1, D)),
    }


# ---------------------------------------------------------------------------
# Pure-JAX reference (standard concat-head formulation) for a correctness check
# ---------------------------------------------------------------------------
def _reference_decoder(x, enc, src_mask, trg_mask, layers):
    def mha_ref(q_in, kv_in, mask, a):
        q = q_in @ a["wq"] + a["bq"]
        k = kv_in @ a["wk"] + a["bk"]
        v = kv_in @ a["wv"] + a["bv"]
        b_, tq, _ = q.shape
        tk = k.shape[1]
        qh = q.reshape(b_, tq, H, DH).transpose(0, 2, 1, 3)
        kh = k.reshape(b_, tk, H, DH).transpose(0, 2, 1, 3)
        vh = v.reshape(b_, tk, H, DH).transpose(0, 2, 1, 3)
        s = jnp.einsum('bhqd,bhkd->bhqk', qh, kh) / math.sqrt(DH)
        s = jnp.where(mask[:, None] > 0.0, s, -1e9)
        p = jax.nn.softmax(s, axis=-1)
        ctx = jnp.einsum('bhqk,bhkd->bhqd', p, vh)
        ctx = ctx.transpose(0, 2, 1, 3).reshape(b_, tq, H * DH)
        return ctx @ a["wo"] + a["bo"]

    def ln_ref(z, g, b):
        mean = z.mean(-1, keepdims=True)
        var = ((z - mean) ** 2).mean(-1, keepdims=True)
        return (z - mean) / jnp.sqrt(var + LN_EPS) * g + b

    for p in layers:
        x = ln_ref(mha_ref(x, x, trg_mask, p["attn"]) + x, p["ln_gamma"], p["ln_beta"])
        x = ln_ref(mha_ref(x, enc, src_mask, p["attn"]) + x, p["ln_gamma"], p["ln_beta"])
        ff = jnp.maximum(x @ p["ff"]["w1"] + p["ff"]["b1"], 0.0) @ p["ff"]["w2"] + p["ff"]["b2"]
        x = ln_ref(ff + x, p["ln_gamma"], p["ln_beta"])
    return x


# ---------------------------------------------------------------------------
# Main
# ---------------------------------------------------------------------------
if __name__ == "__main__":
    key = jax.random.PRNGKey(0)
    k_x, k_enc, k_params = jax.random.split(key, 3)

    x = jax.random.normal(k_x, (B, T_DEC, D), dtype=jnp.float32)
    encoder_output = jax.random.normal(k_enc, (B, T_ENC, D), dtype=jnp.float32)

    # target mask: causal lower-triangular; source mask: all ones
    trg_mask = jnp.tril(jnp.ones((T_DEC, T_DEC), jnp.float32))[None].repeat(B, axis=0)
    src_mask = jnp.ones((B, T_DEC, T_ENC), jnp.float32)

    layer_params = init_params(k_params)
    packed = pack_params(layer_params)

    out = decoder_forward(x, encoder_output, src_mask, trg_mask, packed)
    out = jax.block_until_ready(out)

    assert out.shape == (B, T_DEC, D)
    assert bool(jnp.all(jnp.isfinite(out)))

    ref = _reference_decoder(x, encoder_output, src_mask, trg_mask, layer_params)
    max_err = float(jnp.max(jnp.abs(out - ref)))
    assert max_err < 3e-2, f"mismatch vs reference: max abs err {max_err}"

    print("KERNEL_OK")
</pallas_src>

<mosaic_0001>
module attributes {stable_mosaic.version = 11 : i64} {
  func.func @_decoder_kernel(%arg0: memref<16x32xf32, #tpu.memory_space<vmem>>, %arg1: memref<16x32xf32, #tpu.memory_space<vmem>>, %arg2: memref<16x16xf32, #tpu.memory_space<vmem>>, %arg3: memref<16x16xf32, #tpu.memory_space<vmem>>, %arg4: memref<2x32x32xf32, #tpu.memory_space<vmem>>, %arg5: memref<2x32x32xf32, #tpu.memory_space<vmem>>, %arg6: memref<2x32x32xf32, #tpu.memory_space<vmem>>, %arg7: memref<2x32x32xf32, #tpu.memory_space<vmem>>, %arg8: memref<2x1x32xf32, #tpu.memory_space<vmem>>, %arg9: memref<2x1x32xf32, #tpu.memory_space<vmem>>, %arg10: memref<2x1x32xf32, #tpu.memory_space<vmem>>, %arg11: memref<2x1x32xf32, #tpu.memory_space<vmem>>, %arg12: memref<2x1x32xf32, #tpu.memory_space<vmem>>, %arg13: memref<2x1x32xf32, #tpu.memory_space<vmem>>, %arg14: memref<2x32x128xf32, #tpu.memory_space<vmem>>, %arg15: memref<2x1x128xf32, #tpu.memory_space<vmem>>, %arg16: memref<2x128x32xf32, #tpu.memory_space<vmem>>, %arg17: memref<2x1x32xf32, #tpu.memory_space<vmem>>, %arg18: memref<16x32xf32, #tpu.memory_space<vmem>>) attributes {dimension_semantics = [], scalar_prefetch = 0 : i64, scratch_operands = 0 : i64, tpu.core_type = #tpu.core_type<tc>} {
    %c0 = arith.constant 0 : index
    %c0_0 = arith.constant 0 : index
    %0 = vector.load %arg0[%c0, %c0_0] : memref<16x32xf32, #tpu.memory_space<vmem>>, vector<16x32xf32>
    %c0_1 = arith.constant 0 : index
    %c0_2 = arith.constant 0 : index
    %1 = vector.load %arg1[%c0_1, %c0_2] : memref<16x32xf32, #tpu.memory_space<vmem>>, vector<16x32xf32>
    %c0_3 = arith.constant 0 : index
    %c0_4 = arith.constant 0 : index
    %2 = vector.load %arg2[%c0_3, %c0_4] : memref<16x16xf32, #tpu.memory_space<vmem>>, vector<16x16xf32>
    %c0_5 = arith.constant 0 : index
    %c0_6 = arith.constant 0 : index
    %3 = vector.load %arg3[%c0_5, %c0_6] : memref<16x16xf32, #tpu.memory_space<vmem>>, vector<16x16xf32>
    %c0_7 = arith.constant 0 : index
    %c0_8 = arith.constant 0 : index
    %c0_9 = arith.constant 0 : index
    %4 = vector.load %arg4[%c0_7, %c0_8, %c0_9] : memref<2x32x32xf32, #tpu.memory_space<vmem>>, vector<1x32x32xf32>
    %5 = vector.shape_cast %4 : vector<1x32x32xf32> to vector<32x32xf32>
    %cst = arith.constant dense<0.000000e+00> : vector<16x32xf32>
    %6 = tpu.matmul %0, %5, %cst {dimension_numbers = #tpu.dot_dimension_numbers<[1], [0], [0], [1], [0, 0, 1, 1], [], []>} : vector<16x32xf32>, vector<32x32xf32>, vector<16x32xf32> -> vector<16x32xf32>
    %c0_10 = arith.constant 0 : index
    %c0_11 = arith.constant 0 : index
    %c0_12 = arith.constant 0 : index
    %7 = vector.load %arg8[%c0_10, %c0_11, %c0_12] : memref<2x1x32xf32, #tpu.memory_space<vmem>>, vector<1x1x32xf32>
    %8 = vector.shape_cast %7 : vector<1x1x32xf32> to vector<1x32xf32>
    %9 = vector.broadcast %8 : vector<1x32xf32> to vector<16x32xf32>
    %10 = arith.addf %6, %9 : vector<16x32xf32>
    %c0_13 = arith.constant 0 : index
    %c0_14 = arith.constant 0 : index
    %c0_15 = arith.constant 0 : index
    %11 = vector.load %arg5[%c0_13, %c0_14, %c0_15] : memref<2x32x32xf32, #tpu.memory_space<vmem>>, vector<1x32x32xf32>
    %12 = vector.shape_cast %11 : vector<1x32x32xf32> to vector<32x32xf32>
    %cst_16 = arith.constant dense<0.000000e+00> : vector<16x32xf32>
    %13 = tpu.matmul %0, %12, %cst_16 {dimension_numbers = #tpu.dot_dimension_numbers<[1], [0], [0], [1], [0, 0, 1, 1], [], []>} : vector<16x32xf32>, vector<32x32xf32>, vector<16x32xf32> -> vector<16x32xf32>
    %c0_17 = arith.constant 0 : index
    %c0_18 = arith.constant 0 : index
    %c0_19 = arith.constant 0 : index
    %14 = vector.load %arg9[%c0_17, %c0_18, %c0_19] : memref<2x1x32xf32, #tpu.memory_space<vmem>>, vector<1x1x32xf32>
    %15 = vector.shape_cast %14 : vector<1x1x32xf32> to vector<1x32xf32>
    %16 = vector.broadcast %15 : vector<1x32xf32> to vector<16x32xf32>
    %17 = arith.addf %13, %16 : vector<16x32xf32>
    %c0_20 = arith.constant 0 : index
    %c0_21 = arith.constant 0 : index
    %c0_22 = arith.constant 0 : index
    %18 = vector.load %arg6[%c0_20, %c0_21, %c0_22] : memref<2x32x32xf32, #tpu.memory_space<vmem>>, vector<1x32x32xf32>
    %19 = vector.shape_cast %18 : vector<1x32x32xf32> to vector<32x32xf32>
    %cst_23 = arith.constant dense<0.000000e+00> : vector<16x32xf32>
    %20 = tpu.matmul %0, %19, %cst_23 {dimension_numbers = #tpu.dot_dimension_numbers<[1], [0], [0], [1], [0, 0, 1, 1], [], []>} : vector<16x32xf32>, vector<32x32xf32>, vector<16x32xf32> -> vector<16x32xf32>
    %c0_24 = arith.constant 0 : index
    %c0_25 = arith.constant 0 : index
    %c0_26 = arith.constant 0 : index
    %21 = vector.load %arg10[%c0_24, %c0_25, %c0_26] : memref<2x1x32xf32, #tpu.memory_space<vmem>>, vector<1x1x32xf32>
    %22 = vector.shape_cast %21 : vector<1x1x32xf32> to vector<1x32xf32>
    %23 = vector.broadcast %22 : vector<1x32xf32> to vector<16x32xf32>
    %24 = arith.addf %20, %23 : vector<16x32xf32>
    %c0_27 = arith.constant 0 : index
    %c0_28 = arith.constant 0 : index
    %c0_29 = arith.constant 0 : index
    %25 = vector.load %arg7[%c0_27, %c0_28, %c0_29] : memref<2x32x32xf32, #tpu.memory_space<vmem>>, vector<1x32x32xf32>
    %26 = vector.shape_cast %25 : vector<1x32x32xf32> to vector<32x32xf32>
    %27 = vector.extract_strided_slice %10 {offsets = [0, 0], sizes = [16, 8], strides = [1, 1]} : vector<16x32xf32> to vector<16x8xf32>
    %28 = vector.extract_strided_slice %17 {offsets = [0, 0], sizes = [16, 8], strides = [1, 1]} : vector<16x32xf32> to vector<16x8xf32>
    %cst_30 = arith.constant dense<0.000000e+00> : vector<16x16xf32>
    %29 = tpu.matmul %27, %28, %cst_30 {dimension_numbers = #tpu.dot_dimension_numbers<[1], [1], [0], [0], [0, 0, 1, 0], [], []>} : vector<16x8xf32>, vector<16x8xf32>, vector<16x16xf32> -> vector<16x16xf32>
    %30 = arith.addf %29, %2 : vector<16x16xf32>
    %cst_31 = arith.constant dense<0xFF800000> : vector<16xf32>
    %31 = vector.multi_reduction <maximumf>, %30, %cst_31 [1] : vector<16x16xf32> to vector<16xf32>
    %32 = vector.shape_cast %31 : vector<16xf32> to vector<16x1xf32>
    %33 = vector.broadcast %32 : vector<16x1xf32> to vector<16x16xf32>
    %34 = arith.subf %30, %33 : vector<16x16xf32>
    %35 = math.exp %34 : vector<16x16xf32>
    %cst_32 = arith.constant dense<0.000000e+00> : vector<16xf32>
    %36 = vector.multi_reduction <add>, %35, %cst_32 [1] : vector<16x16xf32> to vector<16xf32>
    %37 = vector.shape_cast %36 : vector<16xf32> to vector<16x1xf32>
    %38 = tpu.reciprocal %37 {approx = true} : vector<16x1xf32> -> vector<16x1xf32>
    %39 = vector.broadcast %38 : vector<16x1xf32> to vector<16x16xf32>
    %40 = arith.mulf %35, %39 : vector<16x16xf32>
    %41 = vector.extract_strided_slice %24 {offsets = [0, 0], sizes = [16, 8], strides = [1, 1]} : vector<16x32xf32> to vector<16x8xf32>
    %cst_33 = arith.constant dense<0.000000e+00> : vector<16x8xf32>
    %42 = tpu.matmul %40, %41, %cst_33 {dimension_numbers = #tpu.dot_dimension_numbers<[1], [0], [0], [1], [0, 0, 1, 1], [], []>} : vector<16x16xf32>, vector<16x8xf32>, vector<16x8xf32> -> vector<16x8xf32>
    %43 = vector.extract_strided_slice %26 {offsets = [0, 0], sizes = [8, 32], strides = [1, 1]} : vector<32x32xf32> to vector<8x32xf32>
    %cst_34 = arith.constant dense<0.000000e+00> : vector<16x32xf32>
    %44 = tpu.matmul %42, %43, %cst_34 {dimension_numbers = #tpu.dot_dimension_numbers<[1], [0], [0], [1], [0, 0, 1, 1], [], []>} : vector<16x8xf32>, vector<8x32xf32>, vector<16x32xf32> -> vector<16x32xf32>
    %45 = vector.extract_strided_slice %10 {offsets = [0, 8], sizes = [16, 8], strides = [1, 1]} : vector<16x32xf32> to vector<16x8xf32>
    %46 = vector.extract_strided_slice %17 {offsets = [0, 8], sizes = [16, 8], strides = [1, 1]} : vector<16x32xf32> to vector<16x8xf32>
    %cst_35 = arith.constant dense<0.000000e+00> : vector<16x16xf32>
    %47 = tpu.matmul %45, %46, %cst_35 {dimension_numbers = #tpu.dot_dimension_numbers<[1], [1], [0], [0], [0, 0, 1, 0], [], []>} : vector<16x8xf32>, vector<16x8xf32>, vector<16x16xf32> -> vector<16x16xf32>
    %48 = arith.addf %47, %2 : vector<16x16xf32>
    %cst_36 = arith.constant dense<0xFF800000> : vector<16xf32>
    %49 = vector.multi_reduction <maximumf>, %48, %cst_36 [1] : vector<16x16xf32> to vector<16xf32>
    %50 = vector.shape_cast %49 : vector<16xf32> to vector<16x1xf32>
    %51 = vector.broadcast %50 : vector<16x1xf32> to vector<16x16xf32>
    %52 = arith.subf %48, %51 : vector<16x16xf32>
    %53 = math.exp %52 : vector<16x16xf32>
    %cst_37 = arith.constant dense<0.000000e+00> : vector<16xf32>
    %54 = vector.multi_reduction <add>, %53, %cst_37 [1] : vector<16x16xf32> to vector<16xf32>
    %55 = vector.shape_cast %54 : vector<16xf32> to vector<16x1xf32>
    %56 = tpu.reciprocal %55 {approx = true} : vector<16x1xf32> -> vector<16x1xf32>
    %57 = vector.broadcast %56 : vector<16x1xf32> to vector<16x16xf32>
    %58 = arith.mulf %53, %57 : vector<16x16xf32>
    %59 = vector.extract_strided_slice %24 {offsets = [0, 8], sizes = [16, 8], strides = [1, 1]} : vector<16x32xf32> to vector<16x8xf32>
    %cst_38 = arith.constant dense<0.000000e+00> : vector<16x8xf32>
    %60 = tpu.matmul %58, %59, %cst_38 {dimension_numbers = #tpu.dot_dimension_numbers<[1], [0], [0], [1], [0, 0, 1, 1], [], []>} : vector<16x16xf32>, vector<16x8xf32>, vector<16x8xf32> -> vector<16x8xf32>
    %61 = vector.extract_strided_slice %26 {offsets = [8, 0], sizes = [8, 32], strides = [1, 1]} : vector<32x32xf32> to vector<8x32xf32>
    %cst_39 = arith.constant dense<0.000000e+00> : vector<16x32xf32>
    %62 = tpu.matmul %60, %61, %cst_39 {dimension_numbers = #tpu.dot_dimension_numbers<[1], [0], [0], [1], [0, 0, 1, 1], [], []>} : vector<16x8xf32>, vector<8x32xf32>, vector<16x32xf32> -> vector<16x32xf32>
    %63 = vector.extract_strided_slice %10 {offsets = [0, 16], sizes = [16, 8], strides = [1, 1]} : vector<16x32xf32> to vector<16x8xf32>
    %64 = vector.extract_strided_slice %17 {offsets = [0, 16], sizes = [16, 8], strides = [1, 1]} : vector<16x32xf32> to vector<16x8xf32>
    %cst_40 = arith.constant dense<0.000000e+00> : vector<16x16xf32>
    %65 = tpu.matmul %63, %64, %cst_40 {dimension_numbers = #tpu.dot_dimension_numbers<[1], [1], [0], [0], [0, 0, 1, 0], [], []>} : vector<16x8xf32>, vector<16x8xf32>, vector<16x16xf32> -> vector<16x16xf32>
    %66 = arith.addf %65, %2 : vector<16x16xf32>
    %cst_41 = arith.constant dense<0xFF800000> : vector<16xf32>
    %67 = vector.multi_reduction <maximumf>, %66, %cst_41 [1] : vector<16x16xf32> to vector<16xf32>
    %68 = vector.shape_cast %67 : vector<16xf32> to vector<16x1xf32>
    %69 = vector.broadcast %68 : vector<16x1xf32> to vector<16x16xf32>
    %70 = arith.subf %66, %69 : vector<16x16xf32>
    %71 = math.exp %70 : vector<16x16xf32>
    %cst_42 = arith.constant dense<0.000000e+00> : vector<16xf32>
    %72 = vector.multi_reduction <add>, %71, %cst_42 [1] : vector<16x16xf32> to vector<16xf32>
    %73 = vector.shape_cast %72 : vector<16xf32> to vector<16x1xf32>
    %74 = tpu.reciprocal %73 {approx = true} : vector<16x1xf32> -> vector<16x1xf32>
    %75 = vector.broadcast %74 : vector<16x1xf32> to vector<16x16xf32>
    %76 = arith.mulf %71, %75 : vector<16x16xf32>
    %77 = vector.extract_strided_slice %24 {offsets = [0, 16], sizes = [16, 8], strides = [1, 1]} : vector<16x32xf32> to vector<16x8xf32>
    %cst_43 = arith.constant dense<0.000000e+00> : vector<16x8xf32>
    %78 = tpu.matmul %76, %77, %cst_43 {dimension_numbers = #tpu.dot_dimension_numbers<[1], [0], [0], [1], [0, 0, 1, 1], [], []>} : vector<16x16xf32>, vector<16x8xf32>, vector<16x8xf32> -> vector<16x8xf32>
    %79 = vector.extract_strided_slice %26 {offsets = [16, 0], sizes = [8, 32], strides = [1, 1]} : vector<32x32xf32> to vector<8x32xf32>
    %cst_44 = arith.constant dense<0.000000e+00> : vector<16x32xf32>
    %80 = tpu.matmul %78, %79, %cst_44 {dimension_numbers = #tpu.dot_dimension_numbers<[1], [0], [0], [1], [0, 0, 1, 1], [], []>} : vector<16x8xf32>, vector<8x32xf32>, vector<16x32xf32> -> vector<16x32xf32>
    %81 = vector.extract_strided_slice %10 {offsets = [0, 24], sizes = [16, 8], strides = [1, 1]} : vector<16x32xf32> to vector<16x8xf32>
    %82 = vector.extract_strided_slice %17 {offsets = [0, 24], sizes = [16, 8], strides = [1, 1]} : vector<16x32xf32> to vector<16x8xf32>
    %cst_45 = arith.constant dense<0.000000e+00> : vector<16x16xf32>
    %83 = tpu.matmul %81, %82, %cst_45 {dimension_numbers = #tpu.dot_dimension_numbers<[1], [1], [0], [0], [0, 0, 1, 0], [], []>} : vector<16x8xf32>, vector<16x8xf32>, vector<16x16xf32> -> vector<16x16xf32>
    %84 = arith.addf %83, %2 : vector<16x16xf32>
    %cst_46 = arith.constant dense<0xFF800000> : vector<16xf32>
    %85 = vector.multi_reduction <maximumf>, %84, %cst_46 [1] : vector<16x16xf32> to vector<16xf32>
    %86 = vector.shape_cast %85 : vector<16xf32> to vector<16x1xf32>
    %87 = vector.broadcast %86 : vector<16x1xf32> to vector<16x16xf32>
    %88 = arith.subf %84, %87 : vector<16x16xf32>
    %89 = math.exp %88 : vector<16x16xf32>
    %cst_47 = arith.constant dense<0.000000e+00> : vector<16xf32>
    %90 = vector.multi_reduction <add>, %89, %cst_47 [1] : vector<16x16xf32> to vector<16xf32>
    %91 = vector.shape_cast %90 : vector<16xf32> to vector<16x1xf32>
    %92 = tpu.reciprocal %91 {approx = true} : vector<16x1xf32> -> vector<16x1xf32>
    %93 = vector.broadcast %92 : vector<16x1xf32> to vector<16x16xf32>
    %94 = arith.mulf %89, %93 : vector<16x16xf32>
    %95 = vector.extract_strided_slice %24 {offsets = [0, 24], sizes = [16, 8], strides = [1, 1]} : vector<16x32xf32> to vector<16x8xf32>
    %cst_48 = arith.constant dense<0.000000e+00> : vector<16x8xf32>
    %96 = tpu.matmul %94, %95, %cst_48 {dimension_numbers = #tpu.dot_dimension_numbers<[1], [0], [0], [1], [0, 0, 1, 1], [], []>} : vector<16x16xf32>, vector<16x8xf32>, vector<16x8xf32> -> vector<16x8xf32>
    %97 = vector.extract_strided_slice %26 {offsets = [24, 0], sizes = [8, 32], strides = [1, 1]} : vector<32x32xf32> to vector<8x32xf32>
    %cst_49 = arith.constant dense<0.000000e+00> : vector<16x32xf32>
    %98 = tpu.matmul %96, %97, %cst_49 {dimension_numbers = #tpu.dot_dimension_numbers<[1], [0], [0], [1], [0, 0, 1, 1], [], []>} : vector<16x8xf32>, vector<8x32xf32>, vector<16x32xf32> -> vector<16x32xf32>
    %99 = arith.addf %44, %62 : vector<16x32xf32>
    %100 = arith.addf %80, %98 : vector<16x32xf32>
    %101 = arith.addf %99, %100 : vector<16x32xf32>
    %c0_50 = arith.constant 0 : index
    %c0_51 = arith.constant 0 : index
    %c0_52 = arith.constant 0 : index
    %102 = vector.load %arg11[%c0_50, %c0_51, %c0_52] : memref<2x1x32xf32, #tpu.memory_space<vmem>>, vector<1x1x32xf32>
    %103 = vector.shape_cast %102 : vector<1x1x32xf32> to vector<1x32xf32>
    %104 = vector.broadcast %103 : vector<1x32xf32> to vector<16x32xf32>
    %105 = arith.addf %101, %104 : vector<16x32xf32>
    %106 = arith.addf %105, %0 : vector<16x32xf32>
    %cst_53 = arith.constant dense<0.000000e+00> : vector<16xf32>
    %107 = vector.multi_reduction <add>, %106, %cst_53 [1] : vector<16x32xf32> to vector<16xf32>
    %108 = vector.shape_cast %107 : vector<16xf32> to vector<16x1xf32>
    %cst_54 = arith.constant 3.200000e+01 : f32
    %109 = vector.broadcast %cst_54 : f32 to vector<16x1xf32>
    %110 = arith.divf %108, %109 : vector<16x1xf32>
    %111 = vector.broadcast %110 : vector<16x1xf32> to vector<16x32xf32>
    %112 = arith.subf %106, %111 : vector<16x32xf32>
    %113 = arith.mulf %112, %112 : vector<16x32xf32>
    %cst_55 = arith.constant dense<0.000000e+00> : vector<16xf32>
    %114 = vector.multi_reduction <add>, %113, %cst_55 [1] : vector<16x32xf32> to vector<16xf32>
    %115 = vector.shape_cast %114 : vector<16xf32> to vector<16x1xf32>
    %cst_56 = arith.constant 3.200000e+01 : f32
    %116 = vector.broadcast %cst_56 : f32 to vector<16x1xf32>
    %117 = arith.divf %115, %116 : vector<16x1xf32>
    %118 = vector.broadcast %110 : vector<16x1xf32> to vector<16x32xf32>
    %119 = arith.subf %106, %118 : vector<16x32xf32>
    %cst_57 = arith.constant 9.99999974E-6 : f32
    %120 = vector.broadcast %cst_57 : f32 to vector<16x1xf32>
    %121 = arith.addf %117, %120 : vector<16x1xf32>
    %122 = math.rsqrt %121 : vector<16x1xf32>
    %123 = vector.broadcast %122 : vector<16x1xf32> to vector<16x32xf32>
    %124 = arith.mulf %119, %123 : vector<16x32xf32>
    %c0_58 = arith.constant 0 : index
    %c0_59 = arith.constant 0 : index
    %c0_60 = arith.constant 0 : index
    %125 = vector.load %arg12[%c0_58, %c0_59, %c0_60] : memref<2x1x32xf32, #tpu.memory_space<vmem>>, vector<1x1x32xf32>
    %126 = vector.shape_cast %125 : vector<1x1x32xf32> to vector<1x32xf32>
    %127 = vector.broadcast %126 : vector<1x32xf32> to vector<16x32xf32>
    %128 = arith.mulf %124, %127 : vector<16x32xf32>
    %c0_61 = arith.constant 0 : index
    %c0_62 = arith.constant 0 : index
    %c0_63 = arith.constant 0 : index
    %129 = vector.load %arg13[%c0_61, %c0_62, %c0_63] : memref<2x1x32xf32, #tpu.memory_space<vmem>>, vector<1x1x32xf32>
    %130 = vector.shape_cast %129 : vector<1x1x32xf32> to vector<1x32xf32>
    %131 = vector.broadcast %130 : vector<1x32xf32> to vector<16x32xf32>
    %132 = arith.addf %128, %131 : vector<16x32xf32>
    %c0_64 = arith.constant 0 : index
    %c0_65 = arith.constant 0 : index
    %c0_66 = arith.constant 0 : index
    %133 = vector.load %arg4[%c0_64, %c0_65, %c0_66] : memref<2x32x32xf32, #tpu.memory_space<vmem>>, vector<1x32x32xf32>
    %134 = vector.shape_cast %133 : vector<1x32x32xf32> to vector<32x32xf32>
    %cst_67 = arith.constant dense<0.000000e+00> : vector<16x32xf32>
    %135 = tpu.matmul %132, %134, %cst_67 {dimension_numbers = #tpu.dot_dimension_numbers<[1], [0], [0], [1], [0, 0, 1, 1], [], []>} : vector<16x32xf32>, vector<32x32xf32>, vector<16x32xf32> -> vector<16x32xf32>
    %c0_68 = arith.constant 0 : index
    %c0_69 = arith.constant 0 : index
    %c0_70 = arith.constant 0 : index
    %136 = vector.load %arg8[%c0_68, %c0_69, %c0_70] : memref<2x1x32xf32, #tpu.memory_space<vmem>>, vector<1x1x32xf32>
    %137 = vector.shape_cast %136 : vector<1x1x32xf32> to vector<1x32xf32>
    %138 = vector.broadcast %137 : vector<1x32xf32> to vector<16x32xf32>
    %139 = arith.addf %135, %138 : vector<16x32xf32>
    %c0_71 = arith.constant 0 : index
    %c0_72 = arith.constant 0 : index
    %c0_73 = arith.constant 0 : index
    %140 = vector.load %arg5[%c0_71, %c0_72, %c0_73] : memref<2x32x32xf32, #tpu.memory_space<vmem>>, vector<1x32x32xf32>
    %141 = vector.shape_cast %140 : vector<1x32x32xf32> to vector<32x32xf32>
    %cst_74 = arith.constant dense<0.000000e+00> : vector<16x32xf32>
    %142 = tpu.matmul %1, %141, %cst_74 {dimension_numbers = #tpu.dot_dimension_numbers<[1], [0], [0], [1], [0, 0, 1, 1], [], []>} : vector<16x32xf32>, vector<32x32xf32>, vector<16x32xf32> -> vector<16x32xf32>
    %c0_75 = arith.constant 0 : index
    %c0_76 = arith.constant 0 : index
    %c0_77 = arith.constant 0 : index
    %143 = vector.load %arg9[%c0_75, %c0_76, %c0_77] : memref<2x1x32xf32, #tpu.memory_space<vmem>>, vector<1x1x32xf32>
    %144 = vector.shape_cast %143 : vector<1x1x32xf32> to vector<1x32xf32>
    %145 = vector.broadcast %144 : vector<1x32xf32> to vector<16x32xf32>
    %146 = arith.addf %142, %145 : vector<16x32xf32>
    %c0_78 = arith.constant 0 : index
    %c0_79 = arith.constant 0 : index
    %c0_80 = arith.constant 0 : index
    %147 = vector.load %arg6[%c0_78, %c0_79, %c0_80] : memref<2x32x32xf32, #tpu.memory_space<vmem>>, vector<1x32x32xf32>
    %148 = vector.shape_cast %147 : vector<1x32x32xf32> to vector<32x32xf32>
    %cst_81 = arith.constant dense<0.000000e+00> : vector<16x32xf32>
    %149 = tpu.matmul %1, %148, %cst_81 {dimension_numbers = #tpu.dot_dimension_numbers<[1], [0], [0], [1], [0, 0, 1, 1], [], []>} : vector<16x32xf32>, vector<32x32xf32>, vector<16x32xf32> -> vector<16x32xf32>
    %c0_82 = arith.constant 0 : index
    %c0_83 = arith.constant 0 : index
    %c0_84 = arith.constant 0 : index
    %150 = vector.load %arg10[%c0_82, %c0_83, %c0_84] : memref<2x1x32xf32, #tpu.memory_space<vmem>>, vector<1x1x32xf32>
    %151 = vector.shape_cast %150 : vector<1x1x32xf32> to vector<1x32xf32>
    %152 = vector.broadcast %151 : vector<1x32xf32> to vector<16x32xf32>
    %153 = arith.addf %149, %152 : vector<16x32xf32>
    %c0_85 = arith.constant 0 : index
    %c0_86 = arith.constant 0 : index
    %c0_87 = arith.constant 0 : index
    %154 = vector.load %arg7[%c0_85, %c0_86, %c0_87] : memref<2x32x32xf32, #tpu.memory_space<vmem>>, vector<1x32x32xf32>
    %155 = vector.shape_cast %154 : vector<1x32x32xf32> to vector<32x32xf32>
    %156 = vector.extract_strided_slice %139 {offsets = [0, 0], sizes = [16, 8], strides = [1, 1]} : vector<16x32xf32> to vector<16x8xf32>
    %157 = vector.extract_strided_slice %146 {offsets = [0, 0], sizes = [16, 8], strides = [1, 1]} : vector<16x32xf32> to vector<16x8xf32>
    %cst_88 = arith.constant dense<0.000000e+00> : vector<16x16xf32>
    %158 = tpu.matmul %156, %157, %cst_88 {dimension_numbers = #tpu.dot_dimension_numbers<[1], [1], [0], [0], [0, 0, 1, 0], [], []>} : vector<16x8xf32>, vector<16x8xf32>, vector<16x16xf32> -> vector<16x16xf32>
    %159 = arith.addf %158, %3 : vector<16x16xf32>
    %cst_89 = arith.constant dense<0xFF800000> : vector<16xf32>
    %160 = vector.multi_reduction <maximumf>, %159, %cst_89 [1] : vector<16x16xf32> to vector<16xf32>
    %161 = vector.shape_cast %160 : vector<16xf32> to vector<16x1xf32>
    %162 = vector.broadcast %161 : vector<16x1xf32> to vector<16x16xf32>
    %163 = arith.subf %159, %162 : vector<16x16xf32>
    %164 = math.exp %163 : vector<16x16xf32>
    %cst_90 = arith.constant dense<0.000000e+00> : vector<16xf32>
    %165 = vector.multi_reduction <add>, %164, %cst_90 [1] : vector<16x16xf32> to vector<16xf32>
    %166 = vector.shape_cast %165 : vector<16xf32> to vector<16x1xf32>
    %167 = tpu.reciprocal %166 {approx = true} : vector<16x1xf32> -> vector<16x1xf32>
    %168 = vector.broadcast %167 : vector<16x1xf32> to vector<16x16xf32>
    %169 = arith.mulf %164, %168 : vector<16x16xf32>
    %170 = vector.extract_strided_slice %153 {offsets = [0, 0], sizes = [16, 8], strides = [1, 1]} : vector<16x32xf32> to vector<16x8xf32>
    %cst_91 = arith.constant dense<0.000000e+00> : vector<16x8xf32>
    %171 = tpu.matmul %169, %170, %cst_91 {dimension_numbers = #tpu.dot_dimension_numbers<[1], [0], [0], [1], [0, 0, 1, 1], [], []>} : vector<16x16xf32>, vector<16x8xf32>, vector<16x8xf32> -> vector<16x8xf32>
    %172 = vector.extract_strided_slice %155 {offsets = [0, 0], sizes = [8, 32], strides = [1, 1]} : vector<32x32xf32> to vector<8x32xf32>
    %cst_92 = arith.constant dense<0.000000e+00> : vector<16x32xf32>
    %173 = tpu.matmul %171, %172, %cst_92 {dimension_numbers = #tpu.dot_dimension_numbers<[1], [0], [0], [1], [0, 0, 1, 1], [], []>} : vector<16x8xf32>, vector<8x32xf32>, vector<16x32xf32> -> vector<16x32xf32>
    %174 = vector.extract_strided_slice %139 {offsets = [0, 8], sizes = [16, 8], strides = [1, 1]} : vector<16x32xf32> to vector<16x8xf32>
    %175 = vector.extract_strided_slice %146 {offsets = [0, 8], sizes = [16, 8], strides = [1, 1]} : vector<16x32xf32> to vector<16x8xf32>
    %cst_93 = arith.constant dense<0.000000e+00> : vector<16x16xf32>
    %176 = tpu.matmul %174, %175, %cst_93 {dimension_numbers = #tpu.dot_dimension_numbers<[1], [1], [0], [0], [0, 0, 1, 0], [], []>} : vector<16x8xf32>, vector<16x8xf32>, vector<16x16xf32> -> vector<16x16xf32>
    %177 = arith.addf %176, %3 : vector<16x16xf32>
    %cst_94 = arith.constant dense<0xFF800000> : vector<16xf32>
    %178 = vector.multi_reduction <maximumf>, %177, %cst_94 [1] : vector<16x16xf32> to vector<16xf32>
    %179 = vector.shape_cast %178 : vector<16xf32> to vector<16x1xf32>
    %180 = vector.broadcast %179 : vector<16x1xf32> to vector<16x16xf32>
    %181 = arith.subf %177, %180 : vector<16x16xf32>
    %182 = math.exp %181 : vector<16x16xf32>
    %cst_95 = arith.constant dense<0.000000e+00> : vector<16xf32>
    %183 = vector.multi_reduction <add>, %182, %cst_95 [1] : vector<16x16xf32> to vector<16xf32>
    %184 = vector.shape_cast %183 : vector<16xf32> to vector<16x1xf32>
    %185 = tpu.reciprocal %184 {approx = true} : vector<16x1xf32> -> vector<16x1xf32>
    %186 = vector.broadcast %185 : vector<16x1xf32> to vector<16x16xf32>
    %187 = arith.mulf %182, %186 : vector<16x16xf32>
    %188 = vector.extract_strided_slice %153 {offsets = [0, 8], sizes = [16, 8], strides = [1, 1]} : vector<16x32xf32> to vector<16x8xf32>
    %cst_96 = arith.constant dense<0.000000e+00> : vector<16x8xf32>
    %189 = tpu.matmul %187, %188, %cst_96 {dimension_numbers = #tpu.dot_dimension_numbers<[1], [0], [0], [1], [0, 0, 1, 1], [], []>} : vector<16x16xf32>, vector<16x8xf32>, vector<16x8xf32> -> vector<16x8xf32>
    %190 = vector.extract_strided_slice %155 {offsets = [8, 0], sizes = [8, 32], strides = [1, 1]} : vector<32x32xf32> to vector<8x32xf32>
    %cst_97 = arith.constant dense<0.000000e+00> : vector<16x32xf32>
    %191 = tpu.matmul %189, %190, %cst_97 {dimension_numbers = #tpu.dot_dimension_numbers<[1], [0], [0], [1], [0, 0, 1, 1], [], []>} : vector<16x8xf32>, vector<8x32xf32>, vector<16x32xf32> -> vector<16x32xf32>
    %192 = vector.extract_strided_slice %139 {offsets = [0, 16], sizes = [16, 8], strides = [1, 1]} : vector<16x32xf32> to vector<16x8xf32>
    %193 = vector.extract_strided_slice %146 {offsets = [0, 16], sizes = [16, 8], strides = [1, 1]} : vector<16x32xf32> to vector<16x8xf32>
    %cst_98 = arith.constant dense<0.000000e+00> : vector<16x16xf32>
    %194 = tpu.matmul %192, %193, %cst_98 {dimension_numbers = #tpu.dot_dimension_numbers<[1], [1], [0], [0], [0, 0, 1, 0], [], []>} : vector<16x8xf32>, vector<16x8xf32>, vector<16x16xf32> -> vector<16x16xf32>
    %195 = arith.addf %194, %3 : vector<16x16xf32>
    %cst_99 = arith.constant dense<0xFF800000> : vector<16xf32>
    %196 = vector.multi_reduction <maximumf>, %195, %cst_99 [1] : vector<16x16xf32> to vector<16xf32>
    %197 = vector.shape_cast %196 : vector<16xf32> to vector<16x1xf32>
    %198 = vector.broadcast %197 : vector<16x1xf32> to vector<16x16xf32>
    %199 = arith.subf %195, %198 : vector<16x16xf32>
    %200 = math.exp %199 : vector<16x16xf32>
    %cst_100 = arith.constant dense<0.000000e+00> : vector<16xf32>
    %201 = vector.multi_reduction <add>, %200, %cst_100 [1] : vector<16x16xf32> to vector<16xf32>
    %202 = vector.shape_cast %201 : vector<16xf32> to vector<16x1xf32>
    %203 = tpu.reciprocal %202 {approx = true} : vector<16x1xf32> -> vector<16x1xf32>
    %204 = vector.broadcast %203 : vector<16x1xf32> to vector<16x16xf32>
    %205 = arith.mulf %200, %204 : vector<16x16xf32>
    %206 = vector.extract_strided_slice %153 {offsets = [0, 16], sizes = [16, 8], strides = [1, 1]} : vector<16x32xf32> to vector<16x8xf32>
    %cst_101 = arith.constant dense<0.000000e+00> : vector<16x8xf32>
    %207 = tpu.matmul %205, %206, %cst_101 {dimension_numbers = #tpu.dot_dimension_numbers<[1], [0], [0], [1], [0, 0, 1, 1], [], []>} : vector<16x16xf32>, vector<16x8xf32>, vector<16x8xf32> -> vector<16x8xf32>
    %208 = vector.extract_strided_slice %155 {offsets = [16, 0], sizes = [8, 32], strides = [1, 1]} : vector<32x32xf32> to vector<8x32xf32>
    %cst_102 = arith.constant dense<0.000000e+00> : vector<16x32xf32>
    %209 = tpu.matmul %207, %208, %cst_102 {dimension_numbers = #tpu.dot_dimension_numbers<[1], [0], [0], [1], [0, 0, 1, 1], [], []>} : vector<16x8xf32>, vector<8x32xf32>, vector<16x32xf32> -> vector<16x32xf32>
    %210 = vector.extract_strided_slice %139 {offsets = [0, 24], sizes = [16, 8], strides = [1, 1]} : vector<16x32xf32> to vector<16x8xf32>
    %211 = vector.extract_strided_slice %146 {offsets = [0, 24], sizes = [16, 8], strides = [1, 1]} : vector<16x32xf32> to vector<16x8xf32>
    %cst_103 = arith.constant dense<0.000000e+00> : vector<16x16xf32>
    %212 = tpu.matmul %210, %211, %cst_103 {dimension_numbers = #tpu.dot_dimension_numbers<[1], [1], [0], [0], [0, 0, 1, 0], [], []>} : vector<16x8xf32>, vector<16x8xf32>, vector<16x16xf32> -> vector<16x16xf32>
    %213 = arith.addf %212, %3 : vector<16x16xf32>
    %cst_104 = arith.constant dense<0xFF800000> : vector<16xf32>
    %214 = vector.multi_reduction <maximumf>, %213, %cst_104 [1] : vector<16x16xf32> to vector<16xf32>
    %215 = vector.shape_cast %214 : vector<16xf32> to vector<16x1xf32>
    %216 = vector.broadcast %215 : vector<16x1xf32> to vector<16x16xf32>
    %217 = arith.subf %213, %216 : vector<16x16xf32>
    %218 = math.exp %217 : vector<16x16xf32>
    %cst_105 = arith.constant dense<0.000000e+00> : vector<16xf32>
    %219 = vector.multi_reduction <add>, %218, %cst_105 [1] : vector<16x16xf32> to vector<16xf32>
    %220 = vector.shape_cast %219 : vector<16xf32> to vector<16x1xf32>
    %221 = tpu.reciprocal %220 {approx = true} : vector<16x1xf32> -> vector<16x1xf32>
    %222 = vector.broadcast %221 : vector<16x1xf32> to vector<16x16xf32>
    %223 = arith.mulf %218, %222 : vector<16x16xf32>
    %224 = vector.extract_strided_slice %153 {offsets = [0, 24], sizes = [16, 8], strides = [1, 1]} : vector<16x32xf32> to vector<16x8xf32>
    %cst_106 = arith.constant dense<0.000000e+00> : vector<16x8xf32>
    %225 = tpu.matmul %223, %224, %cst_106 {dimension_numbers = #tpu.dot_dimension_numbers<[1], [0], [0], [1], [0, 0, 1, 1], [], []>} : vector<16x16xf32>, vector<16x8xf32>, vector<16x8xf32> -> vector<16x8xf32>
    %226 = vector.extract_strided_slice %155 {offsets = [24, 0], sizes = [8, 32], strides = [1, 1]} : vector<32x32xf32> to vector<8x32xf32>
    %cst_107 = arith.constant dense<0.000000e+00> : vector<16x32xf32>
    %227 = tpu.matmul %225, %226, %cst_107 {dimension_numbers = #tpu.dot_dimension_numbers<[1], [0], [0], [1], [0, 0, 1, 1], [], []>} : vector<16x8xf32>, vector<8x32xf32>, vector<16x32xf32> -> vector<16x32xf32>
    %228 = arith.addf %173, %191 : vector<16x32xf32>
    %229 = arith.addf %209, %227 : vector<16x32xf32>
    %230 = arith.addf %228, %229 : vector<16x32xf32>
    %c0_108 = arith.constant 0 : index
    %c0_109 = arith.constant 0 : index
    %c0_110 = arith.constant 0 : index
    %231 = vector.load %arg11[%c0_108, %c0_109, %c0_110] : memref<2x1x32xf32, #tpu.memory_space<vmem>>, vector<1x1x32xf32>
    %232 = vector.shape_cast %231 : vector<1x1x32xf32> to vector<1x32xf32>
    %233 = vector.broadcast %232 : vector<1x32xf32> to vector<16x32xf32>
    %234 = arith.addf %230, %233 : vector<16x32xf32>
    %235 = arith.addf %234, %132 : vector<16x32xf32>
    %cst_111 = arith.constant dense<0.000000e+00> : vector<16xf32>
    %236 = vector.multi_reduction <add>, %235, %cst_111 [1] : vector<16x32xf32> to vector<16xf32>
    %237 = vector.shape_cast %236 : vector<16xf32> to vector<16x1xf32>
    %cst_112 = arith.constant 3.200000e+01 : f32
    %238 = vector.broadcast %cst_112 : f32 to vector<16x1xf32>
    %239 = arith.divf %237, %238 : vector<16x1xf32>
    %240 = vector.broadcast %239 : vector<16x1xf32> to vector<16x32xf32>
    %241 = arith.subf %235, %240 : vector<16x32xf32>
    %242 = arith.mulf %241, %241 : vector<16x32xf32>
    %cst_113 = arith.constant dense<0.000000e+00> : vector<16xf32>
    %243 = vector.multi_reduction <add>, %242, %cst_113 [1] : vector<16x32xf32> to vector<16xf32>
    %244 = vector.shape_cast %243 : vector<16xf32> to vector<16x1xf32>
    %cst_114 = arith.constant 3.200000e+01 : f32
    %245 = vector.broadcast %cst_114 : f32 to vector<16x1xf32>
    %246 = arith.divf %244, %245 : vector<16x1xf32>
    %247 = vector.broadcast %239 : vector<16x1xf32> to vector<16x32xf32>
    %248 = arith.subf %235, %247 : vector<16x32xf32>
    %cst_115 = arith.constant 9.99999974E-6 : f32
    %249 = vector.broadcast %cst_115 : f32 to vector<16x1xf32>
    %250 = arith.addf %246, %249 : vector<16x1xf32>
    %251 = math.rsqrt %250 : vector<16x1xf32>
    %252 = vector.broadcast %251 : vector<16x1xf32> to vector<16x32xf32>
    %253 = arith.mulf %248, %252 : vector<16x32xf32>
    %c0_116 = arith.constant 0 : index
    %c0_117 = arith.constant 0 : index
    %c0_118 = arith.constant 0 : index
    %254 = vector.load %arg12[%c0_116, %c0_117, %c0_118] : memref<2x1x32xf32, #tpu.memory_space<vmem>>, vector<1x1x32xf32>
    %255 = vector.shape_cast %254 : vector<1x1x32xf32> to vector<1x32xf32>
    %256 = vector.broadcast %255 : vector<1x32xf32> to vector<16x32xf32>
    %257 = arith.mulf %253, %256 : vector<16x32xf32>
    %c0_119 = arith.constant 0 : index
    %c0_120 = arith.constant 0 : index
    %c0_121 = arith.constant 0 : index
    %258 = vector.load %arg13[%c0_119, %c0_120, %c0_121] : memref<2x1x32xf32, #tpu.memory_space<vmem>>, vector<1x1x32xf32>
    %259 = vector.shape_cast %258 : vector<1x1x32xf32> to vector<1x32xf32>
    %260 = vector.broadcast %259 : vector<1x32xf32> to vector<16x32xf32>
    %261 = arith.addf %257, %260 : vector<16x32xf32>
    %c0_122 = arith.constant 0 : index
    %c0_123 = arith.constant 0 : index
    %c0_124 = arith.constant 0 : index
    %262 = vector.load %arg14[%c0_122, %c0_123, %c0_124] : memref<2x32x128xf32, #tpu.memory_space<vmem>>, vector<1x32x128xf32>
    %263 = vector.shape_cast %262 : vector<1x32x128xf32> to vector<32x128xf32>
    %cst_125 = arith.constant dense<0.000000e+00> : vector<16x128xf32>
    %264 = tpu.matmul %261, %263, %cst_125 {dimension_numbers = #tpu.dot_dimension_numbers<[1], [0], [0], [1], [0, 0, 1, 1], [], []>} : vector<16x32xf32>, vector<32x128xf32>, vector<16x128xf32> -> vector<16x128xf32>
    %c0_126 = arith.constant 0 : index
    %c0_127 = arith.constant 0 : index
    %c0_128 = arith.constant 0 : index
    %265 = vector.load %arg15[%c0_126, %c0_127, %c0_128] : memref<2x1x128xf32, #tpu.memory_space<vmem>>, vector<1x1x128xf32>
    %266 = vector.shape_cast %265 : vector<1x1x128xf32> to vector<1x128xf32>
    %267 = vector.broadcast %266 : vector<1x128xf32> to vector<16x128xf32>
    %268 = arith.addf %264, %267 : vector<16x128xf32>
    %cst_129 = arith.constant 0.000000e+00 : f32
    %269 = vector.broadcast %cst_129 : f32 to vector<16x128xf32>
    %270 = arith.maximumf %268, %269 : vector<16x128xf32>
    %c0_130 = arith.constant 0 : index
    %c0_131 = arith.constant 0 : index
    %c0_132 = arith.constant 0 : index
    %271 = vector.load %arg16[%c0_130, %c0_131, %c0_132] : memref<2x128x32xf32, #tpu.memory_space<vmem>>, vector<1x128x32xf32>
    %272 = vector.shape_cast %271 : vector<1x128x32xf32> to vector<128x32xf32>
    %cst_133 = arith.constant dense<0.000000e+00> : vector<16x32xf32>
    %273 = tpu.matmul %270, %272, %cst_133 {dimension_numbers = #tpu.dot_dimension_numbers<[1], [0], [0], [1], [0, 0, 1, 1], [], []>} : vector<16x128xf32>, vector<128x32xf32>, vector<16x32xf32> -> vector<16x32xf32>
    %c0_134 = arith.constant 0 : index
    %c0_135 = arith.constant 0 : index
    %c0_136 = arith.constant 0 : index
    %274 = vector.load %arg17[%c0_134, %c0_135, %c0_136] : memref<2x1x32xf32, #tpu.memory_space<vmem>>, vector<1x1x32xf32>
    %275 = vector.shape_cast %274 : vector<1x1x32xf32> to vector<1x32xf32>
    %276 = vector.broadcast %275 : vector<1x32xf32> to vector<16x32xf32>
    %277 = arith.addf %273, %276 : vector<16x32xf32>
    %278 = arith.addf %277, %261 : vector<16x32xf32>
    %cst_137 = arith.constant dense<0.000000e+00> : vector<16xf32>
    %279 = vector.multi_reduction <add>, %278, %cst_137 [1] : vector<16x32xf32> to vector<16xf32>
    %280 = vector.shape_cast %279 : vector<16xf32> to vector<16x1xf32>
    %cst_138 = arith.constant 3.200000e+01 : f32
    %281 = vector.broadcast %cst_138 : f32 to vector<16x1xf32>
    %282 = arith.divf %280, %281 : vector<16x1xf32>
    %283 = vector.broadcast %282 : vector<16x1xf32> to vector<16x32xf32>
    %284 = arith.subf %278, %283 : vector<16x32xf32>
    %285 = arith.mulf %284, %284 : vector<16x32xf32>
    %cst_139 = arith.constant dense<0.000000e+00> : vector<16xf32>
    %286 = vector.multi_reduction <add>, %285, %cst_139 [1] : vector<16x32xf32> to vector<16xf32>
    %287 = vector.shape_cast %286 : vector<16xf32> to vector<16x1xf32>
    %cst_140 = arith.constant 3.200000e+01 : f32
    %288 = vector.broadcast %cst_140 : f32 to vector<16x1xf32>
    %289 = arith.divf %287, %288 : vector<16x1xf32>
    %290 = vector.broadcast %282 : vector<16x1xf32> to vector<16x32xf32>
    %291 = arith.subf %278, %290 : vector<16x32xf32>
    %cst_141 = arith.constant 9.99999974E-6 : f32
    %292 = vector.broadcast %cst_141 : f32 to vector<16x1xf32>
    %293 = arith.addf %289, %292 : vector<16x1xf32>
    %294 = math.rsqrt %293 : vector<16x1xf32>
    %295 = vector.broadcast %294 : vector<16x1xf32> to vector<16x32xf32>
    %296 = arith.mulf %291, %295 : vector<16x32xf32>
    %c0_142 = arith.constant 0 : index
    %c0_143 = arith.constant 0 : index
    %c0_144 = arith.constant 0 : index
    %297 = vector.load %arg12[%c0_142, %c0_143, %c0_144] : memref<2x1x32xf32, #tpu.memory_space<vmem>>, vector<1x1x32xf32>
    %298 = vector.shape_cast %297 : vector<1x1x32xf32> to vector<1x32xf32>
    %299 = vector.broadcast %298 : vector<1x32xf32> to vector<16x32xf32>
    %300 = arith.mulf %296, %299 : vector<16x32xf32>
    %c0_145 = arith.constant 0 : index
    %c0_146 = arith.constant 0 : index
    %c0_147 = arith.constant 0 : index
    %301 = vector.load %arg13[%c0_145, %c0_146, %c0_147] : memref<2x1x32xf32, #tpu.memory_space<vmem>>, vector<1x1x32xf32>
    %302 = vector.shape_cast %301 : vector<1x1x32xf32> to vector<1x32xf32>
    %303 = vector.broadcast %302 : vector<1x32xf32> to vector<16x32xf32>
    %304 = arith.addf %300, %303 : vector<16x32xf32>
    %c1 = arith.constant 1 : index
    %c0_148 = arith.constant 0 : index
    %c0_149 = arith.constant 0 : index
    %305 = vector.load %arg4[%c1, %c0_148, %c0_149] : memref<2x32x32xf32, #tpu.memory_space<vmem>>, vector<1x32x32xf32>
    %306 = vector.shape_cast %305 : vector<1x32x32xf32> to vector<32x32xf32>
    %cst_150 = arith.constant dense<0.000000e+00> : vector<16x32xf32>
    %307 = tpu.matmul %304, %306, %cst_150 {dimension_numbers = #tpu.dot_dimension_numbers<[1], [0], [0], [1], [0, 0, 1, 1], [], []>} : vector<16x32xf32>, vector<32x32xf32>, vector<16x32xf32> -> vector<16x32xf32>
    %c1_151 = arith.constant 1 : index
    %c0_152 = arith.constant 0 : index
    %c0_153 = arith.constant 0 : index
    %308 = vector.load %arg8[%c1_151, %c0_152, %c0_153] : memref<2x1x32xf32, #tpu.memory_space<vmem>>, vector<1x1x32xf32>
    %309 = vector.shape_cast %308 : vector<1x1x32xf32> to vector<1x32xf32>
    %310 = vector.broadcast %309 : vector<1x32xf32> to vector<16x32xf32>
    %311 = arith.addf %307, %310 : vector<16x32xf32>
    %c1_154 = arith.constant 1 : index
    %c0_155 = arith.constant 0 : index
    %c0_156 = arith.constant 0 : index
    %312 = vector.load %arg5[%c1_154, %c0_155, %c0_156] : memref<2x32x32xf32, #tpu.memory_space<vmem>>, vector<1x32x32xf32>
    %313 = vector.shape_cast %312 : vector<1x32x32xf32> to vector<32x32xf32>
    %cst_157 = arith.constant dense<0.000000e+00> : vector<16x32xf32>
    %314 = tpu.matmul %304, %313, %cst_157 {dimension_numbers = #tpu.dot_dimension_numbers<[1], [0], [0], [1], [0, 0, 1, 1], [], []>} : vector<16x32xf32>, vector<32x32xf32>, vector<16x32xf32> -> vector<16x32xf32>
    %c1_158 = arith.constant 1 : index
    %c0_159 = arith.constant 0 : index
    %c0_160 = arith.constant 0 : index
    %315 = vector.load %arg9[%c1_158, %c0_159, %c0_160] : memref<2x1x32xf32, #tpu.memory_space<vmem>>, vector<1x1x32xf32>
    %316 = vector.shape_cast %315 : vector<1x1x32xf32> to vector<1x32xf32>
    %317 = vector.broadcast %316 : vector<1x32xf32> to vector<16x32xf32>
    %318 = arith.addf %314, %317 : vector<16x32xf32>
    %c1_161 = arith.constant 1 : index
    %c0_162 = arith.constant 0 : index
    %c0_163 = arith.constant 0 : index
    %319 = vector.load %arg6[%c1_161, %c0_162, %c0_163] : memref<2x32x32xf32, #tpu.memory_space<vmem>>, vector<1x32x32xf32>
    %320 = vector.shape_cast %319 : vector<1x32x32xf32> to vector<32x32xf32>
    %cst_164 = arith.constant dense<0.000000e+00> : vector<16x32xf32>
    %321 = tpu.matmul %304, %320, %cst_164 {dimension_numbers = #tpu.dot_dimension_numbers<[1], [0], [0], [1], [0, 0, 1, 1], [], []>} : vector<16x32xf32>, vector<32x32xf32>, vector<16x32xf32> -> vector<16x32xf32>
    %c1_165 = arith.constant 1 : index
    %c0_166 = arith.constant 0 : index
    %c0_167 = arith.constant 0 : index
    %322 = vector.load %arg10[%c1_165, %c0_166, %c0_167] : memref<2x1x32xf32, #tpu.memory_space<vmem>>, vector<1x1x32xf32>
    %323 = vector.shape_cast %322 : vector<1x1x32xf32> to vector<1x32xf32>
    %324 = vector.broadcast %323 : vector<1x32xf32> to vector<16x32xf32>
    %325 = arith.addf %321, %324 : vector<16x32xf32>
    %c1_168 = arith.constant 1 : index
    %c0_169 = arith.constant 0 : index
    %c0_170 = arith.constant 0 : index
    %326 = vector.load %arg7[%c1_168, %c0_169, %c0_170] : memref<2x32x32xf32, #tpu.memory_space<vmem>>, vector<1x32x32xf32>
    %327 = vector.shape_cast %326 : vector<1x32x32xf32> to vector<32x32xf32>
    %328 = vector.extract_strided_slice %311 {offsets = [0, 0], sizes = [16, 8], strides = [1, 1]} : vector<16x32xf32> to vector<16x8xf32>
    %329 = vector.extract_strided_slice %318 {offsets = [0, 0], sizes = [16, 8], strides = [1, 1]} : vector<16x32xf32> to vector<16x8xf32>
    %cst_171 = arith.constant dense<0.000000e+00> : vector<16x16xf32>
    %330 = tpu.matmul %328, %329, %cst_171 {dimension_numbers = #tpu.dot_dimension_numbers<[1], [1], [0], [0], [0, 0, 1, 0], [], []>} : vector<16x8xf32>, vector<16x8xf32>, vector<16x16xf32> -> vector<16x16xf32>
    %331 = arith.addf %330, %2 : vector<16x16xf32>
    %cst_172 = arith.constant dense<0xFF800000> : vector<16xf32>
    %332 = vector.multi_reduction <maximumf>, %331, %cst_172 [1] : vector<16x16xf32> to vector<16xf32>
    %333 = vector.shape_cast %332 : vector<16xf32> to vector<16x1xf32>
    %334 = vector.broadcast %333 : vector<16x1xf32> to vector<16x16xf32>
    %335 = arith.subf %331, %334 : vector<16x16xf32>
    %336 = math.exp %335 : vector<16x16xf32>
    %cst_173 = arith.constant dense<0.000000e+00> : vector<16xf32>
    %337 = vector.multi_reduction <add>, %336, %cst_173 [1] : vector<16x16xf32> to vector<16xf32>
    %338 = vector.shape_cast %337 : vector<16xf32> to vector<16x1xf32>
    %339 = tpu.reciprocal %338 {approx = true} : vector<16x1xf32> -> vector<16x1xf32>
    %340 = vector.broadcast %339 : vector<16x1xf32> to vector<16x16xf32>
    %341 = arith.mulf %336, %340 : vector<16x16xf32>
    %342 = vector.extract_strided_slice %325 {offsets = [0, 0], sizes = [16, 8], strides = [1, 1]} : vector<16x32xf32> to vector<16x8xf32>
    %cst_174 = arith.constant dense<0.000000e+00> : vector<16x8xf32>
    %343 = tpu.matmul %341, %342, %cst_174 {dimension_numbers = #tpu.dot_dimension_numbers<[1], [0], [0], [1], [0, 0, 1, 1], [], []>} : vector<16x16xf32>, vector<16x8xf32>, vector<16x8xf32> -> vector<16x8xf32>
    %344 = vector.extract_strided_slice %327 {offsets = [0, 0], sizes = [8, 32], strides = [1, 1]} : vector<32x32xf32> to vector<8x32xf32>
    %cst_175 = arith.constant dense<0.000000e+00> : vector<16x32xf32>
    %345 = tpu.matmul %343, %344, %cst_175 {dimension_numbers = #tpu.dot_dimension_numbers<[1], [0], [0], [1], [0, 0, 1, 1], [], []>} : vector<16x8xf32>, vector<8x32xf32>, vector<16x32xf32> -> vector<16x32xf32>
    %346 = vector.extract_strided_slice %311 {offsets = [0, 8], sizes = [16, 8], strides = [1, 1]} : vector<16x32xf32> to vector<16x8xf32>
    %347 = vector.extract_strided_slice %318 {offsets = [0, 8], sizes = [16, 8], strides = [1, 1]} : vector<16x32xf32> to vector<16x8xf32>
    %cst_176 = arith.constant dense<0.000000e+00> : vector<16x16xf32>
    %348 = tpu.matmul %346, %347, %cst_176 {dimension_numbers = #tpu.dot_dimension_numbers<[1], [1], [0], [0], [0, 0, 1, 0], [], []>} : vector<16x8xf32>, vector<16x8xf32>, vector<16x16xf32> -> vector<16x16xf32>
    %349 = arith.addf %348, %2 : vector<16x16xf32>
    %cst_177 = arith.constant dense<0xFF800000> : vector<16xf32>
    %350 = vector.multi_reduction <maximumf>, %349, %cst_177 [1] : vector<16x16xf32> to vector<16xf32>
    %351 = vector.shape_cast %350 : vector<16xf32> to vector<16x1xf32>
    %352 = vector.broadcast %351 : vector<16x1xf32> to vector<16x16xf32>
    %353 = arith.subf %349, %352 : vector<16x16xf32>
    %354 = math.exp %353 : vector<16x16xf32>
    %cst_178 = arith.constant dense<0.000000e+00> : vector<16xf32>
    %355 = vector.multi_reduction <add>, %354, %cst_178 [1] : vector<16x16xf32> to vector<16xf32>
    %356 = vector.shape_cast %355 : vector<16xf32> to vector<16x1xf32>
    %357 = tpu.reciprocal %356 {approx = true} : vector<16x1xf32> -> vector<16x1xf32>
    %358 = vector.broadcast %357 : vector<16x1xf32> to vector<16x16xf32>
    %359 = arith.mulf %354, %358 : vector<16x16xf32>
    %360 = vector.extract_strided_slice %325 {offsets = [0, 8], sizes = [16, 8], strides = [1, 1]} : vector<16x32xf32> to vector<16x8xf32>
    %cst_179 = arith.constant dense<0.000000e+00> : vector<16x8xf32>
    %361 = tpu.matmul %359, %360, %cst_179 {dimension_numbers = #tpu.dot_dimension_numbers<[1], [0], [0], [1], [0, 0, 1, 1], [], []>} : vector<16x16xf32>, vector<16x8xf32>, vector<16x8xf32> -> vector<16x8xf32>
    %362 = vector.extract_strided_slice %327 {offsets = [8, 0], sizes = [8, 32], strides = [1, 1]} : vector<32x32xf32> to vector<8x32xf32>
    %cst_180 = arith.constant dense<0.000000e+00> : vector<16x32xf32>
    %363 = tpu.matmul %361, %362, %cst_180 {dimension_numbers = #tpu.dot_dimension_numbers<[1], [0], [0], [1], [0, 0, 1, 1], [], []>} : vector<16x8xf32>, vector<8x32xf32>, vector<16x32xf32> -> vector<16x32xf32>
    %364 = vector.extract_strided_slice %311 {offsets = [0, 16], sizes = [16, 8], strides = [1, 1]} : vector<16x32xf32> to vector<16x8xf32>
    %365 = vector.extract_strided_slice %318 {offsets = [0, 16], sizes = [16, 8], strides = [1, 1]} : vector<16x32xf32> to vector<16x8xf32>
    %cst_181 = arith.constant dense<0.000000e+00> : vector<16x16xf32>
    %366 = tpu.matmul %364, %365, %cst_181 {dimension_numbers = #tpu.dot_dimension_numbers<[1], [1], [0], [0], [0, 0, 1, 0], [], []>} : vector<16x8xf32>, vector<16x8xf32>, vector<16x16xf32> -> vector<16x16xf32>
    %367 = arith.addf %366, %2 : vector<16x16xf32>
    %cst_182 = arith.constant dense<0xFF800000> : vector<16xf32>
    %368 = vector.multi_reduction <maximumf>, %367, %cst_182 [1] : vector<16x16xf32> to vector<16xf32>
    %369 = vector.shape_cast %368 : vector<16xf32> to vector<16x1xf32>
    %370 = vector.broadcast %369 : vector<16x1xf32> to vector<16x16xf32>
    %371 = arith.subf %367, %370 : vector<16x16xf32>
    %372 = math.exp %371 : vector<16x16xf32>
    %cst_183 = arith.constant dense<0.000000e+00> : vector<16xf32>
    %373 = vector.multi_reduction <add>, %372, %cst_183 [1] : vector<16x16xf32> to vector<16xf32>
    %374 = vector.shape_cast %373 : vector<16xf32> to vector<16x1xf32>
    %375 = tpu.reciprocal %374 {approx = true} : vector<16x1xf32> -> vector<16x1xf32>
    %376 = vector.broadcast %375 : vector<16x1xf32> to vector<16x16xf32>
    %377 = arith.mulf %372, %376 : vector<16x16xf32>
    %378 = vector.extract_strided_slice %325 {offsets = [0, 16], sizes = [16, 8], strides = [1, 1]} : vector<16x32xf32> to vector<16x8xf32>
    %cst_184 = arith.constant dense<0.000000e+00> : vector<16x8xf32>
    %379 = tpu.matmul %377, %378, %cst_184 {dimension_numbers = #tpu.dot_dimension_numbers<[1], [0], [0], [1], [0, 0, 1, 1], [], []>} : vector<16x16xf32>, vector<16x8xf32>, vector<16x8xf32> -> vector<16x8xf32>
    %380 = vector.extract_strided_slice %327 {offsets = [16, 0], sizes = [8, 32], strides = [1, 1]} : vector<32x32xf32> to vector<8x32xf32>
    %cst_185 = arith.constant dense<0.000000e+00> : vector<16x32xf32>
    %381 = tpu.matmul %379, %380, %cst_185 {dimension_numbers = #tpu.dot_dimension_numbers<[1], [0], [0], [1], [0, 0, 1, 1], [], []>} : vector<16x8xf32>, vector<8x32xf32>, vector<16x32xf32> -> vector<16x32xf32>
    %382 = vector.extract_strided_slice %311 {offsets = [0, 24], sizes = [16, 8], strides = [1, 1]} : vector<16x32xf32> to vector<16x8xf32>
    %383 = vector.extract_strided_slice %318 {offsets = [0, 24], sizes = [16, 8], strides = [1, 1]} : vector<16x32xf32> to vector<16x8xf32>
    %cst_186 = arith.constant dense<0.000000e+00> : vector<16x16xf32>
    %384 = tpu.matmul %382, %383, %cst_186 {dimension_numbers = #tpu.dot_dimension_numbers<[1], [1], [0], [0], [0, 0, 1, 0], [], []>} : vector<16x8xf32>, vector<16x8xf32>, vector<16x16xf32> -> vector<16x16xf32>
    %385 = arith.addf %384, %2 : vector<16x16xf32>
    %cst_187 = arith.constant dense<0xFF800000> : vector<16xf32>
    %386 = vector.multi_reduction <maximumf>, %385, %cst_187 [1] : vector<16x16xf32> to vector<16xf32>
    %387 = vector.shape_cast %386 : vector<16xf32> to vector<16x1xf32>
    %388 = vector.broadcast %387 : vector<16x1xf32> to vector<16x16xf32>
    %389 = arith.subf %385, %388 : vector<16x16xf32>
    %390 = math.exp %389 : vector<16x16xf32>
    %cst_188 = arith.constant dense<0.000000e+00> : vector<16xf32>
    %391 = vector.multi_reduction <add>, %390, %cst_188 [1] : vector<16x16xf32> to vector<16xf32>
    %392 = vector.shape_cast %391 : vector<16xf32> to vector<16x1xf32>
    %393 = tpu.reciprocal %392 {approx = true} : vector<16x1xf32> -> vector<16x1xf32>
    %394 = vector.broadcast %393 : vector<16x1xf32> to vector<16x16xf32>
    %395 = arith.mulf %390, %394 : vector<16x16xf32>
    %396 = vector.extract_strided_slice %325 {offsets = [0, 24], sizes = [16, 8], strides = [1, 1]} : vector<16x32xf32> to vector<16x8xf32>
    %cst_189 = arith.constant dense<0.000000e+00> : vector<16x8xf32>
    %397 = tpu.matmul %395, %396, %cst_189 {dimension_numbers = #tpu.dot_dimension_numbers<[1], [0], [0], [1], [0, 0, 1, 1], [], []>} : vector<16x16xf32>, vector<16x8xf32>, vector<16x8xf32> -> vector<16x8xf32>
    %398 = vector.extract_strided_slice %327 {offsets = [24, 0], sizes = [8, 32], strides = [1, 1]} : vector<32x32xf32> to vector<8x32xf32>
    %cst_190 = arith.constant dense<0.000000e+00> : vector<16x32xf32>
    %399 = tpu.matmul %397, %398, %cst_190 {dimension_numbers = #tpu.dot_dimension_numbers<[1], [0], [0], [1], [0, 0, 1, 1], [], []>} : vector<16x8xf32>, vector<8x32xf32>, vector<16x32xf32> -> vector<16x32xf32>
    %400 = arith.addf %345, %363 : vector<16x32xf32>
    %401 = arith.addf %381, %399 : vector<16x32xf32>
    %402 = arith.addf %400, %401 : vector<16x32xf32>
    %c1_191 = arith.constant 1 : index
    %c0_192 = arith.constant 0 : index
    %c0_193 = arith.constant 0 : index
    %403 = vector.load %arg11[%c1_191, %c0_192, %c0_193] : memref<2x1x32xf32, #tpu.memory_space<vmem>>, vector<1x1x32xf32>
    %404 = vector.shape_cast %403 : vector<1x1x32xf32> to vector<1x32xf32>
    %405 = vector.broadcast %404 : vector<1x32xf32> to vector<16x32xf32>
    %406 = arith.addf %402, %405 : vector<16x32xf32>
    %407 = arith.addf %406, %304 : vector<16x32xf32>
    %cst_194 = arith.constant dense<0.000000e+00> : vector<16xf32>
    %408 = vector.multi_reduction <add>, %407, %cst_194 [1] : vector<16x32xf32> to vector<16xf32>
    %409 = vector.shape_cast %408 : vector<16xf32> to vector<16x1xf32>
    %cst_195 = arith.constant 3.200000e+01 : f32
    %410 = vector.broadcast %cst_195 : f32 to vector<16x1xf32>
    %411 = arith.divf %409, %410 : vector<16x1xf32>
    %412 = vector.broadcast %411 : vector<16x1xf32> to vector<16x32xf32>
    %413 = arith.subf %407, %412 : vector<16x32xf32>
    %414 = arith.mulf %413, %413 : vector<16x32xf32>
    %cst_196 = arith.constant dense<0.000000e+00> : vector<16xf32>
    %415 = vector.multi_reduction <add>, %414, %cst_196 [1] : vector<16x32xf32> to vector<16xf32>
    %416 = vector.shape_cast %415 : vector<16xf32> to vector<16x1xf32>
    %cst_197 = arith.constant 3.200000e+01 : f32
    %417 = vector.broadcast %cst_197 : f32 to vector<16x1xf32>
    %418 = arith.divf %416, %417 : vector<16x1xf32>
    %419 = vector.broadcast %411 : vector<16x1xf32> to vector<16x32xf32>
    %420 = arith.subf %407, %419 : vector<16x32xf32>
    %cst_198 = arith.constant 9.99999974E-6 : f32
    %421 = vector.broadcast %cst_198 : f32 to vector<16x1xf32>
    %422 = arith.addf %418, %421 : vector<16x1xf32>
    %423 = math.rsqrt %422 : vector<16x1xf32>
    %424 = vector.broadcast %423 : vector<16x1xf32> to vector<16x32xf32>
    %425 = arith.mulf %420, %424 : vector<16x32xf32>
    %c1_199 = arith.constant 1 : index
    %c0_200 = arith.constant 0 : index
    %c0_201 = arith.constant 0 : index
    %426 = vector.load %arg12[%c1_199, %c0_200, %c0_201] : memref<2x1x32xf32, #tpu.memory_space<vmem>>, vector<1x1x32xf32>
    %427 = vector.shape_cast %426 : vector<1x1x32xf32> to vector<1x32xf32>
    %428 = vector.broadcast %427 : vector<1x32xf32> to vector<16x32xf32>
    %429 = arith.mulf %425, %428 : vector<16x32xf32>
    %c1_202 = arith.constant 1 : index
    %c0_203 = arith.constant 0 : index
    %c0_204 = arith.constant 0 : index
    %430 = vector.load %arg13[%c1_202, %c0_203, %c0_204] : memref<2x1x32xf32, #tpu.memory_space<vmem>>, vector<1x1x32xf32>
    %431 = vector.shape_cast %430 : vector<1x1x32xf32> to vector<1x32xf32>
    %432 = vector.broadcast %431 : vector<1x32xf32> to vector<16x32xf32>
    %433 = arith.addf %429, %432 : vector<16x32xf32>
    %c1_205 = arith.constant 1 : index
    %c0_206 = arith.constant 0 : index
    %c0_207 = arith.constant 0 : index
    %434 = vector.load %arg4[%c1_205, %c0_206, %c0_207] : memref<2x32x32xf32, #tpu.memory_space<vmem>>, vector<1x32x32xf32>
    %435 = vector.shape_cast %434 : vector<1x32x32xf32> to vector<32x32xf32>
    %cst_208 = arith.constant dense<0.000000e+00> : vector<16x32xf32>
    %436 = tpu.matmul %433, %435, %cst_208 {dimension_numbers = #tpu.dot_dimension_numbers<[1], [0], [0], [1], [0, 0, 1, 1], [], []>} : vector<16x32xf32>, vector<32x32xf32>, vector<16x32xf32> -> vector<16x32xf32>
    %c1_209 = arith.constant 1 : index
    %c0_210 = arith.constant 0 : index
    %c0_211 = arith.constant 0 : index
    %437 = vector.load %arg8[%c1_209, %c0_210, %c0_211] : memref<2x1x32xf32, #tpu.memory_space<vmem>>, vector<1x1x32xf32>
    %438 = vector.shape_cast %437 : vector<1x1x32xf32> to vector<1x32xf32>
    %439 = vector.broadcast %438 : vector<1x32xf32> to vector<16x32xf32>
    %440 = arith.addf %436, %439 : vector<16x32xf32>
    %c1_212 = arith.constant 1 : index
    %c0_213 = arith.constant 0 : index
    %c0_214 = arith.constant 0 : index
    %441 = vector.load %arg5[%c1_212, %c0_213, %c0_214] : memref<2x32x32xf32, #tpu.memory_space<vmem>>, vector<1x32x32xf32>
    %442 = vector.shape_cast %441 : vector<1x32x32xf32> to vector<32x32xf32>
    %cst_215 = arith.constant dense<0.000000e+00> : vector<16x32xf32>
    %443 = tpu.matmul %1, %442, %cst_215 {dimension_numbers = #tpu.dot_dimension_numbers<[1], [0], [0], [1], [0, 0, 1, 1], [], []>} : vector<16x32xf32>, vector<32x32xf32>, vector<16x32xf32> -> vector<16x32xf32>
    %c1_216 = arith.constant 1 : index
    %c0_217 = arith.constant 0 : index
    %c0_218 = arith.constant 0 : index
    %444 = vector.load %arg9[%c1_216, %c0_217, %c0_218] : memref<2x1x32xf32, #tpu.memory_space<vmem>>, vector<1x1x32xf32>
    %445 = vector.shape_cast %444 : vector<1x1x32xf32> to vector<1x32xf32>
    %446 = vector.broadcast %445 : vector<1x32xf32> to vector<16x32xf32>
    %447 = arith.addf %443, %446 : vector<16x32xf32>
    %c1_219 = arith.constant 1 : index
    %c0_220 = arith.constant 0 : index
    %c0_221 = arith.constant 0 : index
    %448 = vector.load %arg6[%c1_219, %c0_220, %c0_221] : memref<2x32x32xf32, #tpu.memory_space<vmem>>, vector<1x32x32xf32>
    %449 = vector.shape_cast %448 : vector<1x32x32xf32> to vector<32x32xf32>
    %cst_222 = arith.constant dense<0.000000e+00> : vector<16x32xf32>
    %450 = tpu.matmul %1, %449, %cst_222 {dimension_numbers = #tpu.dot_dimension_numbers<[1], [0], [0], [1], [0, 0, 1, 1], [], []>} : vector<16x32xf32>, vector<32x32xf32>, vector<16x32xf32> -> vector<16x32xf32>
    %c1_223 = arith.constant 1 : index
    %c0_224 = arith.constant 0 : index
    %c0_225 = arith.constant 0 : index
    %451 = vector.load %arg10[%c1_223, %c0_224, %c0_225] : memref<2x1x32xf32, #tpu.memory_space<vmem>>, vector<1x1x32xf32>
    %452 = vector.shape_cast %451 : vector<1x1x32xf32> to vector<1x32xf32>
    %453 = vector.broadcast %452 : vector<1x32xf32> to vector<16x32xf32>
    %454 = arith.addf %450, %453 : vector<16x32xf32>
    %c1_226 = arith.constant 1 : index
    %c0_227 = arith.constant 0 : index
    %c0_228 = arith.constant 0 : index
    %455 = vector.load %arg7[%c1_226, %c0_227, %c0_228] : memref<2x32x32xf32, #tpu.memory_space<vmem>>, vector<1x32x32xf32>
    %456 = vector.shape_cast %455 : vector<1x32x32xf32> to vector<32x32xf32>
    %457 = vector.extract_strided_slice %440 {offsets = [0, 0], sizes = [16, 8], strides = [1, 1]} : vector<16x32xf32> to vector<16x8xf32>
    %458 = vector.extract_strided_slice %447 {offsets = [0, 0], sizes = [16, 8], strides = [1, 1]} : vector<16x32xf32> to vector<16x8xf32>
    %cst_229 = arith.constant dense<0.000000e+00> : vector<16x16xf32>
    %459 = tpu.matmul %457, %458, %cst_229 {dimension_numbers = #tpu.dot_dimension_numbers<[1], [1], [0], [0], [0, 0, 1, 0], [], []>} : vector<16x8xf32>, vector<16x8xf32>, vector<16x16xf32> -> vector<16x16xf32>
    %460 = arith.addf %459, %3 : vector<16x16xf32>
    %cst_230 = arith.constant dense<0xFF800000> : vector<16xf32>
    %461 = vector.multi_reduction <maximumf>, %460, %cst_230 [1] : vector<16x16xf32> to vector<16xf32>
    %462 = vector.shape_cast %461 : vector<16xf32> to vector<16x1xf32>
    %463 = vector.broadcast %462 : vector<16x1xf32> to vector<16x16xf32>
    %464 = arith.subf %460, %463 : vector<16x16xf32>
    %465 = math.exp %464 : vector<16x16xf32>
    %cst_231 = arith.constant dense<0.000000e+00> : vector<16xf32>
    %466 = vector.multi_reduction <add>, %465, %cst_231 [1] : vector<16x16xf32> to vector<16xf32>
    %467 = vector.shape_cast %466 : vector<16xf32> to vector<16x1xf32>
    %468 = tpu.reciprocal %467 {approx = true} : vector<16x1xf32> -> vector<16x1xf32>
    %469 = vector.broadcast %468 : vector<16x1xf32> to vector<16x16xf32>
    %470 = arith.mulf %465, %469 : vector<16x16xf32>
    %471 = vector.extract_strided_slice %454 {offsets = [0, 0], sizes = [16, 8], strides = [1, 1]} : vector<16x32xf32> to vector<16x8xf32>
    %cst_232 = arith.constant dense<0.000000e+00> : vector<16x8xf32>
    %472 = tpu.matmul %470, %471, %cst_232 {dimension_numbers = #tpu.dot_dimension_numbers<[1], [0], [0], [1], [0, 0, 1, 1], [], []>} : vector<16x16xf32>, vector<16x8xf32>, vector<16x8xf32> -> vector<16x8xf32>
    %473 = vector.extract_strided_slice %456 {offsets = [0, 0], sizes = [8, 32], strides = [1, 1]} : vector<32x32xf32> to vector<8x32xf32>
    %cst_233 = arith.constant dense<0.000000e+00> : vector<16x32xf32>
    %474 = tpu.matmul %472, %473, %cst_233 {dimension_numbers = #tpu.dot_dimension_numbers<[1], [0], [0], [1], [0, 0, 1, 1], [], []>} : vector<16x8xf32>, vector<8x32xf32>, vector<16x32xf32> -> vector<16x32xf32>
    %475 = vector.extract_strided_slice %440 {offsets = [0, 8], sizes = [16, 8], strides = [1, 1]} : vector<16x32xf32> to vector<16x8xf32>
    %476 = vector.extract_strided_slice %447 {offsets = [0, 8], sizes = [16, 8], strides = [1, 1]} : vector<16x32xf32> to vector<16x8xf32>
    %cst_234 = arith.constant dense<0.000000e+00> : vector<16x16xf32>
    %477 = tpu.matmul %475, %476, %cst_234 {dimension_numbers = #tpu.dot_dimension_numbers<[1], [1], [0], [0], [0, 0, 1, 0], [], []>} : vector<16x8xf32>, vector<16x8xf32>, vector<16x16xf32> -> vector<16x16xf32>
    %478 = arith.addf %477, %3 : vector<16x16xf32>
    %cst_235 = arith.constant dense<0xFF800000> : vector<16xf32>
    %479 = vector.multi_reduction <maximumf>, %478, %cst_235 [1] : vector<16x16xf32> to vector<16xf32>
    %480 = vector.shape_cast %479 : vector<16xf32> to vector<16x1xf32>
    %481 = vector.broadcast %480 : vector<16x1xf32> to vector<16x16xf32>
    %482 = arith.subf %478, %481 : vector<16x16xf32>
    %483 = math.exp %482 : vector<16x16xf32>
    %cst_236 = arith.constant dense<0.000000e+00> : vector<16xf32>
    %484 = vector.multi_reduction <add>, %483, %cst_236 [1] : vector<16x16xf32> to vector<16xf32>
    %485 = vector.shape_cast %484 : vector<16xf32> to vector<16x1xf32>
    %486 = tpu.reciprocal %485 {approx = true} : vector<16x1xf32> -> vector<16x1xf32>
    %487 = vector.broadcast %486 : vector<16x1xf32> to vector<16x16xf32>
    %488 = arith.mulf %483, %487 : vector<16x16xf32>
    %489 = vector.extract_strided_slice %454 {offsets = [0, 8], sizes = [16, 8], strides = [1, 1]} : vector<16x32xf32> to vector<16x8xf32>
    %cst_237 = arith.constant dense<0.000000e+00> : vector<16x8xf32>
    %490 = tpu.matmul %488, %489, %cst_237 {dimension_numbers = #tpu.dot_dimension_numbers<[1], [0], [0], [1], [0, 0, 1, 1], [], []>} : vector<16x16xf32>, vector<16x8xf32>, vector<16x8xf32> -> vector<16x8xf32>
    %491 = vector.extract_strided_slice %456 {offsets = [8, 0], sizes = [8, 32], strides = [1, 1]} : vector<32x32xf32> to vector<8x32xf32>
    %cst_238 = arith.constant dense<0.000000e+00> : vector<16x32xf32>
    %492 = tpu.matmul %490, %491, %cst_238 {dimension_numbers = #tpu.dot_dimension_numbers<[1], [0], [0], [1], [0, 0, 1, 1], [], []>} : vector<16x8xf32>, vector<8x32xf32>, vector<16x32xf32> -> vector<16x32xf32>
    %493 = vector.extract_strided_slice %440 {offsets = [0, 16], sizes = [16, 8], strides = [1, 1]} : vector<16x32xf32> to vector<16x8xf32>
    %494 = vector.extract_strided_slice %447 {offsets = [0, 16], sizes = [16, 8], strides = [1, 1]} : vector<16x32xf32> to vector<16x8xf32>
    %cst_239 = arith.constant dense<0.000000e+00> : vector<16x16xf32>
    %495 = tpu.matmul %493, %494, %cst_239 {dimension_numbers = #tpu.dot_dimension_numbers<[1], [1], [0], [0], [0, 0, 1, 0], [], []>} : vector<16x8xf32>, vector<16x8xf32>, vector<16x16xf32> -> vector<16x16xf32>
    %496 = arith.addf %495, %3 : vector<16x16xf32>
    %cst_240 = arith.constant dense<0xFF800000> : vector<16xf32>
    %497 = vector.multi_reduction <maximumf>, %496, %cst_240 [1] : vector<16x16xf32> to vector<16xf32>
    %498 = vector.shape_cast %497 : vector<16xf32> to vector<16x1xf32>
    %499 = vector.broadcast %498 : vector<16x1xf32> to vector<16x16xf32>
    %500 = arith.subf %496, %499 : vector<16x16xf32>
    %501 = math.exp %500 : vector<16x16xf32>
    %cst_241 = arith.constant dense<0.000000e+00> : vector<16xf32>
    %502 = vector.multi_reduction <add>, %501, %cst_241 [1] : vector<16x16xf32> to vector<16xf32>
    %503 = vector.shape_cast %502 : vector<16xf32> to vector<16x1xf32>
    %504 = tpu.reciprocal %503 {approx = true} : vector<16x1xf32> -> vector<16x1xf32>
    %505 = vector.broadcast %504 : vector<16x1xf32> to vector<16x16xf32>
    %506 = arith.mulf %501, %505 : vector<16x16xf32>
    %507 = vector.extract_strided_slice %454 {offsets = [0, 16], sizes = [16, 8], strides = [1, 1]} : vector<16x32xf32> to vector<16x8xf32>
    %cst_242 = arith.constant dense<0.000000e+00> : vector<16x8xf32>
    %508 = tpu.matmul %506, %507, %cst_242 {dimension_numbers = #tpu.dot_dimension_numbers<[1], [0], [0], [1], [0, 0, 1, 1], [], []>} : vector<16x16xf32>, vector<16x8xf32>, vector<16x8xf32> -> vector<16x8xf32>
    %509 = vector.extract_strided_slice %456 {offsets = [16, 0], sizes = [8, 32], strides = [1, 1]} : vector<32x32xf32> to vector<8x32xf32>
    %cst_243 = arith.constant dense<0.000000e+00> : vector<16x32xf32>
    %510 = tpu.matmul %508, %509, %cst_243 {dimension_numbers = #tpu.dot_dimension_numbers<[1], [0], [0], [1], [0, 0, 1, 1], [], []>} : vector<16x8xf32>, vector<8x32xf32>, vector<16x32xf32> -> vector<16x32xf32>
    %511 = vector.extract_strided_slice %440 {offsets = [0, 24], sizes = [16, 8], strides = [1, 1]} : vector<16x32xf32> to vector<16x8xf32>
    %512 = vector.extract_strided_slice %447 {offsets = [0, 24], sizes = [16, 8], strides = [1, 1]} : vector<16x32xf32> to vector<16x8xf32>
    %cst_244 = arith.constant dense<0.000000e+00> : vector<16x16xf32>
    %513 = tpu.matmul %511, %512, %cst_244 {dimension_numbers = #tpu.dot_dimension_numbers<[1], [1], [0], [0], [0, 0, 1, 0], [], []>} : vector<16x8xf32>, vector<16x8xf32>, vector<16x16xf32> -> vector<16x16xf32>
    %514 = arith.addf %513, %3 : vector<16x16xf32>
    %cst_245 = arith.constant dense<0xFF800000> : vector<16xf32>
    %515 = vector.multi_reduction <maximumf>, %514, %cst_245 [1] : vector<16x16xf32> to vector<16xf32>
    %516 = vector.shape_cast %515 : vector<16xf32> to vector<16x1xf32>
    %517 = vector.broadcast %516 : vector<16x1xf32> to vector<16x16xf32>
    %518 = arith.subf %514, %517 : vector<16x16xf32>
    %519 = math.exp %518 : vector<16x16xf32>
    %cst_246 = arith.constant dense<0.000000e+00> : vector<16xf32>
    %520 = vector.multi_reduction <add>, %519, %cst_246 [1] : vector<16x16xf32> to vector<16xf32>
    %521 = vector.shape_cast %520 : vector<16xf32> to vector<16x1xf32>
    %522 = tpu.reciprocal %521 {approx = true} : vector<16x1xf32> -> vector<16x1xf32>
    %523 = vector.broadcast %522 : vector<16x1xf32> to vector<16x16xf32>
    %524 = arith.mulf %519, %523 : vector<16x16xf32>
    %525 = vector.extract_strided_slice %454 {offsets = [0, 24], sizes = [16, 8], strides = [1, 1]} : vector<16x32xf32> to vector<16x8xf32>
    %cst_247 = arith.constant dense<0.000000e+00> : vector<16x8xf32>
    %526 = tpu.matmul %524, %525, %cst_247 {dimension_numbers = #tpu.dot_dimension_numbers<[1], [0], [0], [1], [0, 0, 1, 1], [], []>} : vector<16x16xf32>, vector<16x8xf32>, vector<16x8xf32> -> vector<16x8xf32>
    %527 = vector.extract_strided_slice %456 {offsets = [24, 0], sizes = [8, 32], strides = [1, 1]} : vector<32x32xf32> to vector<8x32xf32>
    %cst_248 = arith.constant dense<0.000000e+00> : vector<16x32xf32>
    %528 = tpu.matmul %526, %527, %cst_248 {dimension_numbers = #tpu.dot_dimension_numbers<[1], [0], [0], [1], [0, 0, 1, 1], [], []>} : vector<16x8xf32>, vector<8x32xf32>, vector<16x32xf32> -> vector<16x32xf32>
    %529 = arith.addf %474, %492 : vector<16x32xf32>
    %530 = arith.addf %510, %528 : vector<16x32xf32>
    %531 = arith.addf %529, %530 : vector<16x32xf32>
    %c1_249 = arith.constant 1 : index
    %c0_250 = arith.constant 0 : index
    %c0_251 = arith.constant 0 : index
    %532 = vector.load %arg11[%c1_249, %c0_250, %c0_251] : memref<2x1x32xf32, #tpu.memory_space<vmem>>, vector<1x1x32xf32>
    %533 = vector.shape_cast %532 : vector<1x1x32xf32> to vector<1x32xf32>
    %534 = vector.broadcast %533 : vector<1x32xf32> to vector<16x32xf32>
    %535 = arith.addf %531, %534 : vector<16x32xf32>
    %536 = arith.addf %535, %433 : vector<16x32xf32>
    %cst_252 = arith.constant dense<0.000000e+00> : vector<16xf32>
    %537 = vector.multi_reduction <add>, %536, %cst_252 [1] : vector<16x32xf32> to vector<16xf32>
    %538 = vector.shape_cast %537 : vector<16xf32> to vector<16x1xf32>
    %cst_253 = arith.constant 3.200000e+01 : f32
    %539 = vector.broadcast %cst_253 : f32 to vector<16x1xf32>
    %540 = arith.divf %538, %539 : vector<16x1xf32>
    %541 = vector.broadcast %540 : vector<16x1xf32> to vector<16x32xf32>
    %542 = arith.subf %536, %541 : vector<16x32xf32>
    %543 = arith.mulf %542, %542 : vector<16x32xf32>
    %cst_254 = arith.constant dense<0.000000e+00> : vector<16xf32>
    %544 = vector.multi_reduction <add>, %543, %cst_254 [1] : vector<16x32xf32> to vector<16xf32>
    %545 = vector.shape_cast %544 : vector<16xf32> to vector<16x1xf32>
    %cst_255 = arith.constant 3.200000e+01 : f32
    %546 = vector.broadcast %cst_255 : f32 to vector<16x1xf32>
    %547 = arith.divf %545, %546 : vector<16x1xf32>
    %548 = vector.broadcast %540 : vector<16x1xf32> to vector<16x32xf32>
    %549 = arith.subf %536, %548 : vector<16x32xf32>
    %cst_256 = arith.constant 9.99999974E-6 : f32
    %550 = vector.broadcast %cst_256 : f32 to vector<16x1xf32>
    %551 = arith.addf %547, %550 : vector<16x1xf32>
    %552 = math.rsqrt %551 : vector<16x1xf32>
    %553 = vector.broadcast %552 : vector<16x1xf32> to vector<16x32xf32>
    %554 = arith.mulf %549, %553 : vector<16x32xf32>
    %c1_257 = arith.constant 1 : index
    %c0_258 = arith.constant 0 : index
    %c0_259 = arith.constant 0 : index
    %555 = vector.load %arg12[%c1_257, %c0_258, %c0_259] : memref<2x1x32xf32, #tpu.memory_space<vmem>>, vector<1x1x32xf32>
    %556 = vector.shape_cast %555 : vector<1x1x32xf32> to vector<1x32xf32>
    %557 = vector.broadcast %556 : vector<1x32xf32> to vector<16x32xf32>
    %558 = arith.mulf %554, %557 : vector<16x32xf32>
    %c1_260 = arith.constant 1 : index
    %c0_261 = arith.constant 0 : index
    %c0_262 = arith.constant 0 : index
    %559 = vector.load %arg13[%c1_260, %c0_261, %c0_262] : memref<2x1x32xf32, #tpu.memory_space<vmem>>, vector<1x1x32xf32>
    %560 = vector.shape_cast %559 : vector<1x1x32xf32> to vector<1x32xf32>
    %561 = vector.broadcast %560 : vector<1x32xf32> to vector<16x32xf32>
    %562 = arith.addf %558, %561 : vector<16x32xf32>
    %c1_263 = arith.constant 1 : index
    %c0_264 = arith.constant 0 : index
    %c0_265 = arith.constant 0 : index
    %563 = vector.load %arg14[%c1_263, %c0_264, %c0_265] : memref<2x32x128xf32, #tpu.memory_space<vmem>>, vector<1x32x128xf32>
    %564 = vector.shape_cast %563 : vector<1x32x128xf32> to vector<32x128xf32>
    %cst_266 = arith.constant dense<0.000000e+00> : vector<16x128xf32>
    %565 = tpu.matmul %562, %564, %cst_266 {dimension_numbers = #tpu.dot_dimension_numbers<[1], [0], [0], [1], [0, 0, 1, 1], [], []>} : vector<16x32xf32>, vector<32x128xf32>, vector<16x128xf32> -> vector<16x128xf32>
    %c1_267 = arith.constant 1 : index
    %c0_268 = arith.constant 0 : index
    %c0_269 = arith.constant 0 : index
    %566 = vector.load %arg15[%c1_267, %c0_268, %c0_269] : memref<2x1x128xf32, #tpu.memory_space<vmem>>, vector<1x1x128xf32>
    %567 = vector.shape_cast %566 : vector<1x1x128xf32> to vector<1x128xf32>
    %568 = vector.broadcast %567 : vector<1x128xf32> to vector<16x128xf32>
    %569 = arith.addf %565, %568 : vector<16x128xf32>
    %cst_270 = arith.constant 0.000000e+00 : f32
    %570 = vector.broadcast %cst_270 : f32 to vector<16x128xf32>
    %571 = arith.maximumf %569, %570 : vector<16x128xf32>
    %c1_271 = arith.constant 1 : index
    %c0_272 = arith.constant 0 : index
    %c0_273 = arith.constant 0 : index
    %572 = vector.load %arg16[%c1_271, %c0_272, %c0_273] : memref<2x128x32xf32, #tpu.memory_space<vmem>>, vector<1x128x32xf32>
    %573 = vector.shape_cast %572 : vector<1x128x32xf32> to vector<128x32xf32>
    %cst_274 = arith.constant dense<0.000000e+00> : vector<16x32xf32>
    %574 = tpu.matmul %571, %573, %cst_274 {dimension_numbers = #tpu.dot_dimension_numbers<[1], [0], [0], [1], [0, 0, 1, 1], [], []>} : vector<16x128xf32>, vector<128x32xf32>, vector<16x32xf32> -> vector<16x32xf32>
    %c1_275 = arith.constant 1 : index
    %c0_276 = arith.constant 0 : index
    %c0_277 = arith.constant 0 : index
    %575 = vector.load %arg17[%c1_275, %c0_276, %c0_277] : memref<2x1x32xf32, #tpu.memory_space<vmem>>, vector<1x1x32xf32>
    %576 = vector.shape_cast %575 : vector<1x1x32xf32> to vector<1x32xf32>
    %577 = vector.broadcast %576 : vector<1x32xf32> to vector<16x32xf32>
    %578 = arith.addf %574, %577 : vector<16x32xf32>
    %579 = arith.addf %578, %562 : vector<16x32xf32>
    %cst_278 = arith.constant dense<0.000000e+00> : vector<16xf32>
    %580 = vector.multi_reduction <add>, %579, %cst_278 [1] : vector<16x32xf32> to vector<16xf32>
    %581 = vector.shape_cast %580 : vector<16xf32> to vector<16x1xf32>
    %cst_279 = arith.constant 3.200000e+01 : f32
    %582 = vector.broadcast %cst_279 : f32 to vector<16x1xf32>
    %583 = arith.divf %581, %582 : vector<16x1xf32>
    %584 = vector.broadcast %583 : vector<16x1xf32> to vector<16x32xf32>
    %585 = arith.subf %579, %584 : vector<16x32xf32>
    %586 = arith.mulf %585, %585 : vector<16x32xf32>
    %cst_280 = arith.constant dense<0.000000e+00> : vector<16xf32>
    %587 = vector.multi_reduction <add>, %586, %cst_280 [1] : vector<16x32xf32> to vector<16xf32>
    %588 = vector.shape_cast %587 : vector<16xf32> to vector<16x1xf32>
    %cst_281 = arith.constant 3.200000e+01 : f32
    %589 = vector.broadcast %cst_281 : f32 to vector<16x1xf32>
    %590 = arith.divf %588, %589 : vector<16x1xf32>
    %591 = vector.broadcast %583 : vector<16x1xf32> to vector<16x32xf32>
    %592 = arith.subf %579, %591 : vector<16x32xf32>
    %cst_282 = arith.constant 9.99999974E-6 : f32
    %593 = vector.broadcast %cst_282 : f32 to vector<16x1xf32>
    %594 = arith.addf %590, %593 : vector<16x1xf32>
    %595 = math.rsqrt %594 : vector<16x1xf32>
    %596 = vector.broadcast %595 : vector<16x1xf32> to vector<16x32xf32>
    %597 = arith.mulf %592, %596 : vector<16x32xf32>
    %c1_283 = arith.constant 1 : index
    %c0_284 = arith.constant 0 : index
    %c0_285 = arith.constant 0 : index
    %598 = vector.load %arg12[%c1_283, %c0_284, %c0_285] : memref<2x1x32xf32, #tpu.memory_space<vmem>>, vector<1x1x32xf32>
    %599 = vector.shape_cast %598 : vector<1x1x32xf32> to vector<1x32xf32>
    %600 = vector.broadcast %599 : vector<1x32xf32> to vector<16x32xf32>
    %601 = arith.mulf %597, %600 : vector<16x32xf32>
    %c1_286 = arith.constant 1 : index
    %c0_287 = arith.constant 0 : index
    %c0_288 = arith.constant 0 : index
    %602 = vector.load %arg13[%c1_286, %c0_287, %c0_288] : memref<2x1x32xf32, #tpu.memory_space<vmem>>, vector<1x1x32xf32>
    %603 = vector.shape_cast %602 : vector<1x1x32xf32> to vector<1x32xf32>
    %604 = vector.broadcast %603 : vector<1x32xf32> to vector<16x32xf32>
    %605 = arith.addf %601, %604 : vector<16x32xf32>
    %c0_289 = arith.constant 0 : index
    %c0_290 = arith.constant 0 : index
    %606 = vector.load %arg18[%c0_289, %c0_290] : memref<16x32xf32, #tpu.memory_space<vmem>>, vector<16x32xf32>
    tpu.vector_store %arg18[%c0_289, %c0_290], %605 {strides = array<i32>} : memref<16x32xf32, #tpu.memory_space<vmem>>, vector<16x32xf32>,
    return
  }
}

</mosaic_0001>

<bundles_post_ra>
// kernel: decoder_forward.1
= control target key start
LH: loop header
LB: loop body
LE: loop exit
PB: predicated region body
PF: predicated region fallthrough
CT: control target
= control target key end

     0   :  { %s9068_s0 = inlined_call_operand.vmem [shape: f32[16,32], index: 0, kind: input, shape index: {}]   ;;  %s9069_s1 = inlined_call_operand.vmem [shape: f32[16,32], index: 1, kind: input, shape index: {}]   ;;  %s9070_s2 = inlined_call_operand.vmem [shape: f32[16,16], index: 2, kind: input, shape index: {}]   ;;  %s9071_s3 = inlined_call_operand.vmem [shape: f32[16,16], index: 3, kind: input, shape index: {}]   ;;  %s9072_s4 = inlined_call_operand.vmem [shape: f32[2,32,32], index: 4, kind: input, shape index: {}]   ;;  %s9073_s5 = inlined_call_operand.vmem [shape: f32[2,32,32], index: 5, kind: input, shape index: {}]   ;;  %s9074_s6 = inlined_call_operand.vmem [shape: f32[2,32,32], index: 6, kind: input, shape index: {}]   ;;  %s9075_s7 = inlined_call_operand.vmem [shape: f32[2,32,32], index: 7, kind: input, shape index: {}]   ;;  %s9076_s8 = inlined_call_operand.vmem [shape: f32[2,1,32], index: 8, kind: input, shape index: {}]   ;;  %s9077_s9 = inlined_call_operand.vmem [shape: f32[2,1,32], index: 9, kind: input, shape index: {}]   ;;  %s9078_s10 = inlined_call_operand.vmem [shape: f32[2,1,32], index: 10, kind: input, shape index: {}]   ;;  %s9079_s11 = inlined_call_operand.vmem [shape: f32[2,1,32], index: 11, kind: input, shape index: {}]   ;;  %s9080_s12 = inlined_call_operand.vmem [shape: f32[2,1,32], index: 12, kind: input, shape index: {}]   ;;  %s9081_s13 = inlined_call_operand.vmem [shape: f32[2,1,32], index: 13, kind: input, shape index: {}]   ;;  %s9082_s14 = inlined_call_operand.vmem [shape: f32[2,32,128], index: 14, kind: input, shape index: {}]   ;;  %s9083_s15 = inlined_call_operand.vmem [shape: f32[2,1,128], index: 15, kind: input, shape index: {}]   ;;  %s9084_s16 = inlined_call_operand.vmem [shape: f32[2,128,32], index: 16, kind: input, shape index: {}]   ;;  %s9085_s17 = inlined_call_operand.vmem [shape: f32[2,1,32], index: 17, kind: input, shape index: {}]   ;;  %s9086_s18 = inlined_call_operand.hbm [shape: f32[16,32], index: 18, kind: output, shape index: {}]  }
   0x1   :  { %9090 = sst [smem:[#allocation5_spill]] %s9068_s0 }
   0x2   :  { %9091 = sst [smem:[#allocation6_spill]] %s9069_s1 }
   0x3   :  { %9092 = sst [smem:[#allocation7_spill]] %s9070_s2 }
   0x4   :  { %v68_v0 = vld [vmem:[%s9072_s4] sm:$0xff]  ;;  %v69_v1 = vld [vmem:[%s9072_s4 + $0x8] sm:$0xff]  ;;  %v70_v2 = vld [vmem:[%s9072_s4 + $0x10] sm:$0xff]  ;;  %vm79_vm0 = vcmask 261120   ;;  %s9093_s2 = sld [smem:[#allocation5_spill]] }
   0x5   :  { %v8024_v3 = vpack.c.bf16 %v69_v1, %v68_v0  ;;  %v71_v4 = vld [vmem:[%s9072_s4 + $0x18] sm:$0xff]  ;;  %v161_v7 = vld [vmem:[%s9073_s5] sm:$0xff]  ;;  %v162_v8 = vld [vmem:[%s9073_s5 + $0x8] sm:$0xff] }
   0x6   :  { %v8034_v6 = vpack.c.bf16 %v71_v4, %v70_v2 }
   0x7   :  { %7247 = vmatprep.subr.bf16.mxu0 %v8024_v3 }
   0xa   :  { %v8032_v5 = vld [vmem:[%s9093_s2] sm:$0xff] }
   0xb   :  { %6726 = vmatprep.mubr.msk.f32.mxu0 %vm79_vm0, %v8032_v5 }
   0xc   :  { %23 = vsyncpa [#allocation3], 0  ;;  %7249 = vmatpush3.bf16.msra.mxu0 %v8024_v3  ;;  %v8047_v9 = vpack.c.bf16 %v162_v8, %v161_v7  ;;  %v163_v10 = vld [vmem:[%s9073_s5 + $0x10] sm:$0xff]  ;;  %v164_v11 = vld [vmem:[%s9073_s5 + $0x18] sm:$0xff]  ;;  %vm337_vm1 = vcmask 64512   ;;  %s7914_s21 = smov 120  }
   0xd   :  { %7251 = vmatprep.subr.bf16.mxu0 %v8034_v6  ;;  %v8059_v12 = vld [vmem:[%s9093_s2 + $0x8] sm:$0xff]  ;;  %v8062_v13 = vpack.c.bf16 %v164_v11, %v163_v10  ;;  %v8078_v14 = vld [vmem:[%s9076_s8] ss:$0 sm:$0xff]  ;;  %vm8101_vm2 = vmpackc.low %vm337_vm1, %vm337_vm1  ;;  %s7915_s23 = smov 112   ;;  %s9096_s20 = sld [smem:[#allocation7_spill]]  ;;  %vm425_vm3 = vcmask 130048  }
   0xe   :  { %v8093_v19 = vld [vmem:[%s9077_s9] ss:$0 sm:$0xff]  ;;  %v248_v28 = vld [vmem:[%s9074_s6 + $0x8] sm:$0xff]  ;;  %v249_v29 = vld [vmem:[%s9074_s6 + $0x10] sm:$0xff]  ;;  %s7916_s26 = smov 104   ;;  %s9097_s28 = sld [smem:[#allocation6_spill]] }
   0xf   :  { %v247_v27 = vld [vmem:[%s9074_s6] sm:$0xff]  ;;  %v250_v31 = vld [vmem:[%s9074_s6 + $0x18] sm:$0xff] }
  0x10   :  { %7253 = vmatpush3.bf16.msra.mxu0 %v8034_v6  ;;  %v8130_v30 = vpack.c.bf16 %v248_v28, %v247_v27  ;;  %v8135_v32 = vpack.c.bf16 %v250_v31, %v249_v29  ;;  %v8182_v8 = vld [vmem:[%s9078_s10] ss:$0 sm:$0xff] }
  0x11   :  { %7255 = vmatprep.subr.bf16.mxu0 %v8047_v9 }
  0x13   :  { %6727 = vmatmul.mubr.msk.f32.vlgmr.msra.gmra.mrb[0].mxu0 %vm79_vm0, %v8059_v12  ;;  %v8163_v45 = vld [vmem:[%s9096_s20 + $0x8] sm:$0xff]  ;;  %v8168_v46 = vld [vmem:[%s9096_s20] sm:$0xff] }
  0x14   :  { %7257 = vmatpush3.bf16.msra.mxu0 %v8047_v9  ;;  %6737 = vmatprep.mubr.msk.f32.mxu0 %vm79_vm0, %v8032_v5 }
  0x15   :  { %7259 = vmatprep.subr.bf16.mxu0 %v8062_v13 }
  0x18   :  { %7261 = vmatpush3.bf16.msra.mxu0 %v8062_v13 }
  0x19   :  { %7263 = vmatprep.subr.bf16.mxu0 %v8130_v30 }
  0x1b   :  { %6738 = vmatmul.mubr.msk.f32.vlgmr.msra.gmra.mrb[2].mxu0 %vm79_vm0, %v8059_v12 }
  0x1c   :  { %6748 = vmatprep.mubr.msk.f32.mxu0 %vm79_vm0, %v8032_v5  ;;  %7265 = vmatpush3.bf16.msra.mxu0 %v8130_v30 }
  0x1d   :  { %7267 = vmatprep.subr.bf16.mxu0 %v8135_v32 }
  0x20   :  { %7269 = vmatpush3.bf16.msra.mxu0 %v8135_v32 }
  0x23   :  { %6749 = vmatmul.mubr.msk.f32.vlgmr.msra.gmra.mrb[4].mxu0 %vm79_vm0, %v8059_v12 }
  0xe6   :  { %v6728_v15 = vpop.f32.mrb[0].mxu0 }
  0xe7   :  { %v8081_v16 = vadd.f32 %v6728_v15, %v8078_v14  ;;  %v152_v17 = vpop.f32.mrb[1].mxu0 }
  0xe8   :  { %v8084_v18 = vadd.f32 %v8078_v14, %v152_v17 }
  0xe9   :  { %531 = vrot.lane.b32.xlu1 %v8081_v16, %s7914_s21 }
  0xea   :  { %6755 = vmatprep.mubr.msk.f32.mxu1 %vm337_vm1, %v8084_v18 }
  0xee   :  { %v6739_v20 = vpop.f32.mrb[2].mxu0 }
  0xef   :  { %v244_v21 = vadd.f32 %v6739_v20, %v8093_v19  ;;  %v238_v22 = vpop.f32.mrb[3].mxu0 }
  0xf0   :  { %v239_v23 = vadd.f32 %v8093_v19, %v238_v22 }
  0xf2   :  { %v8097_v24 = vpack.i.bf16 %v244_v21, %v239_v23  ;;  %v7270_v25 = vpack.c.bf16 %v244_v21, %v239_v23 }
  0xf4   :  { %7618 = vrot.lane.b32.xlu1 %v8097_v24, %s7915_s23  ;;  %7613 = vrot.lane.b32.xlu0 %v8097_v24, %s7914_s21 }
  0xf5   :  { %7272 = vmatprep.subr.msk.bf16.mxu1 %vm8101_vm2, %v7270_v25 }
  0xf6   :  { %7275 = vmatpush3.bf16.xpose.msk.msra.mxu1 %vm8101_vm2, %v7270_v25  ;;  %v6750_v7 = vpop.f32.mrb[4].mxu0 }
  0xf7   :  { %v330_v11 = vadd.f32 %v6750_v7, %v8182_v8  ;;  %v324_v15 = vpop.f32.mrb[5].mxu0 }
  0xf8   :  { %814 = vrot.lane.b32.xlu1 %v8081_v16, %s7915_s23  ;;  %529 = vrot.lane.b32.xlu0 %v8084_v18, %s7914_s21  ;;  %v325_v17 = vadd.f32 %v8182_v8, %v324_v15 }
  0xfa   :  { %v8187_v20 = vpack.i.bf16 %v330_v11, %v325_v17  ;;  %v7276_v21 = vpack.c.bf16 %v330_v11, %v325_v17 }
  0xfc   :  { %812 = vrot.lane.b32.xlu0 %v8084_v18, %s7915_s23  ;;  %7277 = vmatprep.subr.bf16.mxu0 %v7276_v21 }
  0xfd   :  { %6756 = vmatmul.mubr.msk.f32.vlgmr.msra.gmra.mrb[0].mxu1 %vm337_vm1, %v8081_v16  ;;  %7279 = vmatpush3.bf16.msra.mxu0 %v7276_v21 }
 0x15b   :  { %v532_v33 = vpop.permute.xlu1 %531 }
 0x166   :  { %v7619_v34 = vpop.permute.xlu1 %7618  ;;  %v7614_v35 = vpop.permute.xlu0 %7613 }
 0x167   :  { %v7621_v36 = vunpack.i.h.bf16 %v7619_v34  ;;  %v7620_v37 = vunpack.i.l.bf16 %v7619_v34  ;;  %v7616_v38 = vunpack.i.h.bf16 %v7614_v35  ;;  %v7615_v39 = vunpack.i.l.bf16 %v7614_v35 }
 0x169   :  { %v7280_v40 = vpack.c.bf16 %v7616_v38, %v7615_v39  ;;  %v7290_v42 = vpack.c.bf16 %v7621_v36, %v7620_v37 }
 0x16a   :  { %v530_v41 = vpop.permute.xlu0 %529  ;;  %v815_v44 = vpop.permute.xlu1 %814 }
 0x16b   :  { %7282 = vmatprep.subr.msk.bf16.mxu1 %vm8101_vm2, %v7280_v40  ;;  %6769 = vmatprep.mubr.msk.f32.mxu1 %vm337_vm1, %v530_v41 }
 0x16c   :  { %7285 = vmatpush3.bf16.xpose.msk.msra.mxu1 %vm8101_vm2, %v7280_v40 }
 0x16d   :  { %7292 = vmatprep.subr.msk.bf16.mxu1 %vm8101_vm2, %v7290_v42 }
 0x16e   :  { %v813_v43 = vpop.permute.xlu0 %812 }
 0x173   :  { %6770 = vmatmul.mubr.msk.f32.vlgmr.msra.gmra.mrb[2].mxu1 %vm337_vm1, %v532_v33 }
 0x174   :  { %7295 = vmatpush3.bf16.xpose.msk.msra.mxu1 %vm8101_vm2, %v7290_v42  ;;  %6788 = vmatprep.mubr.msk.f32.mxu1 %vm337_vm1, %v813_v43 }
 0x175   :  { %7311 = vmatprep.subr.bf16.mxu1 %v8024_v3 }
 0x17b   :  { %6789 = vmatmul.mubr.msk.f32.vlgmr.msra.gmra.mrb[4].mxu1 %vm337_vm1, %v815_v44 }
 0x17c   :  { %7313 = vmatpush3.bf16.msra.mxu1 %v8024_v3 }
 0x17d   :  { %7315 = vmatprep.subr.bf16.mxu1 %v8034_v6 }
 0x180   :  { %7317 = vmatpush3.bf16.msra.mxu1 %v8034_v6 }
 0x181   :  { %7319 = vmatprep.subr.bf16.mxu1 %v8047_v9 }
 0x1d0   :  { %v6757_v47 = vpop.f32.mrb[0].mxu1 }
 0x1d1   :  { %v422_v48 = vadd.f32 %v6757_v47, %v8163_v45  ;;  %v416_v49 = vpop.f32.mrb[1].mxu1 }
 0x1d2   :  { %v417_v50 = vadd.f32 %v416_v49, %v8168_v46 }
 0x1d3   :  { %v429_v51 = vsel %vm425_vm3, %v422_v48, -inf }
 0x1d4   :  { %430 = vmax.xlane.f32.xlu1 %v429_v51  ;;  %v426_v52 = vsel %vm425_vm3, %v417_v50, -inf }
 0x1d5   :  { %427 = vmax.xlane.f32.xlu0 %v426_v52 }
 0x246   :  { %v6771_v53 = vpop.f32.mrb[2].mxu1 }
 0x247   :  { %v611_v54 = vpop.f32.mrb[3].mxu1  ;;  %v617_v56 = vadd.f32 %v6771_v53, %v8163_v45 }
 0x248   :  { %v612_v55 = vadd.f32 %v611_v54, %v8168_v46 }
 0x249   :  { %v623_v59 = vsel %vm425_vm3, %v617_v56, -inf }
 0x24a   :  { %v620_v57 = vsel %vm425_vm3, %v612_v55, -inf }
 0x24b   :  { %621 = vmax.xlane.f32.xlu0 %v620_v57 }
 0x24e   :  { %v6790_v58 = vpop.f32.mrb[4].mxu1 }
 0x24f   :  { %v894_v60 = vpop.f32.mrb[5].mxu1  ;;  %624 = vmax.xlane.f32.xlu0 %v623_v59  ;;  %v900_v37 = vadd.f32 %v6790_v58, %v8163_v45 }
 0x250   :  { %v895_v35 = vadd.f32 %v894_v60, %v8168_v46 }
 0x251   :  { %v906_v39 = vsel %vm425_vm3, %v900_v37, -inf }
 0x252   :  { %v903_v38 = vsel %vm425_vm3, %v895_v35, -inf }
 0x261   :  { %v431_v61 = vpop.xlane.xlu1 %430 }
 0x262   :  { %v433_v62 = vsub.f32 %v422_v48, %v431_v61  ;;  %v428_v63 = vpop.xlane.xlu0 %427 }
 0x263   :  { %v432_v0 = vsub.f32 %v417_v50, %v428_v63 }
 0x264   :  { %v436_v1 = vmul.f32 1.442695, %v433_v62 }
 0x265   :  { %v434_v2 = vmul.f32 1.442695, %v432_v0 }
 0x266   :  { %7732 = vpow2.f32 %v436_v1 }
 0x267   :  { %7734 = vpow2.f32 %v434_v2 }
 0x270   :  { %v7733_v3 = vpop.eup %7732 }
 0x271   :  { %v7735_v4 = vpop.eup %7734  ;;  %v441_v6 = vsel %vm425_vm3, %v7733_v3, 0.0 }
 0x272   :  { %442 = vadd.xlane.f32.xlu0 %v441_v6  ;;  %v438_v10 = vsel %vm425_vm3, %v7735_v4, 0.0 }
 0x273   :  { %439 = vadd.xlane.f32.xlu1 %v438_v10 }
 0x2d8   :  { %v622_v22 = vpop.xlane.xlu0 %621 }
 0x2d9   :  { %v626_v23 = vsub.f32 %v612_v55, %v622_v22 }
 0x2db   :  { %v628_v25 = vmul.f32 1.442695, %v626_v23 }
 0x2dc   :  { %v625_v27 = vpop.xlane.xlu0 %624 }
 0x2dd   :  { %7736 = vpow2.f32 %v628_v25  ;;  %v627_v28 = vsub.f32 %v617_v56, %v625_v27 }
 0x2df   :  { %v630_v29 = vmul.f32 1.442695, %v627_v28 }
 0x2e1   :  { %7738 = vpow2.f32 %v630_v29 }
 0x2e7   :  { %v7737_v31 = vpop.eup %7736 }
 0x2e8   :  { %v632_v33 = vsel %vm425_vm3, %v7737_v31, 0.0 }
 0x2e9   :  { %633 = vadd.xlane.f32.xlu1 %v632_v33 }
 0x2eb   :  { %v7739_v34 = vpop.eup %7738 }
 0x2ec   :  { %v635_v36 = vsel %vm425_vm3, %v7739_v34, 0.0 }
 0x2ed   :  { %636 = vadd.xlane.f32.xlu0 %v635_v36 }
 0x2f1   :  { %904 = vmax.xlane.f32.xlu0 %v903_v38 }
 0x2f5   :  { %907 = vmax.xlane.f32.xlu0 %v906_v39 }
 0x2fa   :  { %7623 = vrot.lane.b32.xlu1 %v8187_v20, %s7914_s21 }
 0x2fe   :  { %7628 = vrot.lane.b32.xlu1 %v8187_v20, %s7915_s23 }
 0x2ff   :  { %v443_v40 = vpop.xlane.xlu0 %442 }
 0x300   :  { %7740 = vrcp.f32 %v443_v40  ;;  %v440_v41 = vpop.xlane.xlu1 %439 }
 0x301   :  { %7742 = vrcp.f32 %v440_v41 }
 0x302   :  { %1012 = vrot.lane.b32.xlu1 %v8084_v18, %s7916_s26 }
 0x306   :  { %1014 = vrot.lane.b32.xlu1 %v8081_v16, %s7916_s26  ;;  %v8208_v16 = vld [vmem:[%s9075_s7 + $0x8] sm:$0xff] }
 0x30a   :  { %v7741_v42 = vpop.eup %7740 }
 0x30b   :  { %v7743_v43 = vpop.eup %7742  ;;  %v447_v47 = vmul.f32 %v7741_v42, %v7733_v3 }
 0x30c   :  { %v446_v44 = vmul.f32 %v7743_v43, %v7735_v4 }
 0x30e   :  { %6762 = vmatprep.mubr.msk.f32.mxu0 %vm425_vm3, %v446_v44 }
 0x30f   :  { %6763 = vmatmul.mubr.msk.f32.vlgmr.msra.gmra.mrb[6].mxu0 %vm425_vm3, %v447_v47 }
 0x376   :  { %v634_v48 = vpop.xlane.xlu1 %633 }
 0x377   :  { %7744 = vrcp.f32 %v634_v48 }
 0x37a   :  { %v7624_v49 = vpop.permute.xlu1 %7623  ;;  %v637_v50 = vpop.xlane.xlu0 %636 }
 0x37b   :  { %v7626_v51 = vunpack.i.h.bf16 %v7624_v49  ;;  %v7625_v52 = vunpack.i.l.bf16 %v7624_v49  ;;  %7746 = vrcp.f32 %v637_v50 }
 0x37d   :  { %v7286_v53 = vpack.c.bf16 %v7626_v51, %v7625_v52 }
 0x37e   :  { %v905_v18 = vpop.xlane.xlu0 %904  ;;  %v7629_v55 = vpop.permute.xlu1 %7628 }
 0x37f   :  { %7287 = vmatprep.subr.bf16.mxu0 %v7286_v53  ;;  %v909_v56 = vsub.f32 %v895_v35, %v905_v18  ;;  %v7631_v60 = vunpack.i.h.bf16 %v7629_v55  ;;  %v7630_v61 = vunpack.i.l.bf16 %v7629_v55 }
 0x380   :  { %7289 = vmatpush3.bf16.msra.mxu0 %v7286_v53 }
 0x381   :  { %v7745_v54 = vpop.eup %7744  ;;  %6779 = vmatprep.subr.mxu0 %v8208_v16  ;;  %v911_v63 = vmul.f32 1.442695, %v909_v56  ;;  %v7296_v2 = vpack.c.bf16 %v7631_v60, %v7630_v61  ;;  %v8243_v56 = vld [vmem:[%s9075_s7 + $0x18] sm:$0xff] }
 0x382   :  { %v908_v57 = vpop.xlane.xlu0 %907  ;;  %v640_v58 = vmul.f32 %v7745_v54, %v7737_v31 }
 0x383   :  { %v910_v59 = vsub.f32 %v900_v37, %v908_v57 }
 0x384   :  { %6776 = vmatprep.mubr.msk.f32.mxu0 %vm425_vm3, %v640_v58 }
 0x385   :  { %v7747_v62 = vpop.eup %7746  ;;  %v913_v0 = vmul.f32 1.442695, %v910_v59 }
 0x386   :  { %v641_v1 = vmul.f32 %v7747_v62, %v7739_v34  ;;  %v1013_v34 = vpop.permute.xlu1 %1012 }
 0x387   :  { %7748 = vpow2.f32 %v913_v0 }
 0x388   :  { %6777 = vmatmul.mubr.msk.f32.vlgmr.msra.gmra.mrb[8].mxu0 %vm425_vm3, %v641_v1  ;;  %7750 = vpow2.f32 %v911_v63  ;;  %v8252_v63 = vld [vmem:[%s9075_s7] sm:$0xff] }
 0x389   :  { %6780 = vmatpush3.msra.mxu0 %v8208_v16 }
 0x38a   :  { %7297 = vmatprep.subr.bf16.mxu0 %v7296_v2  ;;  %v1015_v35 = vpop.permute.xlu1 %1014 }
 0x391   :  { %v7749_v3 = vpop.eup %7748 }
 0x392   :  { %v918_v4 = vsel %vm425_vm3, %v7749_v3, 0.0  ;;  %v7751_v6 = vpop.eup %7750 }
 0x393   :  { %919 = vadd.xlane.f32.xlu0 %v918_v4  ;;  %v915_v7 = vsel %vm425_vm3, %v7751_v6, 0.0 }
 0x397   :  { %916 = vadd.xlane.f32.xlu0 %v915_v7 }
 0x3ad   :  { %7633 = vrot.lane.b32.xlu0 %v8097_v24, %s7916_s26 }
 0x3e2   :  { %v8218_v10 = vpop.f32.mrb[6].mxu0 }
 0x3e3   :  { %v8220_v11 = vpop.f32.mrb[7].mxu0 }
 0x420   :  { %v920_v15 = vpop.xlane.xlu0 %919 }
 0x424   :  { %v917_v17 = vpop.xlane.xlu0 %916 }
 0x425   :  { %7752 = vrcp.f32 %v917_v17 }
 0x426   :  { %7754 = vrcp.f32 %v920_v15 }
 0x428   :  { %v7634_v21 = vpop.permute.xlu0 %7633 }
 0x429   :  { %v7636_v23 = vunpack.i.h.bf16 %v7634_v21  ;;  %v7635_v25 = vunpack.i.l.bf16 %v7634_v21 }
 0x42b   :  { %v7300_v33 = vpack.c.bf16 %v7636_v23, %v7635_v25 }
 0x42f   :  { %v7753_v22 = vpop.eup %7752 }
 0x430   :  { %v7755_v29 = vpop.eup %7754  ;;  %v923_v31 = vmul.f32 %v7753_v22, %v7751_v6 }
 0x431   :  { %v924_v24 = vmul.f32 %v7755_v29, %v7749_v3  ;;  %v8278_v3 = vld [vmem:[%s9079_s11] ss:$0 sm:$0xff] }
 0x45b   :  { %v6778_v27 = vpop.f32.mrb[8].mxu0 }
 0x45c   :  { %v722_v28 = vpop.f32.mrb[9].mxu0 }
 0x45d   :  { %6781 = vmatprep.mubr.msk.f32.mxu0 %vm337_vm1, %v722_v28 }
 0x45e   :  { %6782 = vmatmul.mubr.msk.f32.vlgmr.msra.gmra.mrb[10].mxu0 %vm337_vm1, %v6778_v27 }
 0x45f   :  { %7299 = vmatpush3.bf16.msra.mxu0 %v7296_v2  ;;  %6795 = vmatprep.mubr.msk.f32.mxu0 %vm425_vm3, %v923_v31  ;;  %v8259_v2 = vld [vmem:[%s9075_s7 + $0x10] sm:$0xff] }
 0x460   :  { %7302 = vmatprep.subr.msk.bf16.mxu0 %vm8101_vm2, %v7300_v33 }
 0x462   :  { %6796 = vmatmul.mubr.msk.f32.vlgmr.msra.gmra.mrb[12].mxu0 %vm425_vm3, %v924_v24 }
 0x463   :  { %6802 = vmatprep.mubr.msk.f32.mxu0 %vm337_vm1, %v1013_v34 }
 0x468   :  { %7305 = vmatpush3.bf16.xpose.msk.msra.mxu0 %vm8101_vm2, %v7300_v33  ;;  %v63_v33 = vld [vmem:[%s9097_s28 + $0x8] sm:$0xff] }
 0x46f   :  { %6803 = vmatmul.mubr.msk.f32.vlgmr.msra.gmra.mrb[14].mxu0 %vm337_vm1, %v1015_v35 }
 0x535   :  { %v6797_v36 = vpop.f32.mrb[12].mxu0 }
 0x536   :  { %v1003_v37 = vpop.f32.mrb[13].mxu0 }
 0x542   :  { %v6804_v38 = vpop.f32.mrb[14].mxu0 }
 0x543   :  { %v1100_v39 = vadd.f32 %v6804_v38, %v8163_v45  ;;  %v1094_v40 = vpop.f32.mrb[15].mxu0 }
 0x544   :  { %v1095_v41 = vadd.f32 %v1094_v40, %v8168_v46  ;;  %v8299_v40 = vld [vmem:[%s9080_s12] ss:$0 sm:$0xff] }
 0x545   :  { %v1106_v42 = vsel %vm425_vm3, %v1100_v39, -inf }
 0x546   :  { %1107 = vmax.xlane.f32.xlu0 %v1106_v42  ;;  %v1103_v43 = vsel %vm425_vm3, %v1095_v41, -inf  ;;  %v8304_v42 = vld [vmem:[%s9081_s13] ss:$0 sm:$0xff] }
 0x547   :  { %1104 = vmax.xlane.f32.xlu1 %v1103_v43 }
 0x55c   :  { %7638 = vrot.lane.b32.xlu0 %v8187_v20, %s7916_s26 }
 0x5d3   :  { %v1108_v44 = vpop.xlane.xlu0 %1107 }
 0x5d4   :  { %v1110_v47 = vsub.f32 %v1100_v39, %v1108_v44  ;;  %v1105_v48 = vpop.xlane.xlu1 %1104 }
 0x5d5   :  { %v1109_v49 = vsub.f32 %v1095_v41, %v1105_v48 }
 0x5d6   :  { %v1113_v50 = vmul.f32 1.442695, %v1110_v47 }
 0x5d7   :  { %v1111_v51 = vmul.f32 1.442695, %v1109_v49  ;;  %v7639_v52 = vpop.permute.xlu0 %7638 }
 0x5d8   :  { %v7641_v45 = vunpack.i.h.bf16 %v7639_v52  ;;  %v7640_v53 = vunpack.i.l.bf16 %v7639_v52 }
 0x5d9   :  { %7756 = vpow2.f32 %v1111_v51 }
 0x5da   :  { %v7306_v46 = vpack.c.bf16 %v7641_v45, %v7640_v53  ;;  %7758 = vpow2.f32 %v1113_v50 }
 0x5dc   :  { %7307 = vmatprep.subr.bf16.mxu0 %v7306_v46 }
 0x5dd   :  { %7309 = vmatpush3.bf16.msra.mxu0 %v7306_v46 }
 0x5de   :  { %6812 = vmatprep.subr.mxu0 %v8243_v56 }
 0x5e3   :  { %v7757_v18 = vpop.eup %7756 }
 0x5e4   :  { %v1115_v54 = vsel %vm425_vm3, %v7757_v18, 0.0  ;;  %v7759_v55 = vpop.eup %7758 }
 0x5e5   :  { %1116 = vadd.xlane.f32.xlu1 %v1115_v54  ;;  %v1118_v20 = vsel %vm425_vm3, %v7759_v55, 0.0 }
 0x5e9   :  { %1119 = vadd.xlane.f32.xlu1 %v1118_v20 }
 0x672   :  { %v1117_v57 = vpop.xlane.xlu1 %1116 }
 0x673   :  { %7760 = vrcp.f32 %v1117_v57 }
 0x676   :  { %v1120_v58 = vpop.xlane.xlu1 %1119 }
 0x677   :  { %7762 = vrcp.f32 %v1120_v58 }
 0x67d   :  { %v7761_v59 = vpop.eup %7760 }
 0x67e   :  { %v1123_v60 = vmul.f32 %v7761_v59, %v7757_v18 }
 0x680   :  { %6809 = vmatprep.mubr.msk.f32.mxu0 %vm425_vm3, %v1123_v60 }
 0x681   :  { %v7763_v61 = vpop.eup %7762 }
 0x682   :  { %v1124_v62 = vmul.f32 %v7763_v61, %v7759_v55 }
 0x684   :  { %6810 = vmatmul.mubr.msk.f32.vlgmr.msra.gmra.mrb[16].mxu0 %vm425_vm3, %v1124_v62 }
 0x685   :  { %6813 = vmatpush3.msra.mxu0 %v8243_v56 }
 0x686   :  { %6817 = vmatprep.subr.mxu0 %v8252_v63 }
 0x757   :  { %v6811_v0 = vpop.f32.mrb[16].mxu0 }
 0x758   :  { %v1203_v1 = vpop.f32.mrb[17].mxu0 }
 0x759   :  { %6814 = vmatprep.mubr.msk.f32.mxu0 %vm337_vm1, %v1203_v1 }
 0x75a   :  { %6815 = vmatmul.mubr.msk.f32.vlgmr.msra.gmra.mrb[10].mxu0 %vm337_vm1, %v6811_v0 }
 0x75b   :  { %6818 = vmatpush3.msra.mxu0 %v8252_v63  ;;  %6819 = vmatprep.mubr.msk.f32.mxu0 %vm337_vm1, %v8220_v11 }
 0x75c   :  { %6822 = vmatprep.subr.mxu0 %v8259_v2 }
 0x762   :  { %6820 = vmatmul.mubr.msk.f32.vlgmr.msra.gmra.mrb[10].mxu0 %vm337_vm1, %v8218_v10 }
 0x763   :  { %6823 = vmatpush3.msra.mxu0 %v8259_v2  ;;  %6824 = vmatprep.mubr.msk.f32.mxu0 %vm337_vm1, %v1003_v37 }
 0x764   :  { %7327 = vmatprep.subr.bf16.mxu0 %v8130_v30 }
 0x76a   :  { %6825 = vmatmul.mubr.msk.f32.vlgmr.msra.gmra.mrb[10].mxu0 %vm337_vm1, %v6797_v36 }
 0x76b   :  { %7329 = vmatpush3.bf16.msra.mxu0 %v8130_v30 }
 0x76c   :  { %7331 = vmatprep.subr.bf16.mxu0 %v8135_v32 }
 0x76f   :  { %7333 = vmatpush3.bf16.msra.mxu0 %v8135_v32 }
 0x83d   :  { %v6826_v4 = vpop.f32.mrb[10].mxu0 }
 0x83e   :  { %v1446_v6 = vpop.f32.mrb[11].mxu0  ;;  %v1465_v7 = vadd.f32 %v6826_v4, %v8278_v3 }
 0x83f   :  { %v1464_v10 = vadd.f32 %v8278_v3, %v1446_v6  ;;  %v8368_v6 = vld [vmem:[%s9071_s3 + $0x8] sm:$0xff] }
 0x840   :  { %v1467_v30 = vadd.f32 %v1465_v7, %v8059_v12  ;;  %v62_v12 = vld [vmem:[%s9097_s28] sm:$0xff] }
 0x841   :  { %v1466_v11 = vadd.f32 %v1464_v10, %v8032_v5  ;;  %6857 = vmatprep.mubr.msk.f32.mxu0 %vm79_vm0, %v62_v12  ;;  %v8373_v7 = vld [vmem:[%s9071_s3] sm:$0xff] }
 0x842   :  { %v1471_v32 = vsel %vm79_vm0, %v1467_v30, 0.0  ;;  %6858 = vmatmul.mubr.msk.f32.vlgmr.msra.gmra.mrb[18].mxu0 %vm79_vm0, %v63_v33 }
 0x843   :  { %v1468_v15 = vsel %vm79_vm0, %v1466_v11, 0.0 }
 0x844   :  { %1469 = vadd.xlane.f32.xlu1 %v1468_v15 }
 0x848   :  { %1472 = vadd.xlane.f32.xlu1 %v1471_v32 }
 0x8d1   :  { %v1470_v17 = vpop.xlane.xlu1 %1469 }
 0x8d2   :  { %v1475_v21 = vmul.f32 0.03125, %v1470_v17 }
 0x8d4   :  { %v1477_v22 = vsub.f32 %v1466_v11, %v1475_v21 }
 0x8d5   :  { %v1473_v23 = vpop.xlane.xlu1 %1472 }
 0x8d6   :  { %v1476_v25 = vmul.f32 0.03125, %v1473_v23  ;;  %v1479_v27 = vmul.f32 %v1477_v22, %v1477_v22 }
 0x8d8   :  { %v1478_v28 = vsub.f32 %v1467_v30, %v1476_v25  ;;  %v1481_v29 = vsel %vm79_vm0, %v1479_v27, 0.0 }
 0x8d9   :  { %1482 = vadd.xlane.f32.xlu1 %v1481_v29 }
 0x8da   :  { %v1480_v31 = vmul.f32 %v1478_v28, %v1478_v28 }
 0x8dc   :  { %v1484_v5 = vsel %vm79_vm0, %v1480_v31, 0.0 }
 0x8dd   :  { %1485 = vadd.xlane.f32.xlu1 %v1484_v5 }
 0x966   :  { %v1483_v24 = vpop.xlane.xlu1 %1482 }
 0x967   :  { %v1487_v34 = vmul.f32 0.03125, %v1483_v24 }
 0x969   :  { %v1489_v35 = vadd.f32 1e-05, %v1487_v34 }
 0x96a   :  { %v1486_v36 = vpop.xlane.xlu1 %1485 }
 0x96b   :  { %7764 = vrsqrt.f32 %v1489_v35  ;;  %v1488_v37 = vmul.f32 0.03125, %v1486_v36 }
 0x96d   :  { %v1490_v38 = vadd.f32 1e-05, %v1488_v37 }
 0x96f   :  { %7766 = vrsqrt.f32 %v1490_v38 }
 0x975   :  { %v7765_v39 = vpop.eup %7764 }
 0x976   :  { %v1493_v41 = vmul.f32 %v7765_v39, %v1477_v22 }
 0x978   :  { %v1502_v43 = vmul.f32 %v8299_v40, %v1493_v41  ;;  %v6859_v41 = vpop.f32.mrb[18].mxu0 }
 0x979   :  { %v7767_v44 = vpop.eup %7766 }
 0x97a   :  { %v1494_v47 = vmul.f32 %v7767_v44, %v1478_v28  ;;  %v8308_v48 = vadd.f32 %v8304_v42, %v1502_v43  ;;  %v1747_v43 = vadd.f32 %v6859_v41, %v8182_v8  ;;  %v1741_v44 = vpop.f32.mrb[19].mxu0 }
 0x97c   :  { %6835 = vmatprep.mubr.msk.f32.mxu1 %vm79_vm0, %v8308_v48  ;;  %v1503_v49 = vmul.f32 %v8299_v40, %v1494_v47  ;;  %v1742_v47 = vadd.f32 %v8182_v8, %v1741_v44 }
 0x97e   :  { %v8314_v50 = vadd.f32 %v8304_v42, %v1503_v49  ;;  %v8387_v49 = vpack.i.bf16 %v1747_v43, %v1742_v47 }
 0x980   :  { %6836 = vmatmul.mubr.msk.f32.vlgmr.msra.gmra.mrb[6].mxu1 %vm79_vm0, %v8314_v50 }
 0x981   :  { %7321 = vmatpush3.bf16.msra.mxu1 %v8047_v9  ;;  %6846 = vmatprep.mubr.msk.f32.mxu1 %vm79_vm0, %v62_v12 }
 0x982   :  { %7323 = vmatprep.subr.bf16.mxu1 %v8062_v13 }
 0x985   :  { %7325 = vmatpush3.bf16.msra.mxu1 %v8062_v13 }
 0x988   :  { %6847 = vmatmul.mubr.msk.f32.vlgmr.msra.gmra.mrb[8].mxu1 %vm79_vm0, %v63_v33 }
 0xa53   :  { %v6837_v51 = vpop.f32.mrb[6].mxu1 }
 0xa54   :  { %v1585_v52 = vpop.f32.mrb[7].mxu1  ;;  %v8331_v9 = vadd.f32 %v6837_v51, %v8078_v14  ;;  %v7340_v51 = vpack.c.bf16 %v1747_v43, %v1742_v47 }
 0xa55   :  { %v8324_v45 = vadd.f32 %v8078_v14, %v1585_v52 }
 0xa56   :  { %7341 = vmatprep.subr.bf16.mxu0 %v7340_v51 }
 0xa57   :  { %1940 = vrot.lane.b32.xlu0 %v8324_v45, %s7914_s21  ;;  %6864 = vmatprep.mubr.msk.f32.mxu1 %vm337_vm1, %v8324_v45 }
 0xa58   :  { %7343 = vmatpush3.bf16.msra.mxu0 %v7340_v51 }
 0xa5b   :  { %v6848_v53 = vpop.f32.mrb[8].mxu1  ;;  %1942 = vrot.lane.b32.xlu0 %v8331_v9, %s7914_s21 }
 0xa5c   :  { %v1672_v13 = vadd.f32 %v6848_v53, %v8093_v19  ;;  %v1666_v46 = vpop.f32.mrb[9].mxu1 }
 0xa5d   :  { %v1667_v18 = vadd.f32 %v8093_v19, %v1666_v46 }
 0xa5f   :  { %v8337_v54 = vpack.i.bf16 %v1672_v13, %v1667_v18  ;;  %v7334_v55 = vpack.c.bf16 %v1672_v13, %v1667_v18 }
 0xa61   :  { %7643 = vrot.lane.b32.xlu1 %v8337_v54, %s7914_s21  ;;  %7336 = vmatprep.subr.msk.bf16.mxu1 %vm8101_vm2, %v7334_v55 }
 0xa62   :  { %7648 = vrot.lane.b32.xlu0 %v8337_v54, %s7915_s23  ;;  %7339 = vmatpush3.bf16.xpose.msk.msra.mxu1 %vm8101_vm2, %v7334_v55 }
 0xa65   :  { %2225 = vrot.lane.b32.xlu1 %v8331_v9, %s7915_s23 }
 0xa66   :  { %2223 = vrot.lane.b32.xlu0 %v8324_v45, %s7915_s23 }
 0xa69   :  { %6865 = vmatmul.mubr.msk.f32.vlgmr.msra.gmra.mrb[10].mxu1 %vm337_vm1, %v8331_v9 }
 0xac9   :  { %v1941_v14 = vpop.permute.xlu0 %1940 }
 0xaca   :  { %6878 = vmatprep.mubr.msk.f32.mxu1 %vm337_vm1, %v1941_v14 }
 0xacd   :  { %v1943_v19 = vpop.permute.xlu0 %1942 }
 0xad3   :  { %v7644_v20 = vpop.permute.xlu1 %7643 }
 0xad4   :  { %v7646_v57 = vunpack.i.h.bf16 %v7644_v20  ;;  %v7645_v58 = vunpack.i.l.bf16 %v7644_v20  ;;  %v7649_v59 = vpop.permute.xlu0 %7648 }
 0xad5   :  { %v7651_v60 = vunpack.i.h.bf16 %v7649_v59  ;;  %v7650_v61 = vunpack.i.l.bf16 %v7649_v59 }
 0xad6   :  { %v7344_v62 = vpack.c.bf16 %v7646_v57, %v7645_v58 }
 0xad7   :  { %v7354_v0 = vpack.c.bf16 %v7651_v60, %v7650_v61  ;;  %v2226_v4 = vpop.permute.xlu1 %2225 }
 0xad8   :  { %7346 = vmatprep.subr.msk.bf16.mxu1 %vm8101_vm2, %v7344_v62  ;;  %v2224_v1 = vpop.permute.xlu0 %2223 }
 0xad9   :  { %7349 = vmatpush3.bf16.xpose.msk.msra.mxu1 %vm8101_vm2, %v7344_v62 }
 0xada   :  { %7356 = vmatprep.subr.msk.bf16.mxu1 %vm8101_vm2, %v7354_v0 }
 0xae0   :  { %6879 = vmatmul.mubr.msk.f32.vlgmr.msra.gmra.mrb[12].mxu1 %vm337_vm1, %v1943_v19 }
 0xae1   :  { %7359 = vmatpush3.bf16.xpose.msk.msra.mxu1 %vm8101_vm2, %v7354_v0  ;;  %6897 = vmatprep.mubr.msk.f32.mxu1 %vm337_vm1, %v2224_v1 }
 0xae8   :  { %6898 = vmatmul.mubr.msk.f32.vlgmr.msra.gmra.mrb[14].mxu1 %vm337_vm1, %v2226_v4 }
 0xb3c   :  { %v6866_v10 = vpop.f32.mrb[10].mxu1 }
 0xb3d   :  { %v1834_v11 = vadd.f32 %v6866_v10, %v8368_v6  ;;  %v1828_v15 = vpop.f32.mrb[11].mxu1 }
 0xb3e   :  { %v1829_v30 = vadd.f32 %v1828_v15, %v8373_v7 }
 0xb3f   :  { %v1840_v32 = vsel %vm425_vm3, %v1834_v11, -inf }
 0xb40   :  { %1841 = vmax.xlane.f32.xlu1 %v1840_v32  ;;  %v1837_v17 = vsel %vm425_vm3, %v1829_v30, -inf }
 0xb41   :  { %1838 = vmax.xlane.f32.xlu0 %v1837_v17 }
 0xbb3   :  { %v6880_v21 = vpop.f32.mrb[12].mxu1 }
 0xbb4   :  { %v2022_v22 = vpop.f32.mrb[13].mxu1  ;;  %v2028_v25 = vadd.f32 %v6880_v21, %v8368_v6 }
 0xbb5   :  { %v2023_v23 = vadd.f32 %v2022_v22, %v8373_v7 }
 0xbb6   :  { %v2034_v29 = vsel %vm425_vm3, %v2028_v25, -inf }
 0xbb7   :  { %v2031_v27 = vsel %vm425_vm3, %v2023_v23, -inf }
 0xbb8   :  { %2032 = vmax.xlane.f32.xlu0 %v2031_v27 }
 0xbbb   :  { %v6899_v28 = vpop.f32.mrb[14].mxu1 }
 0xbbc   :  { %v2305_v31 = vpop.f32.mrb[15].mxu1  ;;  %2035 = vmax.xlane.f32.xlu0 %v2034_v29  ;;  %v2311_v58 = vadd.f32 %v6899_v28, %v8368_v6 }
 0xbbd   :  { %v2306_v8 = vadd.f32 %v2305_v31, %v8373_v7 }
 0xbbe   :  { %v2317_v60 = vsel %vm425_vm3, %v2311_v58, -inf }
 0xbbf   :  { %v2314_v59 = vsel %vm425_vm3, %v2306_v8, -inf }
 0xbcd   :  { %v1842_v5 = vpop.xlane.xlu1 %1841 }
 0xbce   :  { %v1844_v12 = vsub.f32 %v1834_v11, %v1842_v5  ;;  %v1839_v33 = vpop.xlane.xlu0 %1838 }
 0xbcf   :  { %v1843_v24 = vsub.f32 %v1829_v30, %v1839_v33 }
 0xbd0   :  { %v1847_v34 = vmul.f32 1.442695, %v1844_v12 }
 0xbd1   :  { %v1845_v35 = vmul.f32 1.442695, %v1843_v24 }
 0xbd2   :  { %7768 = vpow2.f32 %v1847_v34 }
 0xbd3   :  { %7770 = vpow2.f32 %v1845_v35 }
 0xbdc   :  { %v7769_v36 = vpop.eup %7768 }
 0xbdd   :  { %v7771_v37 = vpop.eup %7770  ;;  %v1852_v38 = vsel %vm425_vm3, %v7769_v36, 0.0 }
 0xbde   :  { %1853 = vadd.xlane.f32.xlu0 %v1852_v38  ;;  %v1849_v39 = vsel %vm425_vm3, %v7771_v37, 0.0 }
 0xbdf   :  { %1850 = vadd.xlane.f32.xlu1 %v1849_v39 }
 0xc45   :  { %v2033_v52 = vpop.xlane.xlu0 %2032 }
 0xc46   :  { %v2037_v53 = vsub.f32 %v2023_v23, %v2033_v52 }
 0xc48   :  { %v2039_v13 = vmul.f32 1.442695, %v2037_v53 }
 0xc49   :  { %v2036_v46 = vpop.xlane.xlu0 %2035 }
 0xc4a   :  { %7772 = vpow2.f32 %v2039_v13  ;;  %v2038_v18 = vsub.f32 %v2028_v25, %v2036_v46 }
 0xc4c   :  { %v2041_v55 = vmul.f32 1.442695, %v2038_v18 }
 0xc4e   :  { %7774 = vpow2.f32 %v2041_v55 }
 0xc54   :  { %v7773_v14 = vpop.eup %7772 }
 0xc55   :  { %v2043_v19 = vsel %vm425_vm3, %v7773_v14, 0.0 }
 0xc56   :  { %2044 = vadd.xlane.f32.xlu1 %v2043_v19 }
 0xc58   :  { %v7775_v20 = vpop.eup %7774 }
 0xc59   :  { %v2046_v57 = vsel %vm425_vm3, %v7775_v20, 0.0 }
 0xc5a   :  { %2047 = vadd.xlane.f32.xlu0 %v2046_v57 }
 0xc5e   :  { %2315 = vmax.xlane.f32.xlu0 %v2314_v59 }
 0xc62   :  { %2318 = vmax.xlane.f32.xlu0 %v2317_v60 }
 0xc67   :  { %7653 = vrot.lane.b32.xlu1 %v8387_v49, %s7914_s21 }
 0xc6b   :  { %7658 = vrot.lane.b32.xlu1 %v8387_v49, %s7915_s23  ;;  %v1854_v61 = vpop.xlane.xlu0 %1853 }
 0xc6c   :  { %7776 = vrcp.f32 %v1854_v61  ;;  %v1851_v62 = vpop.xlane.xlu1 %1850 }
 0xc6d   :  { %7778 = vrcp.f32 %v1851_v62 }
 0xc6f   :  { %2423 = vrot.lane.b32.xlu1 %v8324_v45, %s7916_s26 }
 0xc73   :  { %2425 = vrot.lane.b32.xlu1 %v8331_v9, %s7916_s26 }
 0xc76   :  { %v7777_v0 = vpop.eup %7776 }
 0xc77   :  { %v7779_v1 = vpop.eup %7778  ;;  %v1858_v10 = vmul.f32 %v7777_v0, %v7769_v36 }
 0xc78   :  { %v1857_v4 = vmul.f32 %v7779_v1, %v7771_v37 }
 0xc7a   :  { %6871 = vmatprep.mubr.msk.f32.mxu0 %vm425_vm3, %v1857_v4 }
 0xc7b   :  { %6872 = vmatmul.mubr.msk.f32.vlgmr.msra.gmra.mrb[20].mxu0 %vm425_vm3, %v1858_v10 }
 0xce3   :  { %v2045_v11 = vpop.xlane.xlu1 %2044 }
 0xce4   :  { %7780 = vrcp.f32 %v2045_v11 }
 0xce7   :  { %v7654_v15 = vpop.permute.xlu1 %7653  ;;  %v2048_v30 = vpop.xlane.xlu0 %2047 }
 0xce8   :  { %v7656_v32 = vunpack.i.h.bf16 %v7654_v15  ;;  %v7655_v17 = vunpack.i.l.bf16 %v7654_v15  ;;  %7782 = vrcp.f32 %v2048_v30 }
 0xcea   :  { %v7350_v21 = vpack.c.bf16 %v7656_v32, %v7655_v17 }
 0xceb   :  { %v2316_v45 = vpop.xlane.xlu0 %2315  ;;  %v7659_v22 = vpop.permute.xlu1 %7658 }
 0xcec   :  { %7351 = vmatprep.subr.bf16.mxu0 %v7350_v21  ;;  %v2320_v23 = vsub.f32 %v2306_v8, %v2316_v45  ;;  %v7661_v29 = vunpack.i.h.bf16 %v7659_v22  ;;  %v7660_v31 = vunpack.i.l.bf16 %v7659_v22 }
 0xced   :  { %7353 = vmatpush3.bf16.msra.mxu0 %v7350_v21 }
 0xcee   :  { %v7781_v9 = vpop.eup %7780  ;;  %6888 = vmatprep.subr.mxu0 %v8208_v16  ;;  %v2322_v12 = vmul.f32 1.442695, %v2320_v23  ;;  %v7360_v34 = vpack.c.bf16 %v7661_v29, %v7660_v31 }
 0xcef   :  { %v2319_v25 = vpop.xlane.xlu0 %2318  ;;  %v2051_v27 = vmul.f32 %v7781_v9, %v7773_v14  ;;  %v2424_v14 = vpop.permute.xlu1 %2423 }
 0xcf0   :  { %v2321_v28 = vsub.f32 %v2311_v58, %v2319_v25 }
 0xcf1   :  { %6885 = vmatprep.mubr.msk.f32.mxu0 %vm425_vm3, %v2051_v27 }
 0xcf2   :  { %v7783_v5 = vpop.eup %7782  ;;  %v2324_v33 = vmul.f32 1.442695, %v2321_v28 }
 0xcf3   :  { %v2052_v24 = vmul.f32 %v7783_v5, %v7775_v20  ;;  %v2426_v19 = vpop.permute.xlu1 %2425 }
 0xcf4   :  { %7784 = vpow2.f32 %v2324_v33 }
 0xcf5   :  { %6886 = vmatmul.mubr.msk.f32.vlgmr.msra.gmra.mrb[22].mxu0 %vm425_vm3, %v2052_v24  ;;  %7786 = vpow2.f32 %v2322_v12 }
 0xcf6   :  { %6889 = vmatpush3.msra.mxu0 %v8208_v16 }
 0xcf7   :  { %7361 = vmatprep.subr.bf16.mxu0 %v7360_v34 }
 0xcfe   :  { %v7785_v35 = vpop.eup %7784 }
 0xcff   :  { %v2329_v36 = vsel %vm425_vm3, %v7785_v35, 0.0  ;;  %v7787_v37 = vpop.eup %7786 }
 0xd00   :  { %2330 = vadd.xlane.f32.xlu0 %v2329_v36  ;;  %v2326_v38 = vsel %vm425_vm3, %v7787_v37, 0.0 }
 0xd04   :  { %2327 = vadd.xlane.f32.xlu0 %v2326_v38 }
 0xd1a   :  { %7663 = vrot.lane.b32.xlu0 %v8337_v54, %s7916_s26 }
 0xd4e   :  { %v8413_v39 = vpop.f32.mrb[20].mxu0 }
 0xd4f   :  { %v8415_v41 = vpop.f32.mrb[21].mxu0 }
 0xd8d   :  { %v2331_v43 = vpop.xlane.xlu0 %2330 }
 0xd91   :  { %v2328_v44 = vpop.xlane.xlu0 %2327 }
 0xd92   :  { %7788 = vrcp.f32 %v2328_v44 }
 0xd93   :  { %7790 = vrcp.f32 %v2331_v43 }
 0xd95   :  { %v7664_v16 = vpop.permute.xlu0 %7663 }
 0xd96   :  { %v7666_v51 = vunpack.i.h.bf16 %v7664_v16  ;;  %v7665_v52 = vunpack.i.l.bf16 %v7664_v16  ;;  %v2903_v16 = vld [vmem:[%s9082_s14 + $0x8] sm:$0xff] }
 0xd98   :  { %v7364_v55 = vpack.c.bf16 %v7666_v51, %v7665_v52  ;;  %v2904_v51 = vld [vmem:[%s9082_s14 + $0x10] sm:$0xff]  ;;  %v2905_v52 = vld [vmem:[%s9082_s14 + $0x18] sm:$0xff] }
 0xd9c   :  { %v7789_v47 = vpop.eup %7788 }
 0xd9d   :  { %v7791_v46 = vpop.eup %7790  ;;  %v2334_v18 = vmul.f32 %v7789_v47, %v7787_v37 }
 0xd9e   :  { %v2335_v54 = vmul.f32 %v7791_v46, %v7785_v35  ;;  %v2997_v46 = vld [vmem:[%s9084_s16 + $0x8] sm:$0xff] }
 0xdc8   :  { %v6887_v53 = vpop.f32.mrb[22].mxu0 }
 0xdc9   :  { %v2133_v13 = vpop.f32.mrb[23].mxu0 }
 0xdca   :  { %6890 = vmatprep.mubr.msk.f32.mxu0 %vm337_vm1, %v2133_v13  ;;  %v2996_v13 = vld [vmem:[%s9084_s16] sm:$0xff] }
 0xdcb   :  { %6891 = vmatmul.mubr.msk.f32.vlgmr.msra.gmra.mrb[24].mxu0 %vm337_vm1, %v6887_v53  ;;  %v7378_v53 = vpack.c.bf16 %v2905_v52, %v2904_v51 }
 0xdcc   :  { %7363 = vmatpush3.bf16.msra.mxu0 %v7360_v34  ;;  %6904 = vmatprep.mubr.msk.f32.mxu0 %vm425_vm3, %v2334_v18  ;;  %v7382_v18 = vpack.c.bf16 %v2997_v46, %v2996_v13 }
 0xdcd   :  { %7366 = vmatprep.subr.msk.bf16.mxu0 %vm8101_vm2, %v7364_v55 }
 0xdcf   :  { %6905 = vmatmul.mubr.msk.f32.vlgmr.msra.gmra.mrb[26].mxu0 %vm425_vm3, %v2335_v54 }
 0xdd0   :  { %6911 = vmatprep.mubr.msk.f32.mxu0 %vm337_vm1, %v2424_v14 }
 0xdd5   :  { %7369 = vmatpush3.bf16.xpose.msk.msra.mxu0 %vm8101_vm2, %v7364_v55 }
 0xdd6   :  { %6921 = vmatprep.subr.mxu0 %v8243_v56 }
 0xddc   :  { %6912 = vmatmul.mubr.msk.f32.vlgmr.msra.gmra.mrb[28].mxu0 %vm337_vm1, %v2426_v19 }
 0xddd   :  { %6922 = vmatpush3.msra.mxu0 %v8243_v56 }
 0xdde   :  { %6926 = vmatprep.subr.mxu0 %v8252_v63 }
 0xea2   :  { %v6906_v20 = vpop.f32.mrb[26].mxu0 }
 0xea3   :  { %v2414_v8 = vpop.f32.mrb[27].mxu0 }
 0xeaf   :  { %v6913_v57 = vpop.f32.mrb[28].mxu0 }
 0xeb0   :  { %v2511_v58 = vadd.f32 %v6913_v57, %v8368_v6  ;;  %v2505_v59 = vpop.f32.mrb[29].mxu0 }
 0xeb1   :  { %v2506_v60 = vadd.f32 %v2505_v59, %v8373_v7 }
 0xeb2   :  { %v2517_v61 = vsel %vm425_vm3, %v2511_v58, -inf }
 0xeb3   :  { %2518 = vmax.xlane.f32.xlu0 %v2517_v61  ;;  %v2514_v62 = vsel %vm425_vm3, %v2506_v60, -inf }
 0xeb4   :  { %2515 = vmax.xlane.f32.xlu1 %v2514_v62 }
 0xec9   :  { %7668 = vrot.lane.b32.xlu0 %v8387_v49, %s7916_s26 }
 0xf40   :  { %v2519_v56 = vpop.xlane.xlu0 %2518 }
 0xf41   :  { %v2521_v0 = vsub.f32 %v2511_v58, %v2519_v56  ;;  %v2516_v1 = vpop.xlane.xlu1 %2515  ;;  %v2998_v56 = vld [vmem:[%s9084_s16 + $0x10] sm:$0xff] }
 0xf42   :  { %v2520_v4 = vsub.f32 %v2506_v60, %v2516_v1 }
 0xf43   :  { %v2524_v10 = vmul.f32 1.442695, %v2521_v0  ;;  %v2999_v0 = vld [vmem:[%s9084_s16 + $0x18] sm:$0xff] }
 0xf44   :  { %v2522_v11 = vmul.f32 1.442695, %v2520_v4  ;;  %v7669_v15 = vpop.permute.xlu0 %7668 }
 0xf45   :  { %v7671_v6 = vunpack.i.h.bf16 %v7669_v15  ;;  %v7670_v30 = vunpack.i.l.bf16 %v7669_v15  ;;  %v3001_v15 = vld [vmem:[%s9084_s16 + $0x28] sm:$0xff] }
 0xf46   :  { %7792 = vpow2.f32 %v2522_v11  ;;  %v3000_v11 = vld [vmem:[%s9084_s16 + $0x20] sm:$0xff] }
 0xf47   :  { %v7370_v7 = vpack.c.bf16 %v7671_v6, %v7670_v30  ;;  %7794 = vpow2.f32 %v2524_v10  ;;  %v7386_v10 = vpack.c.bf16 %v2999_v0, %v2998_v56  ;;  %v7390_v6 = vpack.c.bf16 %v3001_v15, %v3000_v11  ;;  %v3002_v30 = vld [vmem:[%s9084_s16 + $0x30] sm:$0xff] }
 0xf49   :  { %7371 = vmatprep.subr.bf16.mxu1 %v7370_v7 }
 0xf4a   :  { %7373 = vmatpush3.bf16.msra.mxu1 %v7370_v7  ;;  %v3003_v7 = vld [vmem:[%s9084_s16 + $0x38] sm:$0xff] }
 0xf50   :  { %v7793_v32 = vpop.eup %7792 }
 0xf51   :  { %v2526_v17 = vsel %vm425_vm3, %v7793_v32, 0.0  ;;  %v7795_v21 = vpop.eup %7794 }
 0xf52   :  { %2527 = vadd.xlane.f32.xlu1 %v2526_v17  ;;  %v2529_v49 = vsel %vm425_vm3, %v7795_v21, 0.0  ;;  %v3004_v17 = vld [vmem:[%s9084_s16 + $0x40] sm:$0xff] }
 0xf56   :  { %2530 = vadd.xlane.f32.xlu1 %v2529_v49 }
 0xfdf   :  { %v2528_v45 = vpop.xlane.xlu1 %2527 }
 0xfe0   :  { %7796 = vrcp.f32 %v2528_v45  ;;  %v3006_v45 = vld [vmem:[%s9084_s16 + $0x50] sm:$0xff] }
 0xfe3   :  { %v2531_v9 = vpop.xlane.xlu1 %2530 }
 0xfe4   :  { %7798 = vrcp.f32 %v2531_v9  ;;  %v3007_v9 = vld [vmem:[%s9084_s16 + $0x58] sm:$0xff] }
 0xfea   :  { %v7797_v22 = vpop.eup %7796 }
 0xfeb   :  { %v2534_v23 = vmul.f32 %v7797_v22, %v7793_v32  ;;  %v7394_v32 = vpack.c.bf16 %v3003_v7, %v3002_v30  ;;  %v7402_v22 = vpack.c.bf16 %v3007_v9, %v3006_v45  ;;  %v6302_v7 = vld [vmem:[%s9073_s5 + $0x30] sm:$0xff]  ;;  %v6308_v45 = vld [vmem:[%s9074_s6 + $0x20] sm:$0xff]  ;;  %v6309_v9 = vld [vmem:[%s9074_s6 + $0x28] sm:$0xff] }
 0xfed   :  { %6918 = vmatprep.mubr.msk.f32.mxu1 %vm425_vm3, %v2534_v23  ;;  %v3008_v23 = vld [vmem:[%s9084_s16 + $0x60] sm:$0xff] }
 0xfee   :  { %v7799_v25 = vpop.eup %7798 }
 0xfef   :  { %v2535_v27 = vmul.f32 %v7799_v25, %v7795_v21  ;;  %v3005_v21 = vld [vmem:[%s9084_s16 + $0x48] sm:$0xff] }
 0xff0   :  { %v7398_v49 = vpack.c.bf16 %v3005_v21, %v3004_v17  ;;  %v3009_v25 = vld [vmem:[%s9084_s16 + $0x68] sm:$0xff] }
 0xff1   :  { %6919 = vmatmul.mubr.msk.f32.vlgmr.msra.gmra.mrb[16].mxu1 %vm425_vm3, %v2535_v27  ;;  %v7406_v27 = vpack.c.bf16 %v3009_v25, %v3008_v23  ;;  %v8618_v25 = vld [vmem:[%s9076_s8 + $0x1] ss:$0 sm:$0xff] }
0x10c4   :  { %v6920_v28 = vpop.f32.mrb[16].mxu1 }
0x10c5   :  { %v2614_v29 = vpop.f32.mrb[17].mxu1 }
0x10c6   :  { %6923 = vmatprep.mubr.msk.f32.mxu0 %vm337_vm1, %v2614_v29  ;;  %v3011_v29 = vld [vmem:[%s9084_s16 + $0x78] sm:$0xff] }
0x10c7   :  { %6924 = vmatmul.mubr.msk.f32.vlgmr.msra.gmra.mrb[24].mxu0 %vm337_vm1, %v6920_v28  ;;  %v3010_v28 = vld [vmem:[%s9084_s16 + $0x70] sm:$0xff] }
0x10c8   :  { %6927 = vmatpush3.msra.mxu0 %v8252_v63  ;;  %6928 = vmatprep.mubr.msk.f32.mxu0 %vm337_vm1, %v8415_v41 }
0x10c9   :  { %6931 = vmatprep.subr.mxu0 %v8259_v2 }
0x10cf   :  { %6929 = vmatmul.mubr.msk.f32.vlgmr.msra.gmra.mrb[24].mxu0 %vm337_vm1, %v8413_v39 }
0x10d0   :  { %6932 = vmatpush3.msra.mxu0 %v8259_v2  ;;  %6933 = vmatprep.mubr.msk.f32.mxu0 %vm337_vm1, %v2414_v8 }
0x10d7   :  { %6934 = vmatmul.mubr.msk.f32.vlgmr.msra.gmra.mrb[24].mxu0 %vm337_vm1, %v6906_v20 }
0x11aa   :  { %v6935_v31 = vpop.f32.mrb[24].mxu0 }
0x11ab   :  { %v2857_v5 = vpop.f32.mrb[25].mxu0  ;;  %v2869_v12 = vadd.f32 %v6935_v31, %v8278_v3  ;;  %v7410_v31 = vpack.c.bf16 %v3011_v29, %v3010_v28 }
0x11ac   :  { %v2868_v63 = vadd.f32 %v8278_v3, %v2857_v5  ;;  %v6288_v5 = vld [vmem:[%s9083_s15] ss:$0 sm:$0xff] }
0x11ad   :  { %v2871_v34 = vadd.f32 %v2869_v12, %v8314_v50  ;;  %v2902_v50 = vld [vmem:[%s9082_s14] sm:$0xff] }
0x11ae   :  { %v2870_v33 = vadd.f32 %v2868_v63, %v8308_v48  ;;  %v7374_v47 = vpack.c.bf16 %v2903_v16, %v2902_v50 }
0x11af   :  { %v2875_v35 = vsel %vm79_vm0, %v2871_v34, 0.0 }
0x11b0   :  { %v2872_v24 = vsel %vm79_vm0, %v2870_v33, 0.0  ;;  %7375 = vmatprep.subr.bf16.mxu1 %v7374_v47 }
0x11b1   :  { %2873 = vadd.xlane.f32.xlu1 %v2872_v24  ;;  %7377 = vmatpush3.bf16.msra.mxu1 %v7374_v47 }
0x11b2   :  { %7379 = vmatprep.subr.bf16.mxu1 %v7378_v53 }
0x11b5   :  { %2876 = vadd.xlane.f32.xlu1 %v2875_v35  ;;  %7381 = vmatpush3.bf16.msra.mxu1 %v7378_v53 }
0x11b6   :  { %7383 = vmatprep.subr.bf16.mxu1 %v7382_v18 }
0x123e   :  { %v2874_v2 = vpop.xlane.xlu1 %2873 }
0x123f   :  { %v2878_v36 = vmul.f32 0.03125, %v2874_v2  ;;  %v6291_v2 = vld [vmem:[%s9085_s17] ss:$0 sm:$0xff] }
0x1241   :  { %v2880_v37 = vsub.f32 %v2870_v33, %v2878_v36 }
0x1242   :  { %v2877_v38 = vpop.xlane.xlu1 %2876 }
0x1243   :  { %v2879_v39 = vmul.f32 0.03125, %v2877_v38  ;;  %v2882_v41 = vmul.f32 %v2880_v37, %v2880_v37 }
0x1245   :  { %v2881_v43 = vsub.f32 %v2871_v34, %v2879_v39  ;;  %v2884_v44 = vsel %vm79_vm0, %v2882_v41, 0.0 }
0x1246   :  { %2885 = vadd.xlane.f32.xlu1 %v2884_v44 }
0x1247   :  { %v2883_v3 = vmul.f32 %v2881_v43, %v2881_v43 }
0x1249   :  { %v2887_v48 = vsel %vm79_vm0, %v2883_v3, 0.0 }
0x124a   :  { %2888 = vadd.xlane.f32.xlu1 %v2887_v48 }
0x12d3   :  { %v2886_v55 = vpop.xlane.xlu1 %2885 }
0x12d4   :  { %v2890_v54 = vmul.f32 0.03125, %v2886_v55  ;;  %v6292_v55 = vld [vmem:[%s9072_s4 + $0x20] sm:$0xff] }
0x12d6   :  { %v2892_v14 = vadd.f32 1e-05, %v2890_v54  ;;  %v6293_v54 = vld [vmem:[%s9072_s4 + $0x28] sm:$0xff] }
0x12d7   :  { %v2889_v19 = vpop.xlane.xlu1 %2888 }
0x12d8   :  { %7800 = vrsqrt.f32 %v2892_v14  ;;  %v2891_v20 = vmul.f32 0.03125, %v2889_v19  ;;  %v8541_v14 = vpack.c.bf16 %v6293_v54, %v6292_v55  ;;  %v6294_v19 = vld [vmem:[%s9072_s4 + $0x30] sm:$0xff] }
0x12da   :  { %v2893_v8 = vadd.f32 1e-05, %v2891_v20  ;;  %7415 = vmatprep.subr.bf16.mxu0 %v8541_v14  ;;  %v6295_v20 = vld [vmem:[%s9072_s4 + $0x38] sm:$0xff] }
0x12db   :  { %7417 = vmatpush3.bf16.msra.mxu0 %v8541_v14 }
0x12dc   :  { %7802 = vrsqrt.f32 %v2893_v8  ;;  %v8551_v8 = vpack.c.bf16 %v6295_v20, %v6294_v19 }
0x12de   :  { %7419 = vmatprep.subr.bf16.mxu0 %v8551_v8 }
0x12df   :  { %7421 = vmatpush3.bf16.msra.mxu0 %v8551_v8 }
0x12e2   :  { %v7801_v57 = vpop.eup %7800 }
0x12e3   :  { %v2896_v58 = vmul.f32 %v7801_v57, %v2880_v37  ;;  %v6300_v57 = vld [vmem:[%s9073_s5 + $0x20] sm:$0xff] }
0x12e5   :  { %v2898_v59 = vmul.f32 %v8299_v40, %v2896_v58  ;;  %v6301_v58 = vld [vmem:[%s9073_s5 + $0x28] sm:$0xff] }
0x12e6   :  { %v7803_v60 = vpop.eup %7802 }
0x12e7   :  { %v2897_v61 = vmul.f32 %v7803_v60, %v2881_v43  ;;  %v2900_v62 = vadd.f32 %v8304_v42, %v2898_v59  ;;  %v8561_v59 = vpack.c.bf16 %v6301_v58, %v6300_v57 }
0x12e9   :  { %6944 = vmatprep.mubr.msk.f32.mxu1 %vm79_vm0, %v2900_v62  ;;  %v2899_v1 = vmul.f32 %v8299_v40, %v2897_v61  ;;  %7423 = vmatprep.subr.bf16.mxu0 %v8561_v59 }
0x12eb   :  { %v2901_v4 = vadd.f32 %v8304_v42, %v2899_v1 }
0x12ed   :  { %6945 = vmatmul.mubr.msk.f32.vlgmr.msra.gmra.mrb[18].mxu1 %vm79_vm0, %v2901_v4 }
0x12ee   :  { %7385 = vmatpush3.bf16.msra.mxu1 %v7382_v18 }
0x12ef   :  { %7387 = vmatprep.subr.bf16.mxu1 %v7386_v10 }
0x12f2   :  { %7389 = vmatpush3.bf16.msra.mxu1 %v7386_v10 }
0x12f3   :  { %7391 = vmatprep.subr.bf16.mxu1 %v7390_v6 }
0x12f6   :  { %7393 = vmatpush3.bf16.msra.mxu1 %v7390_v6 }
0x12f7   :  { %7395 = vmatprep.subr.bf16.mxu1 %v7394_v32 }
0x12fa   :  { %7397 = vmatpush3.bf16.msra.mxu1 %v7394_v32  ;;  %v6303_v32 = vld [vmem:[%s9073_s5 + $0x38] sm:$0xff] }
0x12fb   :  { %7399 = vmatprep.subr.bf16.mxu1 %v7398_v49 }
0x12fe   :  { %7401 = vmatpush3.bf16.msra.mxu1 %v7398_v49  ;;  %v8580_v49 = vpack.c.bf16 %v6303_v32, %v6302_v7 }
0x12ff   :  { %7403 = vmatprep.subr.bf16.mxu1 %v7402_v22 }
0x1302   :  { %7405 = vmatpush3.bf16.msra.mxu1 %v7402_v22  ;;  %v6311_v22 = vld [vmem:[%s9074_s6 + $0x38] sm:$0xff] }
0x1303   :  { %7407 = vmatprep.subr.bf16.mxu1 %v7406_v27 }
0x1306   :  { %7409 = vmatpush3.bf16.msra.mxu1 %v7406_v27 }
0x1307   :  { %7411 = vmatprep.subr.bf16.mxu1 %v7410_v31 }
0x130a   :  { %7413 = vmatpush3.bf16.msra.mxu1 %v7410_v31  ;;  %v8630_v31 = vld [vmem:[%s9077_s9 + $0x1] ss:$0 sm:$0xff] }
0x13c0   :  { %v6946_v12 = vpop.f32.mrb[18].mxu1 }
0x13c1   :  { %v2991_v63 = vadd.f32 %v6946_v12, %v6288_v5  ;;  %v2985_v33 = vpop.f32.mrb[19].mxu1 }
0x13c2   :  { %v2986_v24 = vadd.f32 %v6288_v5, %v2985_v33 }
0x13c3   :  { %v2995_v35 = vmax.f32 %v2991_v63, 0.0 }
0x13c4   :  { %v2994_v34 = vmax.f32 %v2986_v24, 0.0 }
0x13c6   :  { %6979 = vmatprep.mubr.f32.mxu1 %v2994_v34 }
0x13c7   :  { %6980 = vmatmul.mubr.f32.vlgmr.msra.gmra.mrb[20].mxu1 %v2995_v35  ;;  %v8641_v35 = vld [vmem:[%s9078_s10 + $0x1] ss:$0 sm:$0xff] }
0x149a   :  { %v6981_v36 = vpop.f32.mrb[20].mxu1 }
0x149b   :  { %v3085_v37 = vpop.f32.mrb[21].mxu1  ;;  %v3091_v38 = vadd.f32 %v6981_v36, %v6291_v2 }
0x149c   :  { %v3086_v39 = vadd.f32 %v6291_v2, %v3085_v37 }
0x149d   :  { %v3095_v44 = vadd.f32 %v3091_v38, %v2901_v4 }
0x149e   :  { %v3094_v41 = vadd.f32 %v3086_v39, %v2900_v62 }
0x149f   :  { %v3099_v3 = vsel %vm79_vm0, %v3095_v44, 0.0 }
0x14a0   :  { %v3096_v43 = vsel %vm79_vm0, %v3094_v41, 0.0 }
0x14a1   :  { %3097 = vadd.xlane.f32.xlu1 %v3096_v43 }
0x14a5   :  { %3100 = vadd.xlane.f32.xlu1 %v3099_v3 }
0x152e   :  { %v3098_v48 = vpop.xlane.xlu1 %3097 }
0x152f   :  { %v3102_v50 = vmul.f32 0.03125, %v3098_v48  ;;  %v8657_v48 = vld [vmem:[%s9096_s20] sm:$0xff] }
0x1531   :  { %v3104_v16 = vsub.f32 %v3094_v41, %v3102_v50 }
0x1532   :  { %v3101_v47 = vpop.xlane.xlu1 %3100 }
0x1533   :  { %v3103_v51 = vmul.f32 0.03125, %v3101_v47  ;;  %v3106_v52 = vmul.f32 %v3104_v16, %v3104_v16 }
0x1535   :  { %v3105_v53 = vsub.f32 %v3095_v44, %v3103_v51  ;;  %v3108_v13 = vsel %vm79_vm0, %v3106_v52, 0.0 }
0x1536   :  { %3109 = vadd.xlane.f32.xlu0 %v3108_v13 }
0x1537   :  { %v3107_v46 = vmul.f32 %v3105_v53, %v3105_v53 }
0x1539   :  { %v3111_v18 = vsel %vm79_vm0, %v3107_v46, 0.0 }
0x153a   :  { %3112 = vadd.xlane.f32.xlu1 %v3111_v18 }
0x15c3   :  { %v3110_v60 = vpop.xlane.xlu0 %3109 }
0x15c4   :  { %v3114_v61 = vmul.f32 0.03125, %v3110_v60 }
0x15c6   :  { %v3116_v62 = vadd.f32 1e-05, %v3114_v61 }
0x15c7   :  { %v3113_v56 = vpop.xlane.xlu1 %3112 }
0x15c8   :  { %7804 = vrsqrt.f32 %v3116_v62  ;;  %v3115_v0 = vmul.f32 0.03125, %v3113_v56 }
0x15ca   :  { %v3117_v1 = vadd.f32 1e-05, %v3115_v0 }
0x15cc   :  { %7806 = vrsqrt.f32 %v3117_v1 }
0x15d2   :  { %v7805_v4 = vpop.eup %7804 }
0x15d3   :  { %v3120_v10 = vmul.f32 %v7805_v4, %v3104_v16  ;;  %v8663_v16 = vld [vmem:[%s9096_s20 + $0x8] sm:$0xff] }
0x15d5   :  { %v3122_v11 = vmul.f32 %v8299_v40, %v3120_v10 }
0x15d6   :  { %v7807_v15 = vpop.eup %7806 }
0x15d7   :  { %v3121_v6 = vmul.f32 %v7807_v15, %v3105_v53  ;;  %v8566_v30 = vadd.f32 %v8304_v42, %v3122_v11 }
0x15d9   :  { %6990 = vmatprep.mubr.msk.f32.mxu0 %vm79_vm0, %v8566_v30  ;;  %v3123_v17 = vmul.f32 %v8299_v40, %v3121_v6  ;;  %v8594_v40 = vpack.c.bf16 %v6309_v9, %v6308_v45 }
0x15db   :  { %v8578_v21 = vadd.f32 %v8304_v42, %v3123_v17  ;;  %v6310_v42 = vld [vmem:[%s9074_s6 + $0x30] sm:$0xff] }
0x15dc   :  { %v8604_v23 = vpack.c.bf16 %v6311_v22, %v6310_v42 }
0x15dd   :  { %6991 = vmatmul.mubr.msk.f32.vlgmr.msra.gmra.mrb[30].mxu0 %vm79_vm0, %v8578_v21 }
0x15de   :  { %7425 = vmatpush3.bf16.msra.mxu0 %v8561_v59  ;;  %7001 = vmatprep.mubr.msk.f32.mxu0 %vm79_vm0, %v8566_v30 }
0x15df   :  { %7427 = vmatprep.subr.bf16.mxu0 %v8580_v49 }
0x15e2   :  { %7429 = vmatpush3.bf16.msra.mxu0 %v8580_v49 }
0x15e3   :  { %7431 = vmatprep.subr.bf16.mxu0 %v8594_v40 }
0x15e5   :  { %7002 = vmatmul.mubr.msk.f32.vlgmr.msra.gmra.mrb[32].mxu0 %vm79_vm0, %v8578_v21 }
0x15e6   :  { %7433 = vmatpush3.bf16.msra.mxu0 %v8594_v40  ;;  %7012 = vmatprep.mubr.msk.f32.mxu0 %vm79_vm0, %v8566_v30 }
0x15e7   :  { %7435 = vmatprep.subr.bf16.mxu0 %v8604_v23 }
0x15ea   :  { %7437 = vmatpush3.bf16.msra.mxu0 %v8604_v23 }
0x15ed   :  { %7013 = vmatmul.mubr.msk.f32.vlgmr.msra.gmra.mrb[34].mxu0 %vm79_vm0, %v8578_v21 }
0x16b0   :  { %v6992_v27 = vpop.f32.mrb[30].mxu0 }
0x16b1   :  { %v3211_v28 = vpop.f32.mrb[31].mxu0  ;;  %v8648_v39 = vadd.f32 %v6992_v27, %v8618_v25 }
0x16b2   :  { %v8621_v29 = vadd.f32 %v8618_v25, %v3211_v28 }
0x16b4   :  { %3591 = vrot.lane.b32.xlu0 %v8621_v29, %s7914_s21  ;;  %7019 = vmatprep.mubr.msk.f32.mxu0 %vm337_vm1, %v8621_v29 }
0x16b8   :  { %v7003_v5 = vpop.f32.mrb[32].mxu0 }
0x16b9   :  { %v3305_v12 = vadd.f32 %v7003_v5, %v8630_v31  ;;  %v3299_v63 = vpop.f32.mrb[33].mxu0 }
0x16ba   :  { %v3300_v33 = vadd.f32 %v8630_v31, %v3299_v63 }
0x16bc   :  { %v7438_v24 = vpack.c.bf16 %v3305_v12, %v3300_v33  ;;  %v8634_v34 = vpack.i.bf16 %v3305_v12, %v3300_v33 }
0x16be   :  { %7440 = vmatprep.subr.msk.bf16.mxu0 %vm8101_vm2, %v7438_v24 }
0x16bf   :  { %7443 = vmatpush3.bf16.xpose.msk.msra.mxu0 %vm8101_vm2, %v7438_v24 }
0x16c0   :  { %v7014_v2 = vpop.f32.mrb[34].mxu0 }
0x16c1   :  { %v3393_v36 = vadd.f32 %v7014_v2, %v8641_v35  ;;  %v3387_v37 = vpop.f32.mrb[35].mxu0 }
0x16c2   :  { %v3388_v38 = vadd.f32 %v8641_v35, %v3387_v37 }
0x16c4   :  { %v7444_v41 = vpack.c.bf16 %v3393_v36, %v3388_v38  ;;  %v8650_v43 = vpack.i.bf16 %v3393_v36, %v3388_v38 }
0x16c6   :  { %7020 = vmatmul.mubr.msk.f32.vlgmr.msra.gmra.mrb[36].mxu0 %vm337_vm1, %v8648_v39  ;;  %7445 = vmatprep.subr.bf16.mxu1 %v7444_v41 }
0x16c7   :  { %7447 = vmatpush3.bf16.msra.mxu1 %v7444_v41 }
0x1726   :  { %v3592_v45 = vpop.permute.xlu0 %3591 }
0x1799   :  { %v7021_v44 = vpop.f32.mrb[36].mxu0 }
0x179a   :  { %v3479_v3 = vpop.f32.mrb[37].mxu0  ;;  %v3485_v47 = vadd.f32 %v8663_v16, %v7021_v44 }
0x179b   :  { %v3480_v50 = vadd.f32 %v8657_v48, %v3479_v3 }
0x179c   :  { %v3491_v52 = vsel %vm425_vm3, %v3485_v47, -inf }
0x179d   :  { %v3488_v51 = vsel %vm425_vm3, %v3480_v50, -inf }
0x179e   :  { %3489 = vmax.xlane.f32.xlu1 %v3488_v51 }
0x17a2   :  { %3492 = vmax.xlane.f32.xlu1 %v3491_v52 }
0x17b3   :  { %7673 = vrot.lane.b32.xlu1 %v8634_v34, %s7914_s21 }
0x182b   :  { %v3490_v53 = vpop.xlane.xlu1 %3489 }
0x182c   :  { %v3494_v13 = vsub.f32 %v3480_v50, %v3490_v53 }
0x182e   :  { %v3496_v55 = vmul.f32 1.442695, %v3494_v13 }
0x182f   :  { %v3493_v46 = vpop.xlane.xlu1 %3492 }
0x1830   :  { %v3495_v18 = vsub.f32 %v3485_v47, %v3493_v46 }
0x1832   :  { %v3498_v54 = vmul.f32 1.442695, %v3495_v18 }
0x1833   :  { %v7674_v19 = vpop.permute.xlu1 %7673 }
0x1834   :  { %7808 = vpow2.f32 %v3498_v54  ;;  %v7676_v20 = vunpack.i.h.bf16 %v7674_v19  ;;  %v7675_v57 = vunpack.i.l.bf16 %v7674_v19 }
0x1835   :  { %7810 = vpow2.f32 %v3496_v55 }
0x1836   :  { %v7448_v58 = vpack.c.bf16 %v7676_v20, %v7675_v57 }
0x1838   :  { %7450 = vmatprep.subr.msk.bf16.mxu1 %vm8101_vm2, %v7448_v58 }
0x183e   :  { %v7809_v60 = vpop.eup %7808 }
0x183f   :  { %v3503_v61 = vsel %vm425_vm3, %v7809_v60, 0.0  ;;  %v7811_v62 = vpop.eup %7810 }
0x1840   :  { %3504 = vadd.xlane.f32.xlu1 %v3503_v61  ;;  %v3500_v56 = vsel %vm425_vm3, %v7811_v62, 0.0 }
0x1844   :  { %3501 = vadd.xlane.f32.xlu1 %v3500_v56 }
0x1855   :  { %3593 = vrot.lane.b32.xlu1 %v8648_v39, %s7914_s21 }
0x1859   :  { %7678 = vrot.lane.b32.xlu1 %v8634_v34, %s7915_s23 }
0x185d   :  { %3874 = vrot.lane.b32.xlu1 %v8621_v29, %s7915_s23 }
0x1861   :  { %3876 = vrot.lane.b32.xlu1 %v8648_v39, %s7915_s23 }
0x18cd   :  { %v3505_v0 = vpop.xlane.xlu1 %3504 }
0x18ce   :  { %7812 = vrcp.f32 %v3505_v0 }
0x18d1   :  { %v3502_v1 = vpop.xlane.xlu1 %3501 }
0x18d2   :  { %7814 = vrcp.f32 %v3502_v1 }
0x18d5   :  { %v3594_v4 = vpop.permute.xlu1 %3593 }
0x18d8   :  { %v7813_v11 = vpop.eup %7812 }
0x18d9   :  { %v7679_v10 = vpop.permute.xlu1 %7678  ;;  %v3509_v17 = vmul.f32 %v7813_v11, %v7809_v60 }
0x18da   :  { %v7681_v6 = vunpack.i.h.bf16 %v7679_v10  ;;  %v7680_v7 = vunpack.i.l.bf16 %v7679_v10 }
0x18dc   :  { %v7815_v15 = vpop.eup %7814  ;;  %v7458_v9 = vpack.c.bf16 %v7681_v6, %v7680_v7 }
0x18dd   :  { %v3508_v32 = vmul.f32 %v7815_v15, %v7811_v62  ;;  %v3875_v42 = vpop.permute.xlu1 %3874 }
0x18df   :  { %7026 = vmatprep.mubr.msk.f32.mxu1 %vm425_vm3, %v3508_v32 }
0x18e0   :  { %7027 = vmatmul.mubr.msk.f32.vlgmr.msra.gmra.mrb[22].mxu1 %vm425_vm3, %v3509_v17 }
0x18e1   :  { %7453 = vmatpush3.bf16.xpose.msk.msra.mxu1 %vm8101_vm2, %v7448_v58  ;;  %7033 = vmatprep.mubr.msk.f32.mxu1 %vm337_vm1, %v3592_v45  ;;  %v3877_v22 = vpop.permute.xlu1 %3876 }
0x18e2   :  { %7460 = vmatprep.subr.msk.bf16.mxu1 %vm8101_vm2, %v7458_v9 }
0x18e8   :  { %7034 = vmatmul.mubr.msk.f32.vlgmr.msra.gmra.mrb[24].mxu1 %vm337_vm1, %v3594_v4 }
0x18e9   :  { %7463 = vmatpush3.bf16.xpose.msk.msra.mxu1 %vm8101_vm2, %v7458_v9  ;;  %7052 = vmatprep.mubr.msk.f32.mxu1 %vm337_vm1, %v3875_v42 }
0x18f0   :  { %7053 = vmatmul.mubr.msk.f32.vlgmr.msra.gmra.mrb[26].mxu1 %vm337_vm1, %v3877_v22 }
0x19b3   :  { %v8694_v27 = vpop.f32.mrb[22].mxu1 }
0x19b4   :  { %v8696_v28 = vpop.f32.mrb[23].mxu1 }
0x19bb   :  { %v7035_v5 = vpop.f32.mrb[24].mxu1 }
0x19bc   :  { %v3679_v12 = vadd.f32 %v8663_v16, %v7035_v5  ;;  %v3673_v63 = vpop.f32.mrb[25].mxu1 }
0x19bd   :  { %v3674_v33 = vadd.f32 %v8657_v48, %v3673_v63 }
0x19be   :  { %v3685_v24 = vsel %vm425_vm3, %v3679_v12, -inf }
0x19bf   :  { %3686 = vmax.xlane.f32.xlu1 %v3685_v24  ;;  %v3682_v2 = vsel %vm425_vm3, %v3674_v33, -inf }
0x19c0   :  { %3683 = vmax.xlane.f32.xlu0 %v3682_v2 }
0x19c3   :  { %v7054_v36 = vpop.f32.mrb[26].mxu1 }
0x19c4   :  { %v3956_v37 = vpop.f32.mrb[27].mxu1  ;;  %v3962_v41 = vadd.f32 %v8663_v16, %v7054_v36 }
0x19c5   :  { %v3957_v38 = vadd.f32 %v8657_v48, %v3956_v37 }
0x19c6   :  { %v3968_v3 = vsel %vm425_vm3, %v3962_v41, -inf }
0x19c7   :  { %v3965_v44 = vsel %vm425_vm3, %v3957_v38, -inf }
0x19c8   :  { %3966 = vmax.xlane.f32.xlu1 %v3965_v44 }
0x19cc   :  { %3969 = vmax.xlane.f32.xlu1 %v3968_v3 }
0x1a4c   :  { %v3687_v50 = vpop.xlane.xlu1 %3686 }
0x1a4d   :  { %v3689_v47 = vsub.f32 %v3679_v12, %v3687_v50  ;;  %v3684_v51 = vpop.xlane.xlu0 %3683 }
0x1a4e   :  { %v3688_v52 = vsub.f32 %v3674_v33, %v3684_v51 }
0x1a4f   :  { %v3692_v53 = vmul.f32 1.442695, %v3689_v47 }
0x1a50   :  { %v3690_v13 = vmul.f32 1.442695, %v3688_v52 }
0x1a51   :  { %7816 = vpow2.f32 %v3692_v53 }
0x1a52   :  { %7818 = vpow2.f32 %v3690_v13 }
0x1a55   :  { %v3967_v46 = vpop.xlane.xlu1 %3966 }
0x1a56   :  { %v3971_v18 = vsub.f32 %v3957_v38, %v3967_v46 }
0x1a58   :  { %v3973_v20 = vmul.f32 1.442695, %v3971_v18 }
0x1a59   :  { %v3970_v55 = vpop.xlane.xlu1 %3969 }
0x1a5a   :  { %v3972_v54 = vsub.f32 %v3962_v41, %v3970_v55 }
0x1a5b   :  { %v7817_v19 = vpop.eup %7816 }
0x1a5c   :  { %v3975_v57 = vmul.f32 1.442695, %v3972_v54  ;;  %v3697_v58 = vsel %vm425_vm3, %v7817_v19, 0.0  ;;  %v7819_v60 = vpop.eup %7818 }
0x1a5d   :  { %3698 = vadd.xlane.f32.xlu0 %v3697_v58  ;;  %v3694_v61 = vsel %vm425_vm3, %v7819_v60, 0.0 }
0x1a5e   :  { %7820 = vpow2.f32 %v3975_v57 }
0x1a5f   :  { %7822 = vpow2.f32 %v3973_v20 }
0x1a61   :  { %3695 = vadd.xlane.f32.xlu0 %v3694_v61 }
0x1a68   :  { %v7821_v62 = vpop.eup %7820 }
0x1a69   :  { %v3980_v56 = vsel %vm425_vm3, %v7821_v62, 0.0  ;;  %v7823_v0 = vpop.eup %7822 }
0x1a6a   :  { %3981 = vadd.xlane.f32.xlu1 %v3980_v56  ;;  %v3977_v1 = vsel %vm425_vm3, %v7823_v0, 0.0 }
0x1a6e   :  { %3978 = vadd.xlane.f32.xlu1 %v3977_v1 }
0x1a77   :  { %7683 = vrot.lane.b32.xlu0 %v8650_v43, %s7914_s21 }
0x1a7b   :  { %7693 = vrot.lane.b32.xlu0 %v8634_v34, %s7916_s26  ;;  %v8723_v34 = vld [vmem:[%s9075_s7 + $0x28] sm:$0xff] }
0x1a7f   :  { %7688 = vrot.lane.b32.xlu1 %v8650_v43, %s7915_s23  ;;  %4074 = vrot.lane.b32.xlu0 %v8621_v29, %s7916_s26 }
0x1a83   :  { %4076 = vrot.lane.b32.xlu0 %v8648_v39, %s7916_s26 }
0x1aea   :  { %v3699_v4 = vpop.xlane.xlu0 %3698 }
0x1aeb   :  { %7824 = vrcp.f32 %v3699_v4 }
0x1aee   :  { %v3696_v10 = vpop.xlane.xlu0 %3695 }
0x1aef   :  { %7826 = vrcp.f32 %v3696_v10  ;;  %v8753_v10 = vld [vmem:[%s9075_s7 + $0x38] sm:$0xff] }
0x1af2   :  { %v7684_v11 = vpop.permute.xlu0 %7683 }
0x1af3   :  { %v7686_v15 = vunpack.i.h.bf16 %v7684_v11  ;;  %v7685_v6 = vunpack.i.l.bf16 %v7684_v11 }
0x1af5   :  { %v7454_v7 = vpack.c.bf16 %v7686_v15, %v7685_v6  ;;  %v7825_v17 = vpop.eup %7824 }
0x1af6   :  { %v3703_v45 = vmul.f32 %v7825_v17, %v7817_v19  ;;  %v7694_v63 = vpop.permute.xlu0 %7693 }
0x1af7   :  { %v3982_v32 = vpop.xlane.xlu1 %3981  ;;  %7455 = vmatprep.subr.bf16.mxu0 %v7454_v7  ;;  %v7696_v24 = vunpack.i.h.bf16 %v7694_v63  ;;  %v7695_v2 = vunpack.i.l.bf16 %v7694_v63 }
0x1af8   :  { %7457 = vmatpush3.bf16.msra.mxu0 %v7454_v7 }
0x1af9   :  { %v7827_v29 = vpop.eup %7826  ;;  %7043 = vmatprep.subr.mxu0 %v8723_v34  ;;  %v7468_v44 = vpack.c.bf16 %v7696_v24, %v7695_v2 }
0x1afa   :  { %v3702_v39 = vmul.f32 %v7827_v29, %v7819_v60  ;;  %v4075_v50 = vpop.permute.xlu0 %4074  ;;  %v8766_v29 = vld [vmem:[%s9075_s7 + $0x20] sm:$0xff] }
0x1afb   :  { %v3979_v9 = vpop.xlane.xlu1 %3978 }
0x1afc   :  { %7040 = vmatprep.mubr.msk.f32.mxu0 %vm425_vm3, %v3702_v39  ;;  %7828 = vrcp.f32 %v3979_v9 }
0x1afd   :  { %7041 = vmatmul.mubr.msk.f32.vlgmr.msra.gmra.mrb[38].mxu0 %vm425_vm3, %v3703_v45  ;;  %7830 = vrcp.f32 %v3982_v32 }
0x1afe   :  { %7044 = vmatpush3.msra.mxu0 %v8723_v34  ;;  %v4077_v47 = vpop.permute.xlu0 %4076 }
0x1aff   :  { %v7689_v42 = vpop.permute.xlu1 %7688 }
0x1b00   :  { %v7691_v22 = vunpack.i.h.bf16 %v7689_v42  ;;  %v7690_v5 = vunpack.i.l.bf16 %v7689_v42 }
0x1b02   :  { %v7464_v12 = vpack.c.bf16 %v7691_v22, %v7690_v5 }
0x1b04   :  { %7465 = vmatprep.subr.bf16.mxu0 %v7464_v12 }
0x1b06   :  { %v7829_v33 = vpop.eup %7828 }
0x1b07   :  { %v7831_v38 = vpop.eup %7830  ;;  %v3985_v41 = vmul.f32 %v7829_v33, %v7823_v0 }
0x1b08   :  { %v3986_v3 = vmul.f32 %v7831_v38, %v7821_v62 }
0x1bd0   :  { %v7042_v36 = vpop.f32.mrb[38].mxu0 }
0x1bd1   :  { %v3784_v37 = vpop.f32.mrb[39].mxu0 }
0x1bd2   :  { %7045 = vmatprep.mubr.msk.f32.mxu0 %vm337_vm1, %v3784_v37 }
0x1bd3   :  { %7046 = vmatmul.mubr.msk.f32.vlgmr.msra.gmra.mrb[40].mxu0 %vm337_vm1, %v7042_v36 }
0x1bd4   :  { %7467 = vmatpush3.bf16.msra.mxu0 %v7464_v12  ;;  %7059 = vmatprep.mubr.msk.f32.mxu0 %vm425_vm3, %v3985_v41 }
0x1bd5   :  { %7470 = vmatprep.subr.msk.bf16.mxu0 %vm8101_vm2, %v7468_v44 }
0x1bd7   :  { %7060 = vmatmul.mubr.msk.f32.vlgmr.msra.gmra.mrb[42].mxu0 %vm425_vm3, %v3986_v3 }
0x1bd8   :  { %7066 = vmatprep.mubr.msk.f32.mxu0 %vm337_vm1, %v4075_v50 }
0x1bdd   :  { %7473 = vmatpush3.bf16.xpose.msk.msra.mxu0 %vm8101_vm2, %v7468_v44 }
0x1bde   :  { %7076 = vmatprep.subr.mxu0 %v8753_v10 }
0x1be4   :  { %7067 = vmatmul.mubr.msk.f32.vlgmr.msra.gmra.mrb[44].mxu0 %vm337_vm1, %v4077_v47 }
0x1be5   :  { %7077 = vmatpush3.msra.mxu0 %v8753_v10 }
0x1be6   :  { %7081 = vmatprep.subr.mxu0 %v8766_v29 }
0x1caa   :  { %v8739_v51 = vpop.f32.mrb[42].mxu0 }
0x1cab   :  { %v4065_v52 = vpop.f32.mrb[43].mxu0 }
0x1cb7   :  { %v7068_v53 = vpop.f32.mrb[44].mxu0 }
0x1cb8   :  { %v4162_v13 = vadd.f32 %v8663_v16, %v7068_v53  ;;  %v4156_v46 = vpop.f32.mrb[45].mxu0 }
0x1cb9   :  { %v4157_v18 = vadd.f32 %v8657_v48, %v4156_v46  ;;  %v8814_v46 = vld [vmem:[%s9080_s12 + $0x1] ss:$0 sm:$0xff] }
0x1cba   :  { %v4168_v55 = vsel %vm425_vm3, %v4162_v13, -inf }
0x1cbb   :  { %4169 = vmax.xlane.f32.xlu0 %v4168_v55  ;;  %v4165_v54 = vsel %vm425_vm3, %v4157_v18, -inf  ;;  %v8819_v55 = vld [vmem:[%s9081_s13 + $0x1] ss:$0 sm:$0xff] }
0x1cbc   :  { %4166 = vmax.xlane.f32.xlu1 %v4165_v54 }
0x1ccd   :  { %7698 = vrot.lane.b32.xlu1 %v8650_v43, %s7916_s26 }
0x1d48   :  { %v4170_v19 = vpop.xlane.xlu0 %4169 }
0x1d49   :  { %v4172_v20 = vsub.f32 %v4162_v13, %v4170_v19  ;;  %v4167_v57 = vpop.xlane.xlu1 %4166 }
0x1d4a   :  { %v4171_v58 = vsub.f32 %v4157_v18, %v4167_v57 }
0x1d4b   :  { %v4175_v60 = vmul.f32 1.442695, %v4172_v20 }
0x1d4c   :  { %v4173_v61 = vmul.f32 1.442695, %v4171_v58 }
0x1d4d   :  { %v7699_v62 = vpop.permute.xlu1 %7698 }
0x1d4e   :  { %7832 = vpow2.f32 %v4173_v61  ;;  %v7701_v16 = vunpack.i.h.bf16 %v7699_v62  ;;  %v7700_v56 = vunpack.i.l.bf16 %v7699_v62 }
0x1d4f   :  { %7834 = vpow2.f32 %v4175_v60 }
0x1d50   :  { %v7474_v48 = vpack.c.bf16 %v7701_v16, %v7700_v56 }
0x1d52   :  { %7475 = vmatprep.subr.bf16.mxu1 %v7474_v48 }
0x1d53   :  { %7477 = vmatpush3.bf16.msra.mxu1 %v7474_v48 }
0x1d54   :  { %7479 = vmatprep.subr.bf16.mxu1 %v8541_v14 }
0x1d58   :  { %v7833_v0 = vpop.eup %7832 }
0x1d59   :  { %v4177_v1 = vsel %vm425_vm3, %v7833_v0, 0.0  ;;  %v7835_v43 = vpop.eup %7834 }
0x1d5a   :  { %4178 = vadd.xlane.f32.xlu0 %v4177_v1  ;;  %v4180_v4 = vsel %vm425_vm3, %v7835_v43, 0.0 }
0x1d5e   :  { %4181 = vadd.xlane.f32.xlu0 %v4180_v4 }
0x1de7   :  { %v4179_v11 = vpop.xlane.xlu0 %4178 }
0x1de8   :  { %7836 = vrcp.f32 %v4179_v11 }
0x1deb   :  { %v4182_v15 = vpop.xlane.xlu0 %4181 }
0x1dec   :  { %7838 = vrcp.f32 %v4182_v15 }
0x1df2   :  { %v7837_v6 = vpop.eup %7836 }
0x1df3   :  { %v4185_v7 = vmul.f32 %v7837_v6, %v7833_v0 }
0x1df5   :  { %7073 = vmatprep.mubr.msk.f32.mxu1 %vm425_vm3, %v4185_v7 }
0x1df6   :  { %v7839_v32 = vpop.eup %7838 }
0x1df7   :  { %v4186_v17 = vmul.f32 %v7839_v32, %v7835_v43 }
0x1df9   :  { %7074 = vmatmul.mubr.msk.f32.vlgmr.msra.gmra.mrb[28].mxu1 %vm425_vm3, %v4186_v17 }
0x1dfa   :  { %7481 = vmatpush3.bf16.msra.mxu1 %v8541_v14  ;;  %v8773_v14 = vld [vmem:[%s9075_s7 + $0x30] sm:$0xff] }
0x1dfb   :  { %7483 = vmatprep.subr.bf16.mxu1 %v8551_v8 }
0x1dfe   :  { %7485 = vmatpush3.bf16.msra.mxu1 %v8551_v8  ;;  %v7886_v8 = vld [vmem:[%s9097_s28] sm:$0xff] }
0x1dff   :  { %7487 = vmatprep.subr.bf16.mxu1 %v8561_v59 }
0x1ecc   :  { %v7075_v39 = vpop.f32.mrb[28].mxu1 }
0x1ecd   :  { %v4265_v45 = vpop.f32.mrb[29].mxu1 }
0x1ece   :  { %7078 = vmatprep.mubr.msk.f32.mxu0 %vm337_vm1, %v4265_v45 }
0x1ecf   :  { %7079 = vmatmul.mubr.msk.f32.vlgmr.msra.gmra.mrb[40].mxu0 %vm337_vm1, %v7075_v39 }
0x1ed0   :  { %7082 = vmatpush3.msra.mxu0 %v8766_v29  ;;  %7083 = vmatprep.mubr.msk.f32.mxu0 %vm337_vm1, %v8696_v28 }
0x1ed1   :  { %7086 = vmatprep.subr.mxu0 %v8773_v14 }
0x1ed7   :  { %7084 = vmatmul.mubr.msk.f32.vlgmr.msra.gmra.mrb[40].mxu0 %vm337_vm1, %v8694_v27  ;;  %v7887_v27 = vld [vmem:[%s9097_s28 + $0x8] sm:$0xff] }
0x1ed8   :  { %7087 = vmatpush3.msra.mxu0 %v8773_v14  ;;  %7088 = vmatprep.mubr.msk.f32.mxu0 %vm337_vm1, %v4065_v52 }
0x1ed9   :  { %7495 = vmatprep.subr.bf16.mxu0 %v8594_v40 }
0x1edf   :  { %7089 = vmatmul.mubr.msk.f32.vlgmr.msra.gmra.mrb[40].mxu0 %vm337_vm1, %v8739_v51 }
0x1ee0   :  { %7497 = vmatpush3.bf16.msra.mxu0 %v8594_v40  ;;  %7121 = vmatprep.mubr.msk.f32.mxu0 %vm79_vm0, %v7886_v8  ;;  %v8801_v40 = vld [vmem:[%s9079_s11 + $0x1] ss:$0 sm:$0xff] }
0x1ee1   :  { %7499 = vmatprep.subr.bf16.mxu0 %v8604_v23 }
0x1ee4   :  { %7501 = vmatpush3.bf16.msra.mxu0 %v8604_v23 }
0x1ee7   :  { %7122 = vmatmul.mubr.msk.f32.vlgmr.msra.gmra.mrb[46].mxu0 %vm79_vm0, %v7887_v27 }
0x1fb2   :  { %v7090_v28 = vpop.f32.mrb[40].mxu0 }
0x1fb3   :  { %v4508_v9 = vpop.f32.mrb[41].mxu0  ;;  %v4528_v42 = vadd.f32 %v7090_v28, %v8801_v40  ;;  %v8883_v28 = vld [vmem:[%s9071_s3 + $0x8] sm:$0xff] }
0x1fb4   :  { %v4527_v22 = vadd.f32 %v8801_v40, %v4508_v9 }
0x1fb5   :  { %v4530_v12 = vadd.f32 %v4528_v42, %v8578_v21 }
0x1fb6   :  { %v4529_v5 = vadd.f32 %v4527_v22, %v8566_v30  ;;  %v8889_v22 = vld [vmem:[%s9071_s3] sm:$0xff] }
0x1fb7   :  { %v4534_v63 = vsel %vm79_vm0, %v4530_v12, 0.0 }
0x1fb8   :  { %v4531_v23 = vsel %vm79_vm0, %v4529_v5, 0.0 }
0x1fb9   :  { %4532 = vadd.xlane.f32.xlu0 %v4531_v23 }
0x1fbd   :  { %4535 = vadd.xlane.f32.xlu0 %v4534_v63 }
0x2046   :  { %v4533_v33 = vpop.xlane.xlu0 %4532 }
0x2047   :  { %v4537_v24 = vmul.f32 0.03125, %v4533_v33 }
0x2049   :  { %v4539_v2 = vsub.f32 %v4529_v5, %v4537_v24 }
0x204a   :  { %v4536_v36 = vpop.xlane.xlu0 %4535 }
0x204b   :  { %v4538_v37 = vmul.f32 0.03125, %v4536_v36  ;;  %v4541_v38 = vmul.f32 %v4539_v2, %v4539_v2 }
0x204d   :  { %v4540_v41 = vsub.f32 %v4530_v12, %v4538_v37  ;;  %v4543_v44 = vsel %vm79_vm0, %v4541_v38, 0.0 }
0x204e   :  { %4544 = vadd.xlane.f32.xlu0 %v4543_v44 }
0x204f   :  { %v4542_v3 = vmul.f32 %v4540_v41, %v4540_v41 }
0x2051   :  { %v4546_v30 = vsel %vm79_vm0, %v4542_v3, 0.0 }
0x2052   :  { %4547 = vadd.xlane.f32.xlu0 %v4546_v30 }
0x20db   :  { %v4545_v50 = vpop.xlane.xlu0 %4544 }
0x20dc   :  { %v4549_v21 = vmul.f32 0.03125, %v4545_v50 }
0x20de   :  { %v4551_v47 = vadd.f32 1e-05, %v4549_v21 }
0x20df   :  { %v4548_v51 = vpop.xlane.xlu0 %4547 }
0x20e0   :  { %7840 = vrsqrt.f32 %v4551_v47  ;;  %v4550_v52 = vmul.f32 0.03125, %v4548_v51 }
0x20e2   :  { %v4552_v53 = vadd.f32 1e-05, %v4550_v52 }
0x20e4   :  { %7842 = vrsqrt.f32 %v4552_v53 }
0x20ea   :  { %v7841_v13 = vpop.eup %7840 }
0x20eb   :  { %v4555_v18 = vmul.f32 %v7841_v13, %v4539_v2  ;;  %v7123_v13 = vpop.f32.mrb[46].mxu0 }
0x20ed   :  { %v4565_v54 = vmul.f32 %v8814_v46, %v4555_v18 }
0x20ee   :  { %v7843_v19 = vpop.eup %7842 }
0x20ef   :  { %v4556_v20 = vmul.f32 %v7843_v19, %v4540_v41  ;;  %v8823_v57 = vadd.f32 %v8819_v55, %v4565_v54  ;;  %v4799_v54 = vpop.f32.mrb[47].mxu0  ;;  %v4805_v19 = vadd.f32 %v7123_v13, %v8641_v35 }
0x20f1   :  { %7099 = vmatprep.mubr.msk.f32.mxu1 %vm79_vm0, %v8823_v57  ;;  %v4566_v58 = vmul.f32 %v8814_v46, %v4556_v20  ;;  %v4800_v20 = vadd.f32 %v8641_v35, %v4799_v54 }
0x20f3   :  { %v8829_v60 = vadd.f32 %v8819_v55, %v4566_v58  ;;  %v8902_v58 = vpack.i.bf16 %v4805_v19, %v4800_v20 }
0x20f5   :  { %7100 = vmatmul.mubr.msk.f32.vlgmr.msra.gmra.mrb[30].mxu1 %vm79_vm0, %v8829_v60 }
0x20f6   :  { %7489 = vmatpush3.bf16.msra.mxu1 %v8561_v59  ;;  %7110 = vmatprep.mubr.msk.f32.mxu1 %vm79_vm0, %v7886_v8 }
0x20f7   :  { %7491 = vmatprep.subr.bf16.mxu1 %v8580_v49 }
0x20fa   :  { %7493 = vmatpush3.bf16.msra.mxu1 %v8580_v49 }
0x20fd   :  { %7111 = vmatmul.mubr.msk.f32.vlgmr.msra.gmra.mrb[32].mxu1 %vm79_vm0, %v7887_v27 }
0x21c8   :  { %v7101_v61 = vpop.f32.mrb[30].mxu1 }
0x21c9   :  { %v4649_v62 = vpop.f32.mrb[31].mxu1  ;;  %v8856_v43 = vadd.f32 %v7101_v61, %v8618_v25  ;;  %v7508_v61 = vpack.c.bf16 %v4805_v19, %v4800_v20 }
0x21ca   :  { %v8839_v16 = vadd.f32 %v8618_v25, %v4649_v62 }
0x21cb   :  { %7509 = vmatprep.subr.bf16.mxu0 %v7508_v61 }
0x21cc   :  { %4998 = vrot.lane.b32.xlu0 %v8839_v16, %s7914_s21  ;;  %7128 = vmatprep.mubr.msk.f32.mxu1 %vm337_vm1, %v8839_v16 }
0x21cd   :  { %7511 = vmatpush3.bf16.msra.mxu0 %v7508_v61 }
0x21d0   :  { %v7112_v59 = vpop.f32.mrb[32].mxu1 }
0x21d1   :  { %v4730_v56 = vadd.f32 %v7112_v59, %v8630_v31  ;;  %v4724_v48 = vpop.f32.mrb[33].mxu1 }
0x21d2   :  { %v4725_v0 = vadd.f32 %v8630_v31, %v4724_v48 }
0x21d4   :  { %v8847_v49 = vpack.i.bf16 %v4730_v56, %v4725_v0  ;;  %v7502_v1 = vpack.c.bf16 %v4730_v56, %v4725_v0 }
0x21d6   :  { %7703 = vrot.lane.b32.xlu1 %v8847_v49, %s7914_s21  ;;  %7504 = vmatprep.subr.msk.bf16.mxu1 %vm8101_vm2, %v7502_v1 }
0x21d7   :  { %7507 = vmatpush3.bf16.xpose.msk.msra.mxu1 %vm8101_vm2, %v7502_v1 }
0x21da   :  { %5000 = vrot.lane.b32.xlu1 %v8856_v43, %s7914_s21 }
0x21de   :  { %7708 = vrot.lane.b32.xlu1 %v8847_v49, %s7915_s23  ;;  %7129 = vmatmul.mubr.msk.f32.vlgmr.msra.gmra.mrb[34].mxu1 %vm337_vm1, %v8856_v43 }
0x21e2   :  { %5281 = vrot.lane.b32.xlu1 %v8839_v16, %s7915_s23 }
0x21e6   :  { %5283 = vrot.lane.b32.xlu1 %v8856_v43, %s7915_s23 }
0x223e   :  { %v4999_v31 = vpop.permute.xlu0 %4998 }
0x223f   :  { %7142 = vmatprep.mubr.msk.f32.mxu1 %vm337_vm1, %v4999_v31 }
0x2248   :  { %v7704_v25 = vpop.permute.xlu1 %7703 }
0x2249   :  { %v7706_v4 = vunpack.i.h.bf16 %v7704_v25  ;;  %v7705_v11 = vunpack.i.l.bf16 %v7704_v25 }
0x224b   :  { %v7512_v15 = vpack.c.bf16 %v7706_v4, %v7705_v11 }
0x224c   :  { %v5001_v6 = vpop.permute.xlu1 %5000 }
0x224d   :  { %7514 = vmatprep.subr.msk.bf16.mxu1 %vm8101_vm2, %v7512_v15 }
0x224e   :  { %7517 = vmatpush3.bf16.xpose.msk.msra.mxu1 %vm8101_vm2, %v7512_v15 }
0x2250   :  { %v7709_v7 = vpop.permute.xlu1 %7708 }
0x2251   :  { %v7711_v32 = vunpack.i.h.bf16 %v7709_v7  ;;  %v7710_v17 = vunpack.i.l.bf16 %v7709_v7 }
0x2253   :  { %v7522_v39 = vpack.c.bf16 %v7711_v32, %v7710_v17 }
0x2254   :  { %v5282_v45 = vpop.permute.xlu1 %5281 }
0x2255   :  { %7143 = vmatmul.mubr.msk.f32.vlgmr.msra.gmra.mrb[36].mxu1 %vm337_vm1, %v5001_v6  ;;  %7524 = vmatprep.subr.msk.bf16.mxu1 %vm8101_vm2, %v7522_v39 }
0x2256   :  { %7527 = vmatpush3.bf16.xpose.msk.msra.mxu1 %vm8101_vm2, %v7522_v39  ;;  %7161 = vmatprep.mubr.msk.f32.mxu1 %vm337_vm1, %v5282_v45 }
0x2258   :  { %v5284_v8 = vpop.permute.xlu1 %5283 }
0x225d   :  { %7162 = vmatmul.mubr.msk.f32.vlgmr.msra.gmra.mrb[38].mxu1 %vm337_vm1, %v5284_v8 }
0x22b1   :  { %v7130_v27 = vpop.f32.mrb[34].mxu1 }
0x22b2   :  { %v4892_v9 = vadd.f32 %v8883_v28, %v7130_v27  ;;  %v4886_v42 = vpop.f32.mrb[35].mxu1 }
0x22b3   :  { %v4887_v5 = vadd.f32 %v8889_v22, %v4886_v42 }
0x22b4   :  { %v4898_v23 = vsel %vm425_vm3, %v4892_v9, -inf }
0x22b5   :  { %4899 = vmax.xlane.f32.xlu0 %v4898_v23  ;;  %v4895_v12 = vsel %vm425_vm3, %v4887_v5, -inf }
0x22b6   :  { %4896 = vmax.xlane.f32.xlu1 %v4895_v12 }
0x2328   :  { %v7144_v63 = vpop.f32.mrb[36].mxu1 }
0x2329   :  { %v5086_v33 = vadd.f32 %v8883_v28, %v7144_v63  ;;  %v5080_v24 = vpop.f32.mrb[37].mxu1 }
0x232a   :  { %v5081_v2 = vadd.f32 %v8889_v22, %v5080_v24 }
0x232b   :  { %v5092_v36 = vsel %vm425_vm3, %v5086_v33, -inf }
0x232c   :  { %5093 = vmax.xlane.f32.xlu1 %v5092_v36  ;;  %v5089_v37 = vsel %vm425_vm3, %v5081_v2, -inf }
0x232d   :  { %5090 = vmax.xlane.f32.xlu0 %v5089_v37 }
0x2330   :  { %v7163_v38 = vpop.f32.mrb[38].mxu1 }
0x2331   :  { %v5363_v41 = vpop.f32.mrb[39].mxu1  ;;  %v5369_v15 = vadd.f32 %v8883_v28, %v7163_v38 }
0x2332   :  { %v5364_v4 = vadd.f32 %v8889_v22, %v5363_v41 }
0x2333   :  { %v5375_v7 = vsel %vm425_vm3, %v5369_v15, -inf }
0x2334   :  { %v5372_v6 = vsel %vm425_vm3, %v5364_v4, -inf }
0x2342   :  { %v4900_v44 = vpop.xlane.xlu0 %4899 }
0x2343   :  { %v4902_v3 = vsub.f32 %v4892_v9, %v4900_v44  ;;  %v4897_v30 = vpop.xlane.xlu1 %4896 }
0x2344   :  { %v4901_v50 = vsub.f32 %v4887_v5, %v4897_v30 }
0x2345   :  { %v4905_v21 = vmul.f32 1.442695, %v4902_v3 }
0x2346   :  { %v4903_v47 = vmul.f32 1.442695, %v4901_v50 }
0x2347   :  { %7844 = vpow2.f32 %v4905_v21 }
0x2348   :  { %7846 = vpow2.f32 %v4903_v47 }
0x2351   :  { %v7845_v51 = vpop.eup %7844 }
0x2352   :  { %v7847_v52 = vpop.eup %7846  ;;  %v4910_v53 = vsel %vm425_vm3, %v7845_v51, 0.0 }
0x2353   :  { %4911 = vadd.xlane.f32.xlu1 %v4910_v53  ;;  %v4907_v18 = vsel %vm425_vm3, %v7847_v52, 0.0 }
0x2354   :  { %4908 = vadd.xlane.f32.xlu0 %v4907_v18 }
0x23b9   :  { %v5094_v62 = vpop.xlane.xlu1 %5093 }
0x23ba   :  { %v5096_v59 = vsub.f32 %v5086_v33, %v5094_v62  ;;  %v5091_v56 = vpop.xlane.xlu0 %5090 }
0x23bb   :  { %v5095_v48 = vsub.f32 %v5081_v2, %v5091_v56 }
0x23bc   :  { %v5099_v0 = vmul.f32 1.442695, %v5096_v59 }
0x23bd   :  { %v5097_v1 = vmul.f32 1.442695, %v5095_v48 }
0x23be   :  { %7848 = vpow2.f32 %v5099_v0 }
0x23bf   :  { %7850 = vpow2.f32 %v5097_v1 }
0x23c8   :  { %v7849_v31 = vpop.eup %7848 }
0x23c9   :  { %v7851_v25 = vpop.eup %7850  ;;  %v5104_v11 = vsel %vm425_vm3, %v7849_v31, 0.0 }
0x23ca   :  { %5105 = vadd.xlane.f32.xlu1 %v5104_v11  ;;  %v5101_v35 = vsel %vm425_vm3, %v7851_v25, 0.0 }
0x23cb   :  { %5102 = vadd.xlane.f32.xlu0 %v5101_v35 }
0x23ce   :  { %5373 = vmax.xlane.f32.xlu1 %v5372_v6 }
0x23d2   :  { %5376 = vmax.xlane.f32.xlu1 %v5375_v7 }
0x23e0   :  { %v4912_v32 = vpop.xlane.xlu1 %4911 }
0x23e1   :  { %7852 = vrcp.f32 %v4912_v32  ;;  %7713 = vrot.lane.b32.xlu0 %v8902_v58, %s7914_s21  ;;  %v4909_v17 = vpop.xlane.xlu0 %4908 }
0x23e2   :  { %7854 = vrcp.f32 %v4909_v17 }
0x23e5   :  { %7723 = vrot.lane.b32.xlu0 %v8847_v49, %s7916_s26 }
0x23e9   :  { %5481 = vrot.lane.b32.xlu0 %v8839_v16, %s7916_s26 }
0x23eb   :  { %v7853_v39 = vpop.eup %7852 }
0x23ec   :  { %v7855_v45 = vpop.eup %7854  ;;  %v4916_v27 = vmul.f32 %v7853_v39, %v7845_v51 }
0x23ed   :  { %5483 = vrot.lane.b32.xlu0 %v8856_v43, %s7916_s26  ;;  %v4915_v8 = vmul.f32 %v7855_v45, %v7847_v52 }
0x23ef   :  { %7135 = vmatprep.mubr.msk.f32.mxu0 %vm425_vm3, %v4915_v8 }
0x23f0   :  { %7136 = vmatmul.mubr.msk.f32.vlgmr.msra.gmra.mrb[48].mxu0 %vm425_vm3, %v4916_v27 }
0x2457   :  { %v5106_v9 = vpop.xlane.xlu1 %5105 }
0x2458   :  { %7856 = vrcp.f32 %v5106_v9  ;;  %v5103_v42 = vpop.xlane.xlu0 %5102 }
0x2459   :  { %7858 = vrcp.f32 %v5103_v42 }
0x245b   :  { %v5374_v5 = vpop.xlane.xlu1 %5373 }
0x245c   :  { %v7714_v49 = vpop.permute.xlu0 %7713  ;;  %v5378_v16 = vsub.f32 %v5364_v4, %v5374_v5 }
0x245d   :  { %v7716_v23 = vunpack.i.h.bf16 %v7714_v49  ;;  %v7715_v12 = vunpack.i.l.bf16 %v7714_v49 }
0x245e   :  { %v5380_v2 = vmul.f32 1.442695, %v5378_v16 }
0x245f   :  { %v7518_v63 = vpack.c.bf16 %v7716_v23, %v7715_v12  ;;  %v5377_v33 = vpop.xlane.xlu1 %5376 }
0x2460   :  { %v5379_v24 = vsub.f32 %v5369_v15, %v5377_v33  ;;  %v7724_v54 = vpop.permute.xlu0 %7723 }
0x2461   :  { %7519 = vmatprep.subr.bf16.mxu0 %v7518_v63  ;;  %v7726_v20 = vunpack.i.h.bf16 %v7724_v54  ;;  %v7725_v61 = vunpack.i.l.bf16 %v7724_v54 }
0x2462   :  { %v7857_v43 = vpop.eup %7856  ;;  %v5382_v36 = vmul.f32 1.442695, %v5379_v24  ;;  %7521 = vmatpush3.bf16.msra.mxu0 %v7518_v63 }
0x2463   :  { %v7859_v37 = vpop.eup %7858  ;;  %7152 = vmatprep.subr.mxu0 %v8723_v34  ;;  %v5110_v41 = vmul.f32 %v7857_v43, %v7849_v31  ;;  %v7532_v0 = vpack.c.bf16 %v7726_v20, %v7725_v61  ;;  %v6399_v20 = vld [vmem:[%s9082_s14 + $0x38] sm:$0xff] }
0x2464   :  { %7860 = vpow2.f32 %v5382_v36  ;;  %v5109_v38 = vmul.f32 %v7859_v37, %v7851_v25  ;;  %v5482_v31 = vpop.permute.xlu0 %5481 }
0x2465   :  { %7862 = vpow2.f32 %v5380_v2 }
0x2466   :  { %7149 = vmatprep.mubr.msk.f32.mxu0 %vm425_vm3, %v5109_v38 }
0x2467   :  { %7150 = vmatmul.mubr.msk.f32.vlgmr.msra.gmra.mrb[50].mxu0 %vm425_vm3, %v5110_v41 }
0x2468   :  { %7153 = vmatpush3.msra.mxu0 %v8723_v34  ;;  %v5484_v25 = vpop.permute.xlu0 %5483 }
0x246e   :  { %v7861_v44 = vpop.eup %7860 }
0x246f   :  { %v5387_v3 = vsel %vm425_vm3, %v7861_v44, 0.0  ;;  %v7863_v30 = vpop.eup %7862 }
0x2470   :  { %5388 = vadd.xlane.f32.xlu1 %v5387_v3  ;;  %v5384_v50 = vsel %vm425_vm3, %v7863_v30, 0.0 }
0x2474   :  { %5385 = vadd.xlane.f32.xlu1 %v5384_v50 }
0x2485   :  { %7718 = vrot.lane.b32.xlu1 %v8902_v58, %s7915_s23 }
0x24c3   :  { %v8928_v21 = vpop.f32.mrb[48].mxu0 }
0x24c4   :  { %v8930_v47 = vpop.f32.mrb[49].mxu0 }
0x24fd   :  { %v5389_v51 = vpop.xlane.xlu1 %5388 }
0x2501   :  { %v5386_v52 = vpop.xlane.xlu1 %5385 }
0x2502   :  { %7864 = vrcp.f32 %v5386_v52 }
0x2503   :  { %7866 = vrcp.f32 %v5389_v51 }
0x2505   :  { %v7719_v53 = vpop.permute.xlu1 %7718 }
0x2506   :  { %v7721_v13 = vunpack.i.h.bf16 %v7719_v53  ;;  %v7720_v34 = vunpack.i.l.bf16 %v7719_v53 }
0x2508   :  { %v7528_v18 = vpack.c.bf16 %v7721_v13, %v7720_v34 }
0x250a   :  { %7529 = vmatprep.subr.bf16.mxu0 %v7528_v18 }
0x250c   :  { %v7865_v19 = vpop.eup %7864 }
0x250d   :  { %v7867_v56 = vpop.eup %7866  ;;  %v5392_v48 = vmul.f32 %v7865_v19, %v7863_v30  ;;  %v6398_v19 = vld [vmem:[%s9082_s14 + $0x30] sm:$0xff] }
0x250e   :  { %v5393_v1 = vmul.f32 %v7867_v56, %v7861_v44  ;;  %v7546_v61 = vpack.c.bf16 %v6399_v20, %v6398_v19 }
0x253a   :  { %v7151_v62 = vpop.f32.mrb[50].mxu0 }
0x253b   :  { %v5191_v59 = vpop.f32.mrb[51].mxu0 }
0x253c   :  { %7154 = vmatprep.mubr.msk.f32.mxu0 %vm337_vm1, %v5191_v59  ;;  %v6405_v59 = vld [vmem:[%s9084_s16 + $0x88] sm:$0xff] }
0x253d   :  { %7155 = vmatmul.mubr.msk.f32.vlgmr.msra.gmra.mrb[52].mxu0 %vm337_vm1, %v7151_v62  ;;  %v6404_v62 = vld [vmem:[%s9084_s16 + $0x80] sm:$0xff] }
0x253e   :  { %7531 = vmatpush3.bf16.msra.mxu0 %v7528_v18  ;;  %7168 = vmatprep.mubr.msk.f32.mxu0 %vm425_vm3, %v5392_v48  ;;  %v6397_v18 = vld [vmem:[%s9082_s14 + $0x28] sm:$0xff]  ;;  %v7550_v56 = vpack.c.bf16 %v6405_v59, %v6404_v62 }
0x253f   :  { %7534 = vmatprep.subr.msk.bf16.mxu0 %vm8101_vm2, %v7532_v0 }
0x2541   :  { %7169 = vmatmul.mubr.msk.f32.vlgmr.msra.gmra.mrb[54].mxu0 %vm425_vm3, %v5393_v1 }
0x2542   :  { %7175 = vmatprep.mubr.msk.f32.mxu0 %vm337_vm1, %v5482_v31 }
0x2547   :  { %7537 = vmatpush3.bf16.xpose.msk.msra.mxu0 %vm8101_vm2, %v7532_v0 }
0x2548   :  { %7185 = vmatprep.subr.mxu0 %v8753_v10 }
0x254e   :  { %7176 = vmatmul.mubr.msk.f32.vlgmr.msra.gmra.mrb[56].mxu0 %vm337_vm1, %v5484_v25 }
0x254f   :  { %7186 = vmatpush3.msra.mxu0 %v8753_v10 }
0x2550   :  { %7190 = vmatprep.subr.mxu0 %v8766_v29 }
0x2614   :  { %v7170_v4 = vpop.f32.mrb[54].mxu0 }
0x2615   :  { %v5472_v11 = vpop.f32.mrb[55].mxu0 }
0x2621   :  { %v7177_v35 = vpop.f32.mrb[56].mxu0 }
0x2622   :  { %v5569_v15 = vadd.f32 %v8883_v28, %v7177_v35  ;;  %v5563_v6 = vpop.f32.mrb[57].mxu0 }
0x2623   :  { %v5564_v7 = vadd.f32 %v8889_v22, %v5563_v6 }
0x2624   :  { %v5575_v26 = vsel %vm425_vm3, %v5569_v15, -inf }
0x2625   :  { %5576 = vmax.xlane.f32.xlu0 %v5575_v26  ;;  %v5572_v32 = vsel %vm425_vm3, %v5564_v7, -inf }
0x2626   :  { %5573 = vmax.xlane.f32.xlu1 %v5572_v32  ;;  %v6406_v32 = vld [vmem:[%s9084_s16 + $0x90] sm:$0xff] }
0x2637   :  { %7728 = vrot.lane.b32.xlu1 %v8902_v58, %s7916_s26 }
0x26b2   :  { %v5577_v10 = vpop.xlane.xlu0 %5576 }
0x26b3   :  { %v5579_v17 = vsub.f32 %v5569_v15, %v5577_v10  ;;  %v5574_v39 = vpop.xlane.xlu1 %5573  ;;  %v6407_v10 = vld [vmem:[%s9084_s16 + $0x98] sm:$0xff] }
0x26b4   :  { %v5578_v45 = vsub.f32 %v5564_v7, %v5574_v39 }
0x26b5   :  { %v5582_v8 = vmul.f32 1.442695, %v5579_v17 }
0x26b6   :  { %v5580_v27 = vmul.f32 1.442695, %v5578_v45  ;;  %v7554_v45 = vpack.c.bf16 %v6407_v10, %v6406_v32 }
0x26b7   :  { %v7729_v9 = vpop.permute.xlu1 %7728 }
0x26b8   :  { %7868 = vpow2.f32 %v5580_v27  ;;  %v7731_v28 = vunpack.i.h.bf16 %v7729_v9  ;;  %v7730_v42 = vunpack.i.l.bf16 %v7729_v9  ;;  %v6409_v27 = vld [vmem:[%s9084_s16 + $0xa8] sm:$0xff] }
0x26b9   :  { %7870 = vpow2.f32 %v5582_v8  ;;  %v6408_v8 = vld [vmem:[%s9084_s16 + $0xa0] sm:$0xff] }
0x26ba   :  { %v7538_v22 = vpack.c.bf16 %v7731_v28, %v7730_v42  ;;  %v7558_v9 = vpack.c.bf16 %v6409_v27, %v6408_v8  ;;  %v6410_v28 = vld [vmem:[%s9084_s16 + $0xb0] sm:$0xff]  ;;  %v6411_v42 = vld [vmem:[%s9084_s16 + $0xb8] sm:$0xff] }
0x26bc   :  { %7539 = vmatprep.subr.bf16.mxu1 %v7538_v22 }
0x26bd   :  { %7541 = vmatpush3.bf16.msra.mxu1 %v7538_v22  ;;  %v7562_v22 = vpack.c.bf16 %v6411_v42, %v6410_v28 }
0x26c2   :  { %v7869_v5 = vpop.eup %7868 }
0x26c3   :  { %v5584_v49 = vsel %vm425_vm3, %v7869_v5, 0.0  ;;  %v7871_v23 = vpop.eup %7870 }
0x26c4   :  { %5585 = vadd.xlane.f32.xlu0 %v5584_v49  ;;  %v5587_v58 = vsel %vm425_vm3, %v7871_v23, 0.0  ;;  %v6413_v49 = vld [vmem:[%s9084_s16 + $0xc8] sm:$0xff] }
0x26c8   :  { %5588 = vadd.xlane.f32.xlu0 %v5587_v58  ;;  %v6414_v58 = vld [vmem:[%s9084_s16 + $0xd0] sm:$0xff] }
0x2751   :  { %v5586_v12 = vpop.xlane.xlu0 %5585 }
0x2752   :  { %7872 = vrcp.f32 %v5586_v12  ;;  %v6415_v12 = vld [vmem:[%s9084_s16 + $0xd8] sm:$0xff] }
0x2755   :  { %v5589_v16 = vpop.xlane.xlu0 %5588 }
0x2756   :  { %7874 = vrcp.f32 %v5589_v16  ;;  %v7570_v16 = vpack.c.bf16 %v6415_v12, %v6414_v58 }
0x275c   :  { %v7873_v63 = vpop.eup %7872 }
0x275d   :  { %v5592_v33 = vmul.f32 %v7873_v63, %v7869_v5  ;;  %v6412_v5 = vld [vmem:[%s9084_s16 + $0xc0] sm:$0xff] }
0x275e   :  { %v6416_v63 = vld [vmem:[%s9084_s16 + $0xe0] sm:$0xff] }
0x275f   :  { %7182 = vmatprep.mubr.msk.f32.mxu1 %vm425_vm3, %v5592_v33  ;;  %v6417_v33 = vld [vmem:[%s9084_s16 + $0xe8] sm:$0xff] }
0x2760   :  { %v7875_v24 = vpop.eup %7874 }
0x2761   :  { %v5593_v43 = vmul.f32 %v7875_v24, %v7871_v23  ;;  %v7566_v23 = vpack.c.bf16 %v6413_v49, %v6412_v5  ;;  %v7574_v24 = vpack.c.bf16 %v6417_v33, %v6416_v63 }
0x2763   :  { %7183 = vmatmul.mubr.msk.f32.vlgmr.msra.gmra.mrb[40].mxu1 %vm425_vm3, %v5593_v43  ;;  %v6418_v43 = vld [vmem:[%s9084_s16 + $0xf0] sm:$0xff] }
0x2836   :  { %v7184_v2 = vpop.f32.mrb[40].mxu1 }
0x2837   :  { %v5672_v36 = vpop.f32.mrb[41].mxu1 }
0x2838   :  { %7187 = vmatprep.mubr.msk.f32.mxu0 %vm337_vm1, %v5672_v36 }
0x2839   :  { %7188 = vmatmul.mubr.msk.f32.vlgmr.msra.gmra.mrb[52].mxu0 %vm337_vm1, %v7184_v2  ;;  %v6419_v2 = vld [vmem:[%s9084_s16 + $0xf8] sm:$0xff] }
0x283a   :  { %7191 = vmatpush3.msra.mxu0 %v8766_v29  ;;  %7192 = vmatprep.mubr.msk.f32.mxu0 %vm337_vm1, %v8930_v47  ;;  %v7578_v36 = vpack.c.bf16 %v6419_v2, %v6418_v43 }
0x283b   :  { %7195 = vmatprep.subr.mxu0 %v8773_v14 }
0x2841   :  { %7193 = vmatmul.mubr.msk.f32.vlgmr.msra.gmra.mrb[52].mxu0 %vm337_vm1, %v8928_v21 }
0x2842   :  { %7196 = vmatpush3.msra.mxu0 %v8773_v14  ;;  %7197 = vmatprep.mubr.msk.f32.mxu0 %vm337_vm1, %v5472_v11 }
0x2849   :  { %7198 = vmatmul.mubr.msk.f32.vlgmr.msra.gmra.mrb[52].mxu0 %vm337_vm1, %v7170_v4 }
0x291c   :  { %v7199_v37 = vpop.f32.mrb[52].mxu0 }
0x291d   :  { %v5915_v38 = vpop.f32.mrb[53].mxu0  ;;  %v5927_v41 = vadd.f32 %v7199_v37, %v8801_v40  ;;  %v6401_v37 = vld [vmem:[%s9083_s15 + $0x1] ss:$0 sm:$0xff]  ;;  %s7917_s15 = smov [#allocation2]  }
0x291e   :  { %v5926_v29 = vadd.f32 %v8801_v40, %v5915_v38  ;;  %s6195_s16 = sshll.u32 %s7917_s15, 4  ;;  %s6196_s16 = int_to_ptr.vmem [resolvable:$true] %s6195_s16 }
0x291f   :  { %v5929_v3 = vadd.f32 %v5927_v41, %v8829_v60  ;;  %v6396_v60 = vld [vmem:[%s9082_s14 + $0x20] sm:$0xff]  ;;  %p7895_p1 = scmp.lt.s32.totalorder %s6196_s16, %s6196_s16 }
0x2920   :  { %v5928_v44 = vadd.f32 %v5926_v29, %v8823_v57  ;;  %v7542_v54 = vpack.c.bf16 %v6397_v18, %v6396_v60 }
0x2921   :  { %v5933_v50 = vsel %vm79_vm0, %v5929_v3, 0.0 }
0x2922   :  { %v5930_v30 = vsel %vm79_vm0, %v5928_v44, 0.0  ;;  %7543 = vmatprep.subr.bf16.mxu1 %v7542_v54 }
0x2923   :  { %5931 = vadd.xlane.f32.xlu0 %v5930_v30  ;;  %7545 = vmatpush3.bf16.msra.mxu1 %v7542_v54 }
0x2924   :  { %7547 = vmatprep.subr.bf16.mxu1 %v7546_v61 }
0x2927   :  { %5934 = vadd.xlane.f32.xlu0 %v5933_v50  ;;  %7549 = vmatpush3.bf16.msra.mxu1 %v7546_v61  ;;  %v6421_v50 = vld [vmem:[%s9085_s17 + $0x1] ss:$0 sm:$0xff]  ;;  %s7890_s17 = scalar_lea.vmem %s6196_s16, 256 }
0x2928   :  { %7551 = vmatprep.subr.bf16.mxu1 %v7550_v56  ;;  %p7891_p0 = scmp.ne.s32.totalorder %s6196_s16, %s7890_s17  ;;  %p7896_p2 = scmp.lt.s32.totalorder %s7890_s17, %s7890_s17 }
0x292a   :  { %p7897_p3 = por %p7896_p2, %p7895_p1 }
0x292c   :  { %p7898_p4 = pnand %p7897_p3, %p7891_p0 }
0x29b0   :  { %v5932_v14 = vpop.xlane.xlu0 %5931 }
0x29b1   :  { %v5936_v21 = vmul.f32 0.03125, %v5932_v14 }
0x29b3   :  { %v5938_v47 = vsub.f32 %v5928_v44, %v5936_v21 }
0x29b4   :  { %v5935_v51 = vpop.xlane.xlu0 %5934 }
0x29b5   :  { %v5937_v52 = vmul.f32 0.03125, %v5935_v51  ;;  %v5940_v53 = vmul.f32 %v5938_v47, %v5938_v47 }
0x29b7   :  { %v5939_v13 = vsub.f32 %v5929_v3, %v5937_v52  ;;  %v5942_v34 = vsel %vm79_vm0, %v5940_v53, 0.0 }
0x29b8   :  { %5943 = vadd.xlane.f32.xlu0 %v5942_v34 }
0x29b9   :  { %v5941_v40 = vmul.f32 %v5939_v13, %v5939_v13 }
0x29bb   :  { %v5945_v57 = vsel %vm79_vm0, %v5941_v40, 0.0 }
0x29bc   :  { %5946 = vadd.xlane.f32.xlu0 %v5945_v57 }
0x2a45   :  { %v5944_v48 = vpop.xlane.xlu0 %5943 }
0x2a46   :  { %v5948_v0 = vmul.f32 0.03125, %v5944_v48 }
0x2a48   :  { %v5950_v1 = vadd.f32 1e-05, %v5948_v0 }
0x2a49   :  { %v5947_v31 = vpop.xlane.xlu0 %5946 }
0x2a4a   :  { %7876 = vrsqrt.f32 %v5950_v1  ;;  %v5949_v25 = vmul.f32 0.03125, %v5947_v31 }
0x2a4c   :  { %v5951_v4 = vadd.f32 1e-05, %v5949_v25 }
0x2a4e   :  { %7878 = vrsqrt.f32 %v5951_v4 }
0x2a54   :  { %v7877_v11 = vpop.eup %7876 }
0x2a55   :  { %v5954_v35 = vmul.f32 %v7877_v11, %v5938_v47 }
0x2a57   :  { %v5956_v15 = vmul.f32 %v8814_v46, %v5954_v35 }
0x2a58   :  { %v7879_v6 = vpop.eup %7878 }
0x2a59   :  { %v5955_v7 = vmul.f32 %v7879_v6, %v5939_v13  ;;  %v5958_v26 = vadd.f32 %v8819_v55, %v5956_v15 }
0x2a5b   :  { %7208 = vmatprep.mubr.msk.f32.mxu1 %vm79_vm0, %v5958_v26  ;;  %v5957_v17 = vmul.f32 %v8814_v46, %v5955_v7 }
0x2a5d   :  { %v5959_v39 = vadd.f32 %v8819_v55, %v5957_v17 }
0x2a5f   :  { %7209 = vmatmul.mubr.msk.f32.vlgmr.msra.gmra.mrb[42].mxu1 %vm79_vm0, %v5959_v39 }
0x2a60   :  { %7553 = vmatpush3.bf16.msra.mxu1 %v7550_v56 }
0x2a61   :  { %7555 = vmatprep.subr.bf16.mxu1 %v7554_v45 }
0x2a64   :  { %7557 = vmatpush3.bf16.msra.mxu1 %v7554_v45 }
0x2a65   :  { %7559 = vmatprep.subr.bf16.mxu1 %v7558_v9 }
0x2a68   :  { %7561 = vmatpush3.bf16.msra.mxu1 %v7558_v9 }
0x2a69   :  { %7563 = vmatprep.subr.bf16.mxu1 %v7562_v22 }
0x2a6c   :  { %7565 = vmatpush3.bf16.msra.mxu1 %v7562_v22 }
0x2a6d   :  { %7567 = vmatprep.subr.bf16.mxu1 %v7566_v23 }
0x2a70   :  { %7569 = vmatpush3.bf16.msra.mxu1 %v7566_v23 }
0x2a71   :  { %7571 = vmatprep.subr.bf16.mxu1 %v7570_v16 }
0x2a74   :  { %7573 = vmatpush3.bf16.msra.mxu1 %v7570_v16 }
0x2a75   :  { %7575 = vmatprep.subr.bf16.mxu1 %v7574_v24 }
0x2a78   :  { %7577 = vmatpush3.bf16.msra.mxu1 %v7574_v24 }
0x2a79   :  { %7579 = vmatprep.subr.bf16.mxu1 %v7578_v36 }
0x2a7c   :  { %7581 = vmatpush3.bf16.msra.mxu1 %v7578_v36 }
0x2b32   :  { %v7210_v38 = vpop.f32.mrb[42].mxu1 }
0x2b33   :  { %v6051_v41 = vadd.f32 %v7210_v38, %v6401_v37  ;;  %v6045_v29 = vpop.f32.mrb[43].mxu1 }
0x2b34   :  { %v6046_v44 = vadd.f32 %v6401_v37, %v6045_v29 }
0x2b35   :  { %v6055_v30 = vmax.f32 %v6051_v41, 0.0 }
0x2b36   :  { %v6054_v3 = vmax.f32 %v6046_v44, 0.0 }
0x2b38   :  { %7243 = vmatprep.mubr.f32.mxu1 %v6054_v3 }
0x2b39   :  { %7244 = vmatmul.mubr.f32.vlgmr.msra.gmra.mrb[44].mxu1 %v6055_v30 }
0x2c0c   :  { %v7245_v14 = vpop.f32.mrb[44].mxu1 }
0x2c0d   :  { %v6153_v21 = vadd.f32 %v7245_v14, %v6421_v50  ;;  %v6147_v47 = vpop.f32.mrb[45].mxu1 }
0x2c0e   :  { %v6148_v51 = vadd.f32 %v6421_v50, %v6147_v47 }
0x2c0f   :  { %v6157_v52 = vadd.f32 %v6153_v21, %v5959_v39 }
0x2c10   :  { %v6156_v53 = vadd.f32 %v6148_v51, %v5958_v26 }
0x2c11   :  { %v6161_v13 = vsel %vm79_vm0, %v6157_v52, 0.0 }
0x2c12   :  { %6162 = vadd.xlane.f32.xlu0 %v6161_v13  ;;  %v6158_v34 = vsel %vm79_vm0, %v6156_v53, 0.0 }
0x2c13   :  { %6159 = vadd.xlane.f32.xlu1 %v6158_v34 }
0x2c9f   :  { %v6163_v40 = vpop.xlane.xlu0 %6162 }
0x2ca0   :  { %v6165_v57 = vmul.f32 0.03125, %v6163_v40  ;;  %v6160_v60 = vpop.xlane.xlu1 %6159 }
0x2ca1   :  { %v6164_v18 = vmul.f32 0.03125, %v6160_v60 }
0x2ca2   :  { %v6167_v54 = vsub.f32 %v6157_v52, %v6165_v57 }
0x2ca3   :  { %v6166_v19 = vsub.f32 %v6156_v53, %v6164_v18 }
0x2ca4   :  { %v6169_v62 = vmul.f32 %v6167_v54, %v6167_v54 }
0x2ca5   :  { %v6168_v20 = vmul.f32 %v6166_v19, %v6166_v19 }
0x2ca6   :  { %v6173_v59 = vsel %vm79_vm0, %v6169_v62, 0.0 }
0x2ca7   :  { %v6170_v61 = vsel %vm79_vm0, %v6168_v20, 0.0 }
0x2ca8   :  { %6171 = vadd.xlane.f32.xlu0 %v6170_v61 }
0x2cac   :  { %6174 = vadd.xlane.f32.xlu0 %v6173_v59 }
0x2d35   :  { %v6172_v56 = vpop.xlane.xlu0 %6171 }
0x2d36   :  { %v6176_v48 = vmul.f32 0.03125, %v6172_v56 }
0x2d38   :  { %v6178_v0 = vadd.f32 1e-05, %v6176_v48 }
0x2d39   :  { %v6175_v1 = vpop.xlane.xlu0 %6174 }
0x2d3a   :  { %7880 = vrsqrt.f32 %v6178_v0  ;;  %v6177_v31 = vmul.f32 0.03125, %v6175_v1 }
0x2d3c   :  { %v6179_v25 = vadd.f32 1e-05, %v6177_v31 }
0x2d3e   :  { %7882 = vrsqrt.f32 %v6179_v25 }
0x2d44   :  { %v7881_v4 = vpop.eup %7880 }
0x2d45   :  { %v6182_v11 = vmul.f32 %v7881_v4, %v6166_v19 }
0x2d47   :  { %v6184_v35 = vmul.f32 %v8814_v46, %v6182_v11 }
0x2d48   :  { %v7883_v15 = vpop.eup %7882 }
0x2d49   :  { %v6183_v6 = vmul.f32 %v7883_v15, %v6167_v54  ;;  %v6186_v7 = vadd.f32 %v8819_v55, %v6184_v35 }
0x2d4b   :  { %v6185_v26 = vmul.f32 %v8814_v46, %v6183_v6  ;;  %6188 = vst.msk [vmem:[#allocation2] sm:$0xff] %vm79_vm0, %v6186_v7 }
0x2d4d   :  { %v6187_v32 = vadd.f32 %v8819_v55, %v6185_v26 }
0x2d4f   :  { %6189 = vst.msk [vmem:[#allocation2 + $0x8] sm:$0xff] %vm79_vm0, %v6187_v32 }
0x2d50   :  { %7901 = shalt.err (!%p7898_p4)
}
0x2d51   :  { %s7902_s11 = scalar_lea.hbm %s9086_s18, 256 }
0x2d52   :  { %p7903_p5 = scmp.ne.s32.totalorder %s9086_s18, %s7902_s11  ;;  %p7906_p6 = scmp.lt.u32.totalorder %s7902_s11, %s9086_s18 }
0x2d54   :  { %p7908_p7 = pnand %p7906_p6, %p7903_p5 }
0x2d56   :  { %7911 = shalt.err (!%p7908_p7)
}
0x2d57   :  { %s7918_s13 = smov 128   ;;  %s7919_s27 = smov 8  }
0x2d58   :  { %6201 = dma.vmem_to_hbm [thread:$0]  %s6196_s16, 256, %s9086_s18, [#allocation3], %s7918_s13, %s7918_s13, %s7919_s27  }
0x2d59   :  { %7912 = dma.done.wait [#allocation3], 256  }
0x2d5a   :  { %7913 = vsyncadd [#allocation3], 4294967040 }
0x2d5b   :  { %6205 = vsyncpa [#allocation3], 1 }

</bundles_post_ra>
